<compile_context>
chip_gen: v5e
topology: v5e:2x2
jax: 0.10.0
libtpu: 0.0.40
codegen_flags: <defaults>
</compile_context>

<pallas_src>
import functools
import math

import jax
import jax.numpy as jnp
from jax.experimental import pallas as pl
from jax.experimental.pallas import tpu as pltpu

VOCAB = 30000
NEG_INF = -1e9
_VOCAB_TILE = 512                                     # lane tile for vocab proj
_VOCAB_PAD = -(-VOCAB // _VOCAB_TILE) * _VOCAB_TILE   # 30208
_VMEM_LIMIT = 48 * 1024 * 1024                        # > v5e default, < v7x physical


# ------------------------------ tiling helpers ------------------------------

def _pick_tile(m, pref):
    """Largest sublane-legal tile <= pref that divides m (mult of 8); else full m."""
    if m <= pref:
        return m
    for cand in (pref, 1024, 512, 256, 128, 64, 32, 16, 8):
        if cand <= pref and m % cand == 0:
            return cand
    return m


def _pick_lane_tile(n, pref):
    """Largest lane-legal tile <= pref that divides n (mult of 128); else full n."""
    if n <= pref:
        return n
    for cand in (pref, 1024, 512, 384, 256, 128):
        if cand <= pref and n % cand == 0:
            return cand
    return n


def _pick_head_group(heads, dh):
    """Heads per attention grid step: smallest divisor of `heads` whose combined
    lane width g*dh is a multiple of 128 (lane-dense output); fallback all heads."""
    for g in range(1, heads + 1):
        if heads % g == 0 and (g * dh) % 128 == 0:
            return g
    return heads


# ----------------------------- Pallas kernels ------------------------------

def _linear_kernel_1k(x_ref, w_ref, b_ref, o_ref, *, relu):
    """Single-K-block matmul: no accumulator scratch needed."""
    out = jnp.dot(x_ref[...].astype(jnp.bfloat16), w_ref[...],
                  preferred_element_type=jnp.float32)
    out = out + b_ref[...].astype(jnp.float32)
    if relu:
        out = jnp.maximum(out, 0.0)
    o_ref[...] = out.astype(o_ref.dtype)


def _linear_kernel_acc(x_ref, w_ref, b_ref, o_ref, acc_ref, *, relu):
    """K-tiled matmul with f32 accumulator scratch (output dtype may be bf16)."""
    @pl.when(pl.program_id(2) == 0)
    def _():
        acc_ref[...] = jnp.zeros_like(acc_ref)

    acc_ref[...] += jnp.dot(x_ref[...].astype(jnp.bfloat16), w_ref[...],
                            preferred_element_type=jnp.float32)

    @pl.when(pl.program_id(2) == pl.num_programs(2) - 1)
    def _():
        out = acc_ref[...] + b_ref[...].astype(jnp.float32)
        if relu:
            out = jnp.maximum(out, 0.0)
        o_ref[...] = out.astype(o_ref.dtype)


def linear(x, w, b, *, relu=False, out_dtype=jnp.bfloat16,
           tm_pref=512, tn_pref=512):
    """x: (M,K), w: (K,N) bf16, b: (N,) f32 -> (M,N) out_dtype.

    Tiled over (M, N, K); K is the reduction ("arbitrary") axis.  When K fits a
    single block, no scratch accumulator is allocated.
    """
    M, K = x.shape
    N = w.shape[1]
    tm = _pick_tile(M, tm_pref)
    tn = _pick_lane_tile(N, tn_pref)
    tk = _pick_lane_tile(K, 512)
    k_steps = K // tk
    grid = (M // tm, N // tn, k_steps)

    if k_steps == 1:
        kernel = functools.partial(_linear_kernel_1k, relu=relu)
        scratch = []
    else:
        kernel = functools.partial(_linear_kernel_acc, relu=relu)
        scratch = [pltpu.VMEM((tm, tn), jnp.float32)]

    return pl.pallas_call(
        kernel,
        out_shape=jax.ShapeDtypeStruct((M, N), out_dtype),
        grid=grid,
        in_specs=[
            pl.BlockSpec((tm, tk), lambda i, j, k: (i, k)),
            pl.BlockSpec((tk, tn), lambda i, j, k: (k, j)),
            pl.BlockSpec((1, tn), lambda i, j, k: (0, j)),
        ],
        out_specs=pl.BlockSpec((tm, tn), lambda i, j, k: (i, j)),
        scratch_shapes=scratch,
        compiler_params=pltpu.CompilerParams(
            dimension_semantics=("parallel", "parallel", "arbitrary"),
            vmem_limit_bytes=_VMEM_LIMIT),
    )(x, w, b.reshape(1, N))


def _layernorm_kernel(*refs, eps, fuse_add):
    if fuse_add:
        x_ref, r_ref, g_ref, b_ref, o_ref = refs
        x = x_ref[...].astype(jnp.float32) + r_ref[...].astype(jnp.float32)
    else:
        x_ref, g_ref, b_ref, o_ref = refs
        x = x_ref[...].astype(jnp.float32)
    mu = jnp.mean(x, axis=-1, keepdims=True)
    var = jnp.mean(jnp.square(x - mu), axis=-1, keepdims=True)
    y = (x - mu) * jax.lax.rsqrt(var + eps)
    o_ref[...] = (y * g_ref[...].astype(jnp.float32)
                  + b_ref[...].astype(jnp.float32)).astype(o_ref.dtype)


def layer_norm(x, gamma, beta, residual=None, eps=1e-6):
    """LayerNorm(x [+ residual]); x/residual: (B,S,D), gamma/beta: (D,) -> bf16."""
    B, S, D = x.shape
    M = B * S
    tm = _pick_tile(M, 512)
    row_spec = pl.BlockSpec((tm, D), lambda i: (i, 0))
    vec_spec = pl.BlockSpec((1, D), lambda i: (0, 0))

    args = [x.reshape(M, D)]
    in_specs = [row_spec]
    if residual is not None:
        args.append(residual.reshape(M, D))
        in_specs.append(row_spec)
    args += [gamma.reshape(1, D), beta.reshape(1, D)]
    in_specs += [vec_spec, vec_spec]

    out = pl.pallas_call(
        functools.partial(_layernorm_kernel, eps=eps,
                          fuse_add=residual is not None),
        out_shape=jax.ShapeDtypeStruct((M, D), jnp.bfloat16),
        grid=(M // tm,),
        in_specs=in_specs,
        out_specs=row_spec,
        compiler_params=pltpu.CompilerParams(
            dimension_semantics=("parallel",),
            vmem_limit_bytes=_VMEM_LIMIT),
    )(*args)
    return out.reshape(B, S, D)


def _attention_kernel(q_ref, k_ref, v_ref, mask_ref, o_ref,
                      m_sc, l_sc, acc_sc, *, scale, g_heads, dh):
    """Flash-style attention over one (batch, head-group, q-tile, kv-tile) block.

    q_ref: (tq, G*dh) bf16, k_ref/v_ref: (tkv, G*dh) bf16 (head = lane slice),
    mask_ref: (1|tq, tkv) additive, scratch m/l: (G, tq, 1), acc: (G, tq, dh).
    Output (written at the last kv step) is a lane-dense (tq, G*dh) block.
    """
    kv = pl.program_id(3)

    @pl.when(kv == 0)
    def _():
        m_sc[...] = jnp.full_like(m_sc, -jnp.inf)
        l_sc[...] = jnp.zeros_like(l_sc)
        acc_sc[...] = jnp.zeros_like(acc_sc)

    mask = mask_ref[...].astype(jnp.float32)          # (1|tq, tkv)
    q = q_ref[...]
    k = k_ref[...]
    v = v_ref[...]

    for g in range(g_heads):                          # static, small loop
        sl = slice(g * dh, (g + 1) * dh)              # lane slice for head g
        qh = (q[:, sl].astype(jnp.float32) * scale).astype(jnp.bfloat16)
        s = jax.lax.dot_general(qh, k[:, sl].astype(jnp.bfloat16),
                                (((1,), (1,)), ((), ())),
                                preferred_element_type=jnp.float32)
        s = s + mask                                  # broadcast in f32
        m_prev = m_sc[g]                              # (tq, 1)
        m_new = jnp.maximum(m_prev, jnp.max(s, axis=-1, keepdims=True))
        alpha = jnp.exp(m_prev - m_new)
        p = jnp.exp(s - m_new)
        l_sc[g] = alpha * l_sc[g] + jnp.sum(p, axis=-1, keepdims=True)
        acc_sc[g] = alpha * acc_sc[g] + jnp.dot(
            p.astype(jnp.bfloat16), v[:, sl].astype(jnp.bfloat16),
            preferred_element_type=jnp.float32)
        m_sc[g] = m_new

    @pl.when(kv == pl.num_programs(3) - 1)
    def _():
        outs = [acc_sc[g] * pl.reciprocal(l_sc[g], approx=True)
                for g in range(g_heads)]
        o = outs[0] if g_heads == 1 else jnp.concatenate(outs, axis=-1)
        o_ref[...] = o.astype(o_ref.dtype)


def scaled_dot_attention(q_arr, k_arr, v_arr, mask, *, heads, dh,
                         q_hoff=0, k_hoff=0, v_hoff=0):
    """q_arr: (B,Sq,*), k_arr/v_arr: (B,Sk,*) with head-major columns; the
    *_hoff arguments are head offsets into the (possibly fused) column space.
    mask: (1|B, 1|Sq, Sk) additive.  Returns (B, Sq, heads*dh) bf16."""
    B, Sq = q_arr.shape[0], q_arr.shape[1]
    Sk = k_arr.shape[1]
    D = heads * dh
    G = _pick_head_group(heads, dh)
    Gd = G * dh
    qo, ko, vo = q_hoff // G, k_hoff // G, v_hoff // G
    tq = _pick_tile(Sq, 256)
    tkv = _pick_lane_tile(Sk, 512)
    Bm, Qm = mask.shape[0], mask.shape[1]
    bsel = 1 if Bm == B else 0
    qsel = 1 if Qm == Sq else 0
    mq_blk = tq if qsel else 1
    scale = 1.0 / math.sqrt(dh)

    return pl.pallas_call(
        functools.partial(_attention_kernel, scale=scale, g_heads=G, dh=dh),
        out_shape=jax.ShapeDtypeStruct((B, Sq, D), jnp.bfloat16),
        grid=(B, heads // G, Sq // tq, Sk // tkv),
        in_specs=[
            pl.BlockSpec((None, tq, Gd), lambda b, g, qi, kv: (b, qi, g + qo)),
            pl.BlockSpec((None, tkv, Gd), lambda b, g, qi, kv: (b, kv, g + ko)),
            pl.BlockSpec((None, tkv, Gd), lambda b, g, qi, kv: (b, kv, g + vo)),
            pl.BlockSpec((None, mq_blk, tkv),
                         lambda b, g, qi, kv: (b * bsel, qi * qsel, kv)),
        ],
        out_specs=pl.BlockSpec((None, tq, Gd), lambda b, g, qi, kv: (b, qi, g)),
        scratch_shapes=[
            pltpu.VMEM((G, tq, 1), jnp.float32),      # running max
            pltpu.VMEM((G, tq, 1), jnp.float32),      # running denom
            pltpu.VMEM((G, tq, dh), jnp.float32),     # running numerator
        ],
        compiler_params=pltpu.CompilerParams(
            dimension_semantics=("parallel", "parallel", "parallel", "arbitrary"),
            vmem_limit_bytes=_VMEM_LIMIT),
    )(q_arr, k_arr, v_arr, mask)


# ------------------------------- model glue --------------------------------

def self_attention(x, mask, p, heads):
    B, S, D = x.shape
    dh = D // heads
    qkv = linear(x.reshape(B * S, D), p["w_qkv"], p["b_qkv"])     # fused QKV
    G = _pick_head_group(heads, dh)
    if (G * dh) % 128 == 0:
        # lane-safe: attend directly into the fused (B,S,3D) buffer, no split copies
        qkv3 = qkv.reshape(B, S, 3 * D)
        o = scaled_dot_attention(qkv3, qkv3, qkv3, mask, heads=heads, dh=dh,
                                 q_hoff=0, k_hoff=heads, v_hoff=2 * heads)
    else:
        q, k, v = (t.reshape(B, S, D) for t in jnp.split(qkv, 3, axis=-1))
        o = scaled_dot_attention(q, k, v, mask, heads=heads, dh=dh)
    return linear(o.reshape(B * S, D), p["w_o"], p["b_o"]).reshape(B, S, D)


def cross_attention(x_q, x_kv, mask, p, heads):
    B, Sq, D = x_q.shape
    Sk = x_kv.shape[1]
    dh = D // heads
    q = linear(x_q.reshape(B * Sq, D), p["w_q"], p["b_q"]).reshape(B, Sq, D)
    kv = linear(x_kv.reshape(B * Sk, D), p["w_kv"], p["b_kv"])    # fused KV
    G = _pick_head_group(heads, dh)
    if (G * dh) % 128 == 0:
        kv2 = kv.reshape(B, Sk, 2 * D)
        o = scaled_dot_attention(q, kv2, kv2, mask, heads=heads, dh=dh,
                                 k_hoff=0, v_hoff=heads)
    else:
        k_a, v_a = (t.reshape(B, Sk, D) for t in jnp.split(kv, 2, axis=-1))
        o = scaled_dot_attention(q, k_a, v_a, mask, heads=heads, dh=dh)
    return linear(o.reshape(B * Sq, D), p["w_o"], p["b_o"]).reshape(B, Sq, D)


def feed_forward(x, p):
    B, S, D = x.shape
    h = linear(x.reshape(B * S, D), p["w1"], p["b1"], relu=True)
    y = linear(h, p["w2"], p["b2"])
    return y.reshape(B, S, D)


def encoder_layer(x, src_mask, p, heads):
    a = self_attention(x, src_mask, p["attn"], heads)
    x = layer_norm(x, p["ln1_g"], p["ln1_b"], residual=a, eps=1e-5)
    f = feed_forward(x, p["ffn"])
    x = layer_norm(x, p["ln2_g"], p["ln2_b"], residual=f, eps=1e-5)
    return x


def decoder_layer(x, trg_tri_mask, enc_out, src_mask, p, heads):
    a = self_attention(x, trg_tri_mask, p["self_attn"], heads)
    x = layer_norm(x, p["ln1_g"], p["ln1_b"], residual=a, eps=1e-5)
    c = cross_attention(x, enc_out, src_mask, p["cross_attn"], heads)
    x = layer_norm(x, p["ln2_g"], p["ln2_b"], residual=c, eps=1e-5)
    f = feed_forward(x, p["ffn"])
    x = layer_norm(x, p["ln3_g"], p["ln3_b"], residual=f, eps=1e-5)
    return x


def sinusoid_pe(seq_len, D):
    pos = jnp.arange(seq_len, dtype=jnp.float32)[:, None]
    i = jnp.arange(D, dtype=jnp.float32)[None, :]
    angle = pos / jnp.power(10000.0, (2.0 * jnp.floor(i / 2.0)) / D)
    even = (jnp.arange(D) % 2) == 0
    return jnp.where(even[None, :], jnp.sin(angle), jnp.cos(angle))


def embed(tokens, table, pe):
    D = table.shape[1]
    e = jnp.take(table, tokens, axis=0) * jnp.sqrt(jnp.float32(D))
    return (e + pe[None, : tokens.shape[1], :]).astype(jnp.bfloat16)


def encoder_forward(params, src_tokens, src_mask, heads):
    emb = embed(src_tokens, params["emb_table"], params["pe"])
    # (reference quirk: dropout+layer_norm result is discarded; layers see `emb`)
    h = emb
    for lp in params["layers"]:
        h = encoder_layer(h, src_mask, lp, heads)
    return h


def decoder_forward(params, trg_tokens, trg_tri_mask, enc_out, src_mask, heads):
    x = embed(trg_tokens, params["emb_table"], params["pe"])
    x = layer_norm(x, params["ln_g"], params["ln_b"], eps=1e-6)  # dropout = id (eval)
    for lp in params["layers"]:
        x = decoder_layer(x, trg_tri_mask, enc_out, src_mask, lp, heads)
    B, S, D = x.shape
    logits = linear(x.reshape(B * S, D), params["final_w"], params["final_b"],
                    out_dtype=jnp.float32, tm_pref=1024, tn_pref=_VOCAB_TILE)
    return logits.reshape(B, S, -1)[:, :, :VOCAB]


def transformer_forward(params, src_data, src_mask, trg_data, trg_tri_mask, heads):
    # Compact additive masks (bf16): (B,1,1,Sk)->(B,1,Sk); (1,1,Sq,Sk)->(1,Sq,Sk).
    src_m = src_mask.reshape(src_mask.shape[0], src_mask.shape[2],
                             src_mask.shape[3]).astype(jnp.bfloat16)
    trg_m = trg_tri_mask.reshape(trg_tri_mask.shape[0], trg_tri_mask.shape[2],
                                 trg_tri_mask.shape[3]).astype(jnp.bfloat16)
    enc_out = encoder_forward(params["encoder"], src_data, src_m, heads)
    return decoder_forward(params["decoder"], trg_data, trg_m,
                           enc_out, src_m, heads)


# ----------------------------- parameter init ------------------------------

def _dense(key, fan_in, fan_out):
    w = 0.02 * jax.random.normal(key, (fan_in, fan_out), jnp.float32)
    return w.astype(jnp.bfloat16), jnp.zeros((fan_out,), jnp.float32)


def _self_attn_params(key, D):
    kqkv, ko = jax.random.split(key)
    w_qkv, b_qkv = _dense(kqkv, D, 3 * D)
    w_o, b_o = _dense(ko, D, D)
    return {"w_qkv": w_qkv, "b_qkv": b_qkv, "w_o": w_o, "b_o": b_o}


def _cross_attn_params(key, D):
    kq, kkv, ko = jax.random.split(key, 3)
    w_q, b_q = _dense(kq, D, D)
    w_kv, b_kv = _dense(kkv, D, 2 * D)
    w_o, b_o = _dense(ko, D, D)
    return {"w_q": w_q, "b_q": b_q, "w_kv": w_kv, "b_kv": b_kv,
            "w_o": w_o, "b_o": b_o}


def _ffn_params(key, D):
    k1, k2 = jax.random.split(key)
    w1, b1 = _dense(k1, D, 4 * D)
    w2, b2 = _dense(k2, 4 * D, D)
    return {"w1": w1, "b1": b1, "w2": w2, "b2": b2}


def _ln(D):
    return jnp.ones((D,), jnp.float32), jnp.zeros((D,), jnp.float32)


def init_params(key, D, heads, n_layer, seq_len):
    k_enc_emb, k_dec_emb, k_enc, k_dec, k_fin = jax.random.split(key, 5)
    pe = sinusoid_pe(seq_len, D)

    def enc_layer_p(k):
        k1, k2 = jax.random.split(k)
        g1, b1 = _ln(D); g2, b2 = _ln(D)
        return {"attn": _self_attn_params(k1, D), "ffn": _ffn_params(k2, D),
                "ln1_g": g1, "ln1_b": b1, "ln2_g": g2, "ln2_b": b2}

    def dec_layer_p(k):
        k1, k2, k3 = jax.random.split(k, 3)
        g1, b1 = _ln(D); g2, b2 = _ln(D); g3, b3 = _ln(D)
        return {"self_attn": _self_attn_params(k1, D),
                "cross_attn": _cross_attn_params(k2, D),
                "ffn": _ffn_params(k3, D),
                "ln1_g": g1, "ln1_b": b1, "ln2_g": g2, "ln2_b": b2,
                "ln3_g": g3, "ln3_b": b3}

    enc_layers = [enc_layer_p(k) for k in jax.random.split(k_enc, n_layer)]
    dec_layers = [dec_layer_p(k) for k in jax.random.split(k_dec, n_layer)]

    # Vocab projection pre-padded once (multiple of the N tile) so the jitted
    # forward never pads the big weight; padded logits are sliced afterwards.
    fin_w = (0.02 * jax.random.normal(k_fin, (D, _VOCAB_PAD), jnp.float32)
             ).astype(jnp.bfloat16)
    fin_b = jnp.zeros((_VOCAB_PAD,), jnp.float32)
    dec_ln_g, dec_ln_b = _ln(D)

    return {
        "encoder": {
            "emb_table": 0.02 * jax.random.normal(k_enc_emb, (VOCAB, D), jnp.float32),
            "pe": pe,
            "layers": enc_layers,
            # (encoder-level LayerNorm exists in __init__ but its output is
            #  unused in the reference forward, so it is not applied)
        },
        "decoder": {
            "emb_table": 0.02 * jax.random.normal(k_dec_emb, (VOCAB, D), jnp.float32),
            "pe": pe,
            "layers": dec_layers,
            "ln_g": dec_ln_g, "ln_b": dec_ln_b,
            "final_w": fin_w, "final_b": fin_b,
        },
    }


# ---------------------------------- main ------------------------------------

if __name__ == "__main__":
    B, S, D, H, L = 2, 8, 32, 4, 2
    key = jax.random.PRNGKey(0)
    k_par, k_src, k_trg = jax.random.split(key, 3)

    params = init_params(k_par, D, H, L, S)

    src_data = jax.random.randint(k_src, (B, S), 0, VOCAB, dtype=jnp.int32)
    trg_data = jax.random.randint(k_trg, (B, S), 0, VOCAB, dtype=jnp.int32)

    # additive masks: 0.0 = attend, NEG_INF = masked
    src_valid = jnp.ones((B, S), dtype=bool).at[1, -2:].set(False)  # pad last 2 of batch 1
    src_mask = jnp.where(src_valid[:, None, None, :], 0.0, NEG_INF).astype(jnp.float32)  # (B,1,1,S)
    tri = jnp.tril(jnp.ones((S, S), dtype=bool))
    trg_tri_mask = jnp.where(tri[None, None, :, :], 0.0, NEG_INF).astype(jnp.float32)    # (1,1,S,S)

    fwd = jax.jit(functools.partial(transformer_forward, heads=H))
    out = fwd(params, src_data, src_mask, trg_data, trg_tri_mask)
    out = jax.block_until_ready(out)

    assert out.shape == (B, S, VOCAB), out.shape
    assert jnp.all(jnp.isfinite(out))
    print("KERNEL_OK")
</pallas_src>

<mosaic_0001>
module attributes {stable_mosaic.version = 11 : i64} {
  func.func @_linear_kernel_1k(%arg0: i32, %arg1: i32, %arg2: i32, %arg3: memref<16x32xbf16, #tpu.memory_space<vmem>>, %arg4: memref<32x96xbf16, #tpu.memory_space<vmem>>, %arg5: memref<1x96xf32, #tpu.memory_space<vmem>>, %arg6: memref<16x96xbf16, #tpu.memory_space<vmem>>) attributes {dimension_semantics = [#tpu.dimension_semantics<parallel>, #tpu.dimension_semantics<parallel>, #tpu.dimension_semantics<arbitrary>], iteration_bounds = array<i64: 1, 1, 1>, scalar_prefetch = 0 : i64, scratch_operands = 0 : i64, tpu.core_type = #tpu.core_type<tc>, window_params = [{transform_indices = @transform_0, window_bounds = array<i64: 16, 32>}, {transform_indices = @transform_1, window_bounds = array<i64: 32, 96>}, {transform_indices = @transform_2, window_bounds = array<i64: 1, 96>}, {transform_indices = @transform_3, window_bounds = array<i64: 16, 96>}]} {
    %c0 = arith.constant 0 : index
    %c0_0 = arith.constant 0 : index
    %0 = vector.load %arg3[%c0, %c0_0] : memref<16x32xbf16, #tpu.memory_space<vmem>>, vector<16x32xbf16>
    %c0_1 = arith.constant 0 : index
    %c0_2 = arith.constant 0 : index
    %1 = vector.load %arg4[%c0_1, %c0_2] : memref<32x96xbf16, #tpu.memory_space<vmem>>, vector<32x96xbf16>
    %cst = arith.constant dense<0.000000e+00> : vector<16x96xf32>
    %2 = tpu.matmul %0, %1, %cst {dimension_numbers = #tpu.dot_dimension_numbers<[1], [0], [0], [1], [0, 0, 1, 1], [], []>} : vector<16x32xbf16>, vector<32x96xbf16>, vector<16x96xf32> -> vector<16x96xf32>
    %c0_3 = arith.constant 0 : index
    %c0_4 = arith.constant 0 : index
    %3 = vector.load %arg5[%c0_3, %c0_4] : memref<1x96xf32, #tpu.memory_space<vmem>>, vector<1x96xf32>
    %4 = vector.broadcast %3 : vector<1x96xf32> to vector<16x96xf32>
    %5 = arith.addf %2, %4 : vector<16x96xf32>
    %6 = arith.truncf %5 : vector<16x96xf32> to vector<16x96xbf16>
    %c0_5 = arith.constant 0 : index
    %c0_6 = arith.constant 0 : index
    %7 = vector.load %arg6[%c0_5, %c0_6] : memref<16x96xbf16, #tpu.memory_space<vmem>>, vector<16x96xbf16>
    tpu.vector_store %arg6[%c0_5, %c0_6], %6 {strides = array<i32>} : memref<16x96xbf16, #tpu.memory_space<vmem>>, vector<16x96xbf16>,
    return
  }
  func.func @transform_0(%arg0: i32, %arg1: i32, %arg2: i32) -> (i32, i32) {
    %c0_i32 = arith.constant 0 : i32
    return %arg0, %arg2 : i32, i32
  }
  func.func @transform_1(%arg0: i32, %arg1: i32, %arg2: i32) -> (i32, i32) {
    %c0_i32 = arith.constant 0 : i32
    return %arg2, %arg1 : i32, i32
  }
  func.func @transform_2(%arg0: i32, %arg1: i32, %arg2: i32) -> (i32, i32) {
    %c0_i32 = arith.constant 0 : i32
    %c0_i32_0 = arith.constant 0 : i32
    return %c0_i32, %arg1 : i32, i32
  }
  func.func @transform_3(%arg0: i32, %arg1: i32, %arg2: i32) -> (i32, i32) {
    %c0_i32 = arith.constant 0 : i32
    return %arg0, %arg1 : i32, i32
  }
}

module attributes {stable_mosaic.version = 11 : i64} {
  func.func @_layernorm_kernel(%arg0: i32, %arg1: memref<16x32xbf16, #tpu.memory_space<vmem>>, %arg2: memref<1x32xf32, #tpu.memory_space<vmem>>, %arg3: memref<1x32xf32, #tpu.memory_space<vmem>>, %arg4: memref<16x32xbf16, #tpu.memory_space<vmem>>) attributes {dimension_semantics = [#tpu.dimension_semantics<parallel>], iteration_bounds = array<i64: 1>, scalar_prefetch = 0 : i64, scratch_operands = 0 : i64, tpu.core_type = #tpu.core_type<tc>, window_params = [{transform_indices = @transform_0, window_bounds = array<i64: 16, 32>}, {pipeline_mode = #tpu.pipeline_mode<synchronous>, transform_indices = @transform_1, window_bounds = array<i64: 1, 32>}, {pipeline_mode = #tpu.pipeline_mode<synchronous>, transform_indices = @transform_2, window_bounds = array<i64: 1, 32>}, {transform_indices = @transform_3, window_bounds = array<i64: 16, 32>}]} {
    %c0 = arith.constant 0 : index
    %c0_0 = arith.constant 0 : index
    %0 = vector.load %arg1[%c0, %c0_0] : memref<16x32xbf16, #tpu.memory_space<vmem>>, vector<16x32xbf16>
    %1 = arith.extf %0 : vector<16x32xbf16> to vector<16x32xf32>
    %cst = arith.constant dense<0.000000e+00> : vector<16xf32>
    %2 = vector.multi_reduction <add>, %1, %cst [1] : vector<16x32xf32> to vector<16xf32>
    %3 = vector.shape_cast %2 : vector<16xf32> to vector<16x1xf32>
    %cst_1 = arith.constant 3.200000e+01 : f32
    %4 = vector.broadcast %cst_1 : f32 to vector<16x1xf32>
    %5 = arith.divf %3, %4 : vector<16x1xf32>
    %6 = vector.broadcast %5 : vector<16x1xf32> to vector<16x32xf32>
    %7 = arith.subf %1, %6 : vector<16x32xf32>
    %8 = arith.mulf %7, %7 : vector<16x32xf32>
    %cst_2 = arith.constant dense<0.000000e+00> : vector<16xf32>
    %9 = vector.multi_reduction <add>, %8, %cst_2 [1] : vector<16x32xf32> to vector<16xf32>
    %10 = vector.shape_cast %9 : vector<16xf32> to vector<16x1xf32>
    %cst_3 = arith.constant 3.200000e+01 : f32
    %11 = vector.broadcast %cst_3 : f32 to vector<16x1xf32>
    %12 = arith.divf %10, %11 : vector<16x1xf32>
    %13 = vector.broadcast %5 : vector<16x1xf32> to vector<16x32xf32>
    %14 = arith.subf %1, %13 : vector<16x32xf32>
    %cst_4 = arith.constant 9.99999997E-7 : f32
    %15 = vector.broadcast %cst_4 : f32 to vector<16x1xf32>
    %16 = arith.addf %12, %15 : vector<16x1xf32>
    %17 = math.rsqrt %16 : vector<16x1xf32>
    %18 = vector.broadcast %17 : vector<16x1xf32> to vector<16x32xf32>
    %19 = arith.mulf %14, %18 : vector<16x32xf32>
    %c0_5 = arith.constant 0 : index
    %c0_6 = arith.constant 0 : index
    %20 = vector.load %arg2[%c0_5, %c0_6] : memref<1x32xf32, #tpu.memory_space<vmem>>, vector<1x32xf32>
    %21 = vector.broadcast %20 : vector<1x32xf32> to vector<16x32xf32>
    %22 = arith.mulf %19, %21 : vector<16x32xf32>
    %c0_7 = arith.constant 0 : index
    %c0_8 = arith.constant 0 : index
    %23 = vector.load %arg3[%c0_7, %c0_8] : memref<1x32xf32, #tpu.memory_space<vmem>>, vector<1x32xf32>
    %24 = vector.broadcast %23 : vector<1x32xf32> to vector<16x32xf32>
    %25 = arith.addf %22, %24 : vector<16x32xf32>
    %26 = arith.truncf %25 : vector<16x32xf32> to vector<16x32xbf16>
    %c0_9 = arith.constant 0 : index
    %c0_10 = arith.constant 0 : index
    %27 = vector.load %arg4[%c0_9, %c0_10] : memref<16x32xbf16, #tpu.memory_space<vmem>>, vector<16x32xbf16>
    tpu.vector_store %arg4[%c0_9, %c0_10], %26 {strides = array<i32>} : memref<16x32xbf16, #tpu.memory_space<vmem>>, vector<16x32xbf16>,
    return
  }
  func.func @transform_0(%arg0: i32) -> (i32, i32) {
    %c0_i32 = arith.constant 0 : i32
    %c0_i32_0 = arith.constant 0 : i32
    return %arg0, %c0_i32 : i32, i32
  }
  func.func @transform_1(%arg0: i32) -> (i32, i32) {
    %c0_i32 = arith.constant 0 : i32
    %c0_i32_0 = arith.constant 0 : i32
    %c0_i32_1 = arith.constant 0 : i32
    return %c0_i32, %c0_i32_0 : i32, i32
  }
  func.func @transform_2(%arg0: i32) -> (i32, i32) {
    %c0_i32 = arith.constant 0 : i32
    %c0_i32_0 = arith.constant 0 : i32
    %c0_i32_1 = arith.constant 0 : i32
    return %c0_i32, %c0_i32_0 : i32, i32
  }
  func.func @transform_3(%arg0: i32) -> (i32, i32) {
    %c0_i32 = arith.constant 0 : i32
    %c0_i32_0 = arith.constant 0 : i32
    return %arg0, %c0_i32 : i32, i32
  }
}

module attributes {stable_mosaic.version = 11 : i64} {
  func.func @_layernorm_kernel(%arg0: i32, %arg1: memref<16x32xbf16, #tpu.memory_space<vmem>>, %arg2: memref<16x32xbf16, #tpu.memory_space<vmem>>, %arg3: memref<1x32xf32, #tpu.memory_space<vmem>>, %arg4: memref<1x32xf32, #tpu.memory_space<vmem>>, %arg5: memref<16x32xbf16, #tpu.memory_space<vmem>>) attributes {dimension_semantics = [#tpu.dimension_semantics<parallel>], iteration_bounds = array<i64: 1>, scalar_prefetch = 0 : i64, scratch_operands = 0 : i64, tpu.core_type = #tpu.core_type<tc>, window_params = [{transform_indices = @transform_0, window_bounds = array<i64: 16, 32>}, {transform_indices = @transform_1, window_bounds = array<i64: 16, 32>}, {pipeline_mode = #tpu.pipeline_mode<synchronous>, transform_indices = @transform_2, window_bounds = array<i64: 1, 32>}, {pipeline_mode = #tpu.pipeline_mode<synchronous>, transform_indices = @transform_3, window_bounds = array<i64: 1, 32>}, {transform_indices = @transform_4, window_bounds = array<i64: 16, 32>}]} {
    %c0 = arith.constant 0 : index
    %c0_0 = arith.constant 0 : index
    %0 = vector.load %arg1[%c0, %c0_0] : memref<16x32xbf16, #tpu.memory_space<vmem>>, vector<16x32xbf16>
    %1 = arith.extf %0 : vector<16x32xbf16> to vector<16x32xf32>
    %c0_1 = arith.constant 0 : index
    %c0_2 = arith.constant 0 : index
    %2 = vector.load %arg2[%c0_1, %c0_2] : memref<16x32xbf16, #tpu.memory_space<vmem>>, vector<16x32xbf16>
    %3 = arith.extf %2 : vector<16x32xbf16> to vector<16x32xf32>
    %4 = arith.addf %1, %3 : vector<16x32xf32>
    %cst = arith.constant dense<0.000000e+00> : vector<16xf32>
    %5 = vector.multi_reduction <add>, %4, %cst [1] : vector<16x32xf32> to vector<16xf32>
    %6 = vector.shape_cast %5 : vector<16xf32> to vector<16x1xf32>
    %cst_3 = arith.constant 3.200000e+01 : f32
    %7 = vector.broadcast %cst_3 : f32 to vector<16x1xf32>
    %8 = arith.divf %6, %7 : vector<16x1xf32>
    %9 = vector.broadcast %8 : vector<16x1xf32> to vector<16x32xf32>
    %10 = arith.subf %4, %9 : vector<16x32xf32>
    %11 = arith.mulf %10, %10 : vector<16x32xf32>
    %cst_4 = arith.constant dense<0.000000e+00> : vector<16xf32>
    %12 = vector.multi_reduction <add>, %11, %cst_4 [1] : vector<16x32xf32> to vector<16xf32>
    %13 = vector.shape_cast %12 : vector<16xf32> to vector<16x1xf32>
    %cst_5 = arith.constant 3.200000e+01 : f32
    %14 = vector.broadcast %cst_5 : f32 to vector<16x1xf32>
    %15 = arith.divf %13, %14 : vector<16x1xf32>
    %16 = vector.broadcast %8 : vector<16x1xf32> to vector<16x32xf32>
    %17 = arith.subf %4, %16 : vector<16x32xf32>
    %cst_6 = arith.constant 9.99999974E-6 : f32
    %18 = vector.broadcast %cst_6 : f32 to vector<16x1xf32>
    %19 = arith.addf %15, %18 : vector<16x1xf32>
    %20 = math.rsqrt %19 : vector<16x1xf32>
    %21 = vector.broadcast %20 : vector<16x1xf32> to vector<16x32xf32>
    %22 = arith.mulf %17, %21 : vector<16x32xf32>
    %c0_7 = arith.constant 0 : index
    %c0_8 = arith.constant 0 : index
    %23 = vector.load %arg3[%c0_7, %c0_8] : memref<1x32xf32, #tpu.memory_space<vmem>>, vector<1x32xf32>
    %24 = vector.broadcast %23 : vector<1x32xf32> to vector<16x32xf32>
    %25 = arith.mulf %22, %24 : vector<16x32xf32>
    %c0_9 = arith.constant 0 : index
    %c0_10 = arith.constant 0 : index
    %26 = vector.load %arg4[%c0_9, %c0_10] : memref<1x32xf32, #tpu.memory_space<vmem>>, vector<1x32xf32>
    %27 = vector.broadcast %26 : vector<1x32xf32> to vector<16x32xf32>
    %28 = arith.addf %25, %27 : vector<16x32xf32>
    %29 = arith.truncf %28 : vector<16x32xf32> to vector<16x32xbf16>
    %c0_11 = arith.constant 0 : index
    %c0_12 = arith.constant 0 : index
    %30 = vector.load %arg5[%c0_11, %c0_12] : memref<16x32xbf16, #tpu.memory_space<vmem>>, vector<16x32xbf16>
    tpu.vector_store %arg5[%c0_11, %c0_12], %29 {strides = array<i32>} : memref<16x32xbf16, #tpu.memory_space<vmem>>, vector<16x32xbf16>,
    return
  }
  func.func @transform_0(%arg0: i32) -> (i32, i32) {
    %c0_i32 = arith.constant 0 : i32
    %c0_i32_0 = arith.constant 0 : i32
    return %arg0, %c0_i32 : i32, i32
  }
  func.func @transform_1(%arg0: i32) -> (i32, i32) {
    %c0_i32 = arith.constant 0 : i32
    %c0_i32_0 = arith.constant 0 : i32
    return %arg0, %c0_i32 : i32, i32
  }
  func.func @transform_2(%arg0: i32) -> (i32, i32) {
    %c0_i32 = arith.constant 0 : i32
    %c0_i32_0 = arith.constant 0 : i32
    %c0_i32_1 = arith.constant 0 : i32
    return %c0_i32, %c0_i32_0 : i32, i32
  }
  func.func @transform_3(%arg0: i32) -> (i32, i32) {
    %c0_i32 = arith.constant 0 : i32
    %c0_i32_0 = arith.constant 0 : i32
    %c0_i32_1 = arith.constant 0 : i32
    return %c0_i32, %c0_i32_0 : i32, i32
  }
  func.func @transform_4(%arg0: i32) -> (i32, i32) {
    %c0_i32 = arith.constant 0 : i32
    %c0_i32_0 = arith.constant 0 : i32
    return %arg0, %c0_i32 : i32, i32
  }
}

module attributes {stable_mosaic.version = 11 : i64} {
  func.func @_attention_kernel(%arg0: i32, %arg1: i32, %arg2: i32, %arg3: i32, %arg4: memref<1x8x32xbf16, #tpu.memory_space<vmem>>, %arg5: memref<1x8x32xbf16, #tpu.memory_space<vmem>>, %arg6: memref<1x8x32xbf16, #tpu.memory_space<vmem>>, %arg7: memref<1x8x8xbf16, #tpu.memory_space<vmem>>, %arg8: memref<1x8x32xbf16, #tpu.memory_space<vmem>>, %arg9: memref<4x8x1xf32, #tpu.memory_space<vmem>>, %arg10: memref<4x8x1xf32, #tpu.memory_space<vmem>>, %arg11: memref<4x8x8xf32, #tpu.memory_space<vmem>>) attributes {dimension_semantics = [#tpu.dimension_semantics<parallel>, #tpu.dimension_semantics<parallel>, #tpu.dimension_semantics<parallel>, #tpu.dimension_semantics<arbitrary>], iteration_bounds = array<i64: 2, 1, 1, 1>, scalar_prefetch = 0 : i64, scratch_operands = 3 : i64, tpu.core_type = #tpu.core_type<tc>, window_params = [{transform_indices = @transform_0, window_bounds = array<i64: 1, 8, 32>}, {transform_indices = @transform_1, window_bounds = array<i64: 1, 8, 32>}, {transform_indices = @transform_2, window_bounds = array<i64: 1, 8, 32>}, {transform_indices = @transform_3, window_bounds = array<i64: 1, 8, 8>}, {transform_indices = @transform_4, window_bounds = array<i64: 1, 8, 32>}]} {
    %c0_i32 = arith.constant 0 : i32
    %0 = arith.cmpi eq, %arg3, %c0_i32 : i32
    %1 = arith.extui %0 : i1 to i32
    %c0_i32_0 = arith.constant 0 : i32
    %2 = arith.cmpi ne, %1, %c0_i32_0 : i32
    scf.if %2 {
      %cst_102 = arith.constant 0xFF800000 : f32
      %179 = vector.broadcast %cst_102 : f32 to vector<4x8x1xf32>
      %c0_103 = arith.constant 0 : index
      %c0_104 = arith.constant 0 : index
      %c0_105 = arith.constant 0 : index
      %180 = vector.load %arg9[%c0_103, %c0_104, %c0_105] : memref<4x8x1xf32, #tpu.memory_space<vmem>>, vector<4x8x1xf32>
      tpu.vector_store %arg9[%c0_103, %c0_104, %c0_105], %179 {strides = array<i32>} : memref<4x8x1xf32, #tpu.memory_space<vmem>>, vector<4x8x1xf32>,
      %cst_106 = arith.constant 0.000000e+00 : f32
      %181 = vector.broadcast %cst_106 : f32 to vector<4x8x1xf32>
      %c0_107 = arith.constant 0 : index
      %c0_108 = arith.constant 0 : index
      %c0_109 = arith.constant 0 : index
      %182 = vector.load %arg10[%c0_107, %c0_108, %c0_109] : memref<4x8x1xf32, #tpu.memory_space<vmem>>, vector<4x8x1xf32>
      tpu.vector_store %arg10[%c0_107, %c0_108, %c0_109], %181 {strides = array<i32>} : memref<4x8x1xf32, #tpu.memory_space<vmem>>, vector<4x8x1xf32>,
      %cst_110 = arith.constant 0.000000e+00 : f32
      %183 = vector.broadcast %cst_110 : f32 to vector<4x8x8xf32>
      %c0_111 = arith.constant 0 : index
      %c0_112 = arith.constant 0 : index
      %c0_113 = arith.constant 0 : index
      %184 = vector.load %arg11[%c0_111, %c0_112, %c0_113] : memref<4x8x8xf32, #tpu.memory_space<vmem>>, vector<4x8x8xf32>
      tpu.vector_store %arg11[%c0_111, %c0_112, %c0_113], %183 {strides = array<i32>} : memref<4x8x8xf32, #tpu.memory_space<vmem>>, vector<4x8x8xf32>,
    } else {
    }
    %c0 = arith.constant 0 : index
    %c0_1 = arith.constant 0 : index
    %c0_2 = arith.constant 0 : index
    %3 = vector.load %arg7[%c0, %c0_1, %c0_2] : memref<1x8x8xbf16, #tpu.memory_space<vmem>>, vector<1x8x8xbf16>
    %4 = vector.shape_cast %3 : vector<1x8x8xbf16> to vector<8x8xbf16>
    %5 = arith.extf %4 : vector<8x8xbf16> to vector<8x8xf32>
    %c0_3 = arith.constant 0 : index
    %c0_4 = arith.constant 0 : index
    %c0_5 = arith.constant 0 : index
    %6 = vector.load %arg4[%c0_3, %c0_4, %c0_5] : memref<1x8x32xbf16, #tpu.memory_space<vmem>>, vector<1x8x32xbf16>
    %7 = vector.shape_cast %6 : vector<1x8x32xbf16> to vector<8x32xbf16>
    %c0_6 = arith.constant 0 : index
    %c0_7 = arith.constant 0 : index
    %c0_8 = arith.constant 0 : index
    %8 = vector.load %arg5[%c0_6, %c0_7, %c0_8] : memref<1x8x32xbf16, #tpu.memory_space<vmem>>, vector<1x8x32xbf16>
    %9 = vector.shape_cast %8 : vector<1x8x32xbf16> to vector<8x32xbf16>
    %c0_9 = arith.constant 0 : index
    %c0_10 = arith.constant 0 : index
    %c0_11 = arith.constant 0 : index
    %10 = vector.load %arg6[%c0_9, %c0_10, %c0_11] : memref<1x8x32xbf16, #tpu.memory_space<vmem>>, vector<1x8x32xbf16>
    %11 = vector.shape_cast %10 : vector<1x8x32xbf16> to vector<8x32xbf16>
    %12 = vector.extract_strided_slice %7 {offsets = [0, 0], sizes = [8, 8], strides = [1, 1]} : vector<8x32xbf16> to vector<8x8xbf16>
    %13 = arith.extf %12 : vector<8x8xbf16> to vector<8x8xf32>
    %cst = arith.constant 0.353553385 : f32
    %14 = vector.broadcast %cst : f32 to vector<8x8xf32>
    %15 = arith.mulf %13, %14 : vector<8x8xf32>
    %16 = arith.truncf %15 : vector<8x8xf32> to vector<8x8xbf16>
    %17 = vector.extract_strided_slice %9 {offsets = [0, 0], sizes = [8, 8], strides = [1, 1]} : vector<8x32xbf16> to vector<8x8xbf16>
    %cst_12 = arith.constant dense<0.000000e+00> : vector<8x8xf32>
    %18 = tpu.matmul %16, %17, %cst_12 {dimension_numbers = #tpu.dot_dimension_numbers<[1], [1], [0], [0], [0, 0, 1, 0], [], []>} : vector<8x8xbf16>, vector<8x8xbf16>, vector<8x8xf32> -> vector<8x8xf32>
    %19 = arith.addf %18, %5 : vector<8x8xf32>
    %c0_13 = arith.constant 0 : index
    %c0_14 = arith.constant 0 : index
    %c0_15 = arith.constant 0 : index
    %20 = vector.load %arg9[%c0_13, %c0_14, %c0_15] : memref<4x8x1xf32, #tpu.memory_space<vmem>>, vector<1x8x1xf32>
    %21 = vector.shape_cast %20 : vector<1x8x1xf32> to vector<8x1xf32>
    %cst_16 = arith.constant dense<0xFF800000> : vector<8xf32>
    %22 = vector.multi_reduction <maximumf>, %19, %cst_16 [1] : vector<8x8xf32> to vector<8xf32>
    %23 = vector.shape_cast %22 : vector<8xf32> to vector<8x1xf32>
    %24 = arith.maximumf %21, %23 : vector<8x1xf32>
    %25 = arith.subf %21, %24 : vector<8x1xf32>
    %26 = math.exp %25 : vector<8x1xf32>
    %27 = vector.broadcast %24 : vector<8x1xf32> to vector<8x8xf32>
    %28 = arith.subf %19, %27 : vector<8x8xf32>
    %29 = math.exp %28 : vector<8x8xf32>
    %c0_17 = arith.constant 0 : index
    %c0_18 = arith.constant 0 : index
    %c0_19 = arith.constant 0 : index
    %30 = vector.load %arg10[%c0_17, %c0_18, %c0_19] : memref<4x8x1xf32, #tpu.memory_space<vmem>>, vector<1x8x1xf32>
    %31 = vector.shape_cast %30 : vector<1x8x1xf32> to vector<8x1xf32>
    %32 = arith.mulf %26, %31 : vector<8x1xf32>
    %cst_20 = arith.constant dense<0.000000e+00> : vector<8xf32>
    %33 = vector.multi_reduction <add>, %29, %cst_20 [1] : vector<8x8xf32> to vector<8xf32>
    %34 = vector.shape_cast %33 : vector<8xf32> to vector<8x1xf32>
    %35 = arith.addf %32, %34 : vector<8x1xf32>
    %c0_21 = arith.constant 0 : index
    %c0_22 = arith.constant 0 : index
    %c0_23 = arith.constant 0 : index
    %36 = vector.load %arg10[%c0_21, %c0_22, %c0_23] : memref<4x8x1xf32, #tpu.memory_space<vmem>>, vector<1x8x1xf32>
    %37 = vector.shape_cast %36 : vector<1x8x1xf32> to vector<8x1xf32>
    %38 = vector.shape_cast %35 : vector<8x1xf32> to vector<1x8x1xf32>
    tpu.vector_store %arg10[%c0_21, %c0_22, %c0_23], %38 {strides = array<i32>} : memref<4x8x1xf32, #tpu.memory_space<vmem>>, vector<1x8x1xf32>,
    %c0_24 = arith.constant 0 : index
    %c0_25 = arith.constant 0 : index
    %c0_26 = arith.constant 0 : index
    %39 = vector.load %arg11[%c0_24, %c0_25, %c0_26] : memref<4x8x8xf32, #tpu.memory_space<vmem>>, vector<1x8x8xf32>
    %40 = vector.shape_cast %39 : vector<1x8x8xf32> to vector<8x8xf32>
    %41 = vector.broadcast %26 : vector<8x1xf32> to vector<8x8xf32>
    %42 = arith.mulf %41, %40 : vector<8x8xf32>
    %43 = arith.truncf %29 : vector<8x8xf32> to vector<8x8xbf16>
    %44 = vector.extract_strided_slice %11 {offsets = [0, 0], sizes = [8, 8], strides = [1, 1]} : vector<8x32xbf16> to vector<8x8xbf16>
    %cst_27 = arith.constant dense<0.000000e+00> : vector<8x8xf32>
    %45 = tpu.matmul %43, %44, %cst_27 {dimension_numbers = #tpu.dot_dimension_numbers<[1], [0], [0], [1], [0, 0, 1, 1], [], []>} : vector<8x8xbf16>, vector<8x8xbf16>, vector<8x8xf32> -> vector<8x8xf32>
    %46 = arith.addf %42, %45 : vector<8x8xf32>
    %c0_28 = arith.constant 0 : index
    %c0_29 = arith.constant 0 : index
    %c0_30 = arith.constant 0 : index
    %47 = vector.load %arg11[%c0_28, %c0_29, %c0_30] : memref<4x8x8xf32, #tpu.memory_space<vmem>>, vector<1x8x8xf32>
    %48 = vector.shape_cast %47 : vector<1x8x8xf32> to vector<8x8xf32>
    %49 = vector.shape_cast %46 : vector<8x8xf32> to vector<1x8x8xf32>
    tpu.vector_store %arg11[%c0_28, %c0_29, %c0_30], %49 {strides = array<i32>} : memref<4x8x8xf32, #tpu.memory_space<vmem>>, vector<1x8x8xf32>,
    %c0_31 = arith.constant 0 : index
    %c0_32 = arith.constant 0 : index
    %c0_33 = arith.constant 0 : index
    %50 = vector.load %arg9[%c0_31, %c0_32, %c0_33] : memref<4x8x1xf32, #tpu.memory_space<vmem>>, vector<1x8x1xf32>
    %51 = vector.shape_cast %50 : vector<1x8x1xf32> to vector<8x1xf32>
    %52 = vector.shape_cast %24 : vector<8x1xf32> to vector<1x8x1xf32>
    tpu.vector_store %arg9[%c0_31, %c0_32, %c0_33], %52 {strides = array<i32>} : memref<4x8x1xf32, #tpu.memory_space<vmem>>, vector<1x8x1xf32>,
    %53 = vector.extract_strided_slice %7 {offsets = [0, 8], sizes = [8, 8], strides = [1, 1]} : vector<8x32xbf16> to vector<8x8xbf16>
    %54 = arith.extf %53 : vector<8x8xbf16> to vector<8x8xf32>
    %cst_34 = arith.constant 0.353553385 : f32
    %55 = vector.broadcast %cst_34 : f32 to vector<8x8xf32>
    %56 = arith.mulf %54, %55 : vector<8x8xf32>
    %57 = arith.truncf %56 : vector<8x8xf32> to vector<8x8xbf16>
    %58 = vector.extract_strided_slice %9 {offsets = [0, 8], sizes = [8, 8], strides = [1, 1]} : vector<8x32xbf16> to vector<8x8xbf16>
    %cst_35 = arith.constant dense<0.000000e+00> : vector<8x8xf32>
    %59 = tpu.matmul %57, %58, %cst_35 {dimension_numbers = #tpu.dot_dimension_numbers<[1], [1], [0], [0], [0, 0, 1, 0], [], []>} : vector<8x8xbf16>, vector<8x8xbf16>, vector<8x8xf32> -> vector<8x8xf32>
    %60 = arith.addf %59, %5 : vector<8x8xf32>
    %c1 = arith.constant 1 : index
    %c0_36 = arith.constant 0 : index
    %c0_37 = arith.constant 0 : index
    %61 = vector.load %arg9[%c1, %c0_36, %c0_37] : memref<4x8x1xf32, #tpu.memory_space<vmem>>, vector<1x8x1xf32>
    %62 = vector.shape_cast %61 : vector<1x8x1xf32> to vector<8x1xf32>
    %cst_38 = arith.constant dense<0xFF800000> : vector<8xf32>
    %63 = vector.multi_reduction <maximumf>, %60, %cst_38 [1] : vector<8x8xf32> to vector<8xf32>
    %64 = vector.shape_cast %63 : vector<8xf32> to vector<8x1xf32>
    %65 = arith.maximumf %62, %64 : vector<8x1xf32>
    %66 = arith.subf %62, %65 : vector<8x1xf32>
    %67 = math.exp %66 : vector<8x1xf32>
    %68 = vector.broadcast %65 : vector<8x1xf32> to vector<8x8xf32>
    %69 = arith.subf %60, %68 : vector<8x8xf32>
    %70 = math.exp %69 : vector<8x8xf32>
    %c1_39 = arith.constant 1 : index
    %c0_40 = arith.constant 0 : index
    %c0_41 = arith.constant 0 : index
    %71 = vector.load %arg10[%c1_39, %c0_40, %c0_41] : memref<4x8x1xf32, #tpu.memory_space<vmem>>, vector<1x8x1xf32>
    %72 = vector.shape_cast %71 : vector<1x8x1xf32> to vector<8x1xf32>
    %73 = arith.mulf %67, %72 : vector<8x1xf32>
    %cst_42 = arith.constant dense<0.000000e+00> : vector<8xf32>
    %74 = vector.multi_reduction <add>, %70, %cst_42 [1] : vector<8x8xf32> to vector<8xf32>
    %75 = vector.shape_cast %74 : vector<8xf32> to vector<8x1xf32>
    %76 = arith.addf %73, %75 : vector<8x1xf32>
    %c1_43 = arith.constant 1 : index
    %c0_44 = arith.constant 0 : index
    %c0_45 = arith.constant 0 : index
    %77 = vector.load %arg10[%c1_43, %c0_44, %c0_45] : memref<4x8x1xf32, #tpu.memory_space<vmem>>, vector<1x8x1xf32>
    %78 = vector.shape_cast %77 : vector<1x8x1xf32> to vector<8x1xf32>
    %79 = vector.shape_cast %76 : vector<8x1xf32> to vector<1x8x1xf32>
    tpu.vector_store %arg10[%c1_43, %c0_44, %c0_45], %79 {strides = array<i32>} : memref<4x8x1xf32, #tpu.memory_space<vmem>>, vector<1x8x1xf32>,
    %c1_46 = arith.constant 1 : index
    %c0_47 = arith.constant 0 : index
    %c0_48 = arith.constant 0 : index
    %80 = vector.load %arg11[%c1_46, %c0_47, %c0_48] : memref<4x8x8xf32, #tpu.memory_space<vmem>>, vector<1x8x8xf32>
    %81 = vector.shape_cast %80 : vector<1x8x8xf32> to vector<8x8xf32>
    %82 = vector.broadcast %67 : vector<8x1xf32> to vector<8x8xf32>
    %83 = arith.mulf %82, %81 : vector<8x8xf32>
    %84 = arith.truncf %70 : vector<8x8xf32> to vector<8x8xbf16>
    %85 = vector.extract_strided_slice %11 {offsets = [0, 8], sizes = [8, 8], strides = [1, 1]} : vector<8x32xbf16> to vector<8x8xbf16>
    %cst_49 = arith.constant dense<0.000000e+00> : vector<8x8xf32>
    %86 = tpu.matmul %84, %85, %cst_49 {dimension_numbers = #tpu.dot_dimension_numbers<[1], [0], [0], [1], [0, 0, 1, 1], [], []>} : vector<8x8xbf16>, vector<8x8xbf16>, vector<8x8xf32> -> vector<8x8xf32>
    %87 = arith.addf %83, %86 : vector<8x8xf32>
    %c1_50 = arith.constant 1 : index
    %c0_51 = arith.constant 0 : index
    %c0_52 = arith.constant 0 : index
    %88 = vector.load %arg11[%c1_50, %c0_51, %c0_52] : memref<4x8x8xf32, #tpu.memory_space<vmem>>, vector<1x8x8xf32>
    %89 = vector.shape_cast %88 : vector<1x8x8xf32> to vector<8x8xf32>
    %90 = vector.shape_cast %87 : vector<8x8xf32> to vector<1x8x8xf32>
    tpu.vector_store %arg11[%c1_50, %c0_51, %c0_52], %90 {strides = array<i32>} : memref<4x8x8xf32, #tpu.memory_space<vmem>>, vector<1x8x8xf32>,
    %c1_53 = arith.constant 1 : index
    %c0_54 = arith.constant 0 : index
    %c0_55 = arith.constant 0 : index
    %91 = vector.load %arg9[%c1_53, %c0_54, %c0_55] : memref<4x8x1xf32, #tpu.memory_space<vmem>>, vector<1x8x1xf32>
    %92 = vector.shape_cast %91 : vector<1x8x1xf32> to vector<8x1xf32>
    %93 = vector.shape_cast %65 : vector<8x1xf32> to vector<1x8x1xf32>
    tpu.vector_store %arg9[%c1_53, %c0_54, %c0_55], %93 {strides = array<i32>} : memref<4x8x1xf32, #tpu.memory_space<vmem>>, vector<1x8x1xf32>,
    %94 = vector.extract_strided_slice %7 {offsets = [0, 16], sizes = [8, 8], strides = [1, 1]} : vector<8x32xbf16> to vector<8x8xbf16>
    %95 = arith.extf %94 : vector<8x8xbf16> to vector<8x8xf32>
    %cst_56 = arith.constant 0.353553385 : f32
    %96 = vector.broadcast %cst_56 : f32 to vector<8x8xf32>
    %97 = arith.mulf %95, %96 : vector<8x8xf32>
    %98 = arith.truncf %97 : vector<8x8xf32> to vector<8x8xbf16>
    %99 = vector.extract_strided_slice %9 {offsets = [0, 16], sizes = [8, 8], strides = [1, 1]} : vector<8x32xbf16> to vector<8x8xbf16>
    %cst_57 = arith.constant dense<0.000000e+00> : vector<8x8xf32>
    %100 = tpu.matmul %98, %99, %cst_57 {dimension_numbers = #tpu.dot_dimension_numbers<[1], [1], [0], [0], [0, 0, 1, 0], [], []>} : vector<8x8xbf16>, vector<8x8xbf16>, vector<8x8xf32> -> vector<8x8xf32>
    %101 = arith.addf %100, %5 : vector<8x8xf32>
    %c2 = arith.constant 2 : index
    %c0_58 = arith.constant 0 : index
    %c0_59 = arith.constant 0 : index
    %102 = vector.load %arg9[%c2, %c0_58, %c0_59] : memref<4x8x1xf32, #tpu.memory_space<vmem>>, vector<1x8x1xf32>
    %103 = vector.shape_cast %102 : vector<1x8x1xf32> to vector<8x1xf32>
    %cst_60 = arith.constant dense<0xFF800000> : vector<8xf32>
    %104 = vector.multi_reduction <maximumf>, %101, %cst_60 [1] : vector<8x8xf32> to vector<8xf32>
    %105 = vector.shape_cast %104 : vector<8xf32> to vector<8x1xf32>
    %106 = arith.maximumf %103, %105 : vector<8x1xf32>
    %107 = arith.subf %103, %106 : vector<8x1xf32>
    %108 = math.exp %107 : vector<8x1xf32>
    %109 = vector.broadcast %106 : vector<8x1xf32> to vector<8x8xf32>
    %110 = arith.subf %101, %109 : vector<8x8xf32>
    %111 = math.exp %110 : vector<8x8xf32>
    %c2_61 = arith.constant 2 : index
    %c0_62 = arith.constant 0 : index
    %c0_63 = arith.constant 0 : index
    %112 = vector.load %arg10[%c2_61, %c0_62, %c0_63] : memref<4x8x1xf32, #tpu.memory_space<vmem>>, vector<1x8x1xf32>
    %113 = vector.shape_cast %112 : vector<1x8x1xf32> to vector<8x1xf32>
    %114 = arith.mulf %108, %113 : vector<8x1xf32>
    %cst_64 = arith.constant dense<0.000000e+00> : vector<8xf32>
    %115 = vector.multi_reduction <add>, %111, %cst_64 [1] : vector<8x8xf32> to vector<8xf32>
    %116 = vector.shape_cast %115 : vector<8xf32> to vector<8x1xf32>
    %117 = arith.addf %114, %116 : vector<8x1xf32>
    %c2_65 = arith.constant 2 : index
    %c0_66 = arith.constant 0 : index
    %c0_67 = arith.constant 0 : index
    %118 = vector.load %arg10[%c2_65, %c0_66, %c0_67] : memref<4x8x1xf32, #tpu.memory_space<vmem>>, vector<1x8x1xf32>
    %119 = vector.shape_cast %118 : vector<1x8x1xf32> to vector<8x1xf32>
    %120 = vector.shape_cast %117 : vector<8x1xf32> to vector<1x8x1xf32>
    tpu.vector_store %arg10[%c2_65, %c0_66, %c0_67], %120 {strides = array<i32>} : memref<4x8x1xf32, #tpu.memory_space<vmem>>, vector<1x8x1xf32>,
    %c2_68 = arith.constant 2 : index
    %c0_69 = arith.constant 0 : index
    %c0_70 = arith.constant 0 : index
    %121 = vector.load %arg11[%c2_68, %c0_69, %c0_70] : memref<4x8x8xf32, #tpu.memory_space<vmem>>, vector<1x8x8xf32>
    %122 = vector.shape_cast %121 : vector<1x8x8xf32> to vector<8x8xf32>
    %123 = vector.broadcast %108 : vector<8x1xf32> to vector<8x8xf32>
    %124 = arith.mulf %123, %122 : vector<8x8xf32>
    %125 = arith.truncf %111 : vector<8x8xf32> to vector<8x8xbf16>
    %126 = vector.extract_strided_slice %11 {offsets = [0, 16], sizes = [8, 8], strides = [1, 1]} : vector<8x32xbf16> to vector<8x8xbf16>
    %cst_71 = arith.constant dense<0.000000e+00> : vector<8x8xf32>
    %127 = tpu.matmul %125, %126, %cst_71 {dimension_numbers = #tpu.dot_dimension_numbers<[1], [0], [0], [1], [0, 0, 1, 1], [], []>} : vector<8x8xbf16>, vector<8x8xbf16>, vector<8x8xf32> -> vector<8x8xf32>
    %128 = arith.addf %124, %127 : vector<8x8xf32>
    %c2_72 = arith.constant 2 : index
    %c0_73 = arith.constant 0 : index
    %c0_74 = arith.constant 0 : index
    %129 = vector.load %arg11[%c2_72, %c0_73, %c0_74] : memref<4x8x8xf32, #tpu.memory_space<vmem>>, vector<1x8x8xf32>
    %130 = vector.shape_cast %129 : vector<1x8x8xf32> to vector<8x8xf32>
    %131 = vector.shape_cast %128 : vector<8x8xf32> to vector<1x8x8xf32>
    tpu.vector_store %arg11[%c2_72, %c0_73, %c0_74], %131 {strides = array<i32>} : memref<4x8x8xf32, #tpu.memory_space<vmem>>, vector<1x8x8xf32>,
    %c2_75 = arith.constant 2 : index
    %c0_76 = arith.constant 0 : index
    %c0_77 = arith.constant 0 : index
    %132 = vector.load %arg9[%c2_75, %c0_76, %c0_77] : memref<4x8x1xf32, #tpu.memory_space<vmem>>, vector<1x8x1xf32>
    %133 = vector.shape_cast %132 : vector<1x8x1xf32> to vector<8x1xf32>
    %134 = vector.shape_cast %106 : vector<8x1xf32> to vector<1x8x1xf32>
    tpu.vector_store %arg9[%c2_75, %c0_76, %c0_77], %134 {strides = array<i32>} : memref<4x8x1xf32, #tpu.memory_space<vmem>>, vector<1x8x1xf32>,
    %135 = vector.extract_strided_slice %7 {offsets = [0, 24], sizes = [8, 8], strides = [1, 1]} : vector<8x32xbf16> to vector<8x8xbf16>
    %136 = arith.extf %135 : vector<8x8xbf16> to vector<8x8xf32>
    %cst_78 = arith.constant 0.353553385 : f32
    %137 = vector.broadcast %cst_78 : f32 to vector<8x8xf32>
    %138 = arith.mulf %136, %137 : vector<8x8xf32>
    %139 = arith.truncf %138 : vector<8x8xf32> to vector<8x8xbf16>
    %140 = vector.extract_strided_slice %9 {offsets = [0, 24], sizes = [8, 8], strides = [1, 1]} : vector<8x32xbf16> to vector<8x8xbf16>
    %cst_79 = arith.constant dense<0.000000e+00> : vector<8x8xf32>
    %141 = tpu.matmul %139, %140, %cst_79 {dimension_numbers = #tpu.dot_dimension_numbers<[1], [1], [0], [0], [0, 0, 1, 0], [], []>} : vector<8x8xbf16>, vector<8x8xbf16>, vector<8x8xf32> -> vector<8x8xf32>
    %142 = arith.addf %141, %5 : vector<8x8xf32>
    %c3 = arith.constant 3 : index
    %c0_80 = arith.constant 0 : index
    %c0_81 = arith.constant 0 : index
    %143 = vector.load %arg9[%c3, %c0_80, %c0_81] : memref<4x8x1xf32, #tpu.memory_space<vmem>>, vector<1x8x1xf32>
    %144 = vector.shape_cast %143 : vector<1x8x1xf32> to vector<8x1xf32>
    %cst_82 = arith.constant dense<0xFF800000> : vector<8xf32>
    %145 = vector.multi_reduction <maximumf>, %142, %cst_82 [1] : vector<8x8xf32> to vector<8xf32>
    %146 = vector.shape_cast %145 : vector<8xf32> to vector<8x1xf32>
    %147 = arith.maximumf %144, %146 : vector<8x1xf32>
    %148 = arith.subf %144, %147 : vector<8x1xf32>
    %149 = math.exp %148 : vector<8x1xf32>
    %150 = vector.broadcast %147 : vector<8x1xf32> to vector<8x8xf32>
    %151 = arith.subf %142, %150 : vector<8x8xf32>
    %152 = math.exp %151 : vector<8x8xf32>
    %c3_83 = arith.constant 3 : index
    %c0_84 = arith.constant 0 : index
    %c0_85 = arith.constant 0 : index
    %153 = vector.load %arg10[%c3_83, %c0_84, %c0_85] : memref<4x8x1xf32, #tpu.memory_space<vmem>>, vector<1x8x1xf32>
    %154 = vector.shape_cast %153 : vector<1x8x1xf32> to vector<8x1xf32>
    %155 = arith.mulf %149, %154 : vector<8x1xf32>
    %cst_86 = arith.constant dense<0.000000e+00> : vector<8xf32>
    %156 = vector.multi_reduction <add>, %152, %cst_86 [1] : vector<8x8xf32> to vector<8xf32>
    %157 = vector.shape_cast %156 : vector<8xf32> to vector<8x1xf32>
    %158 = arith.addf %155, %157 : vector<8x1xf32>
    %c3_87 = arith.constant 3 : index
    %c0_88 = arith.constant 0 : index
    %c0_89 = arith.constant 0 : index
    %159 = vector.load %arg10[%c3_87, %c0_88, %c0_89] : memref<4x8x1xf32, #tpu.memory_space<vmem>>, vector<1x8x1xf32>
    %160 = vector.shape_cast %159 : vector<1x8x1xf32> to vector<8x1xf32>
    %161 = vector.shape_cast %158 : vector<8x1xf32> to vector<1x8x1xf32>
    tpu.vector_store %arg10[%c3_87, %c0_88, %c0_89], %161 {strides = array<i32>} : memref<4x8x1xf32, #tpu.memory_space<vmem>>, vector<1x8x1xf32>,
    %c3_90 = arith.constant 3 : index
    %c0_91 = arith.constant 0 : index
    %c0_92 = arith.constant 0 : index
    %162 = vector.load %arg11[%c3_90, %c0_91, %c0_92] : memref<4x8x8xf32, #tpu.memory_space<vmem>>, vector<1x8x8xf32>
    %163 = vector.shape_cast %162 : vector<1x8x8xf32> to vector<8x8xf32>
    %164 = vector.broadcast %149 : vector<8x1xf32> to vector<8x8xf32>
    %165 = arith.mulf %164, %163 : vector<8x8xf32>
    %166 = arith.truncf %152 : vector<8x8xf32> to vector<8x8xbf16>
    %167 = vector.extract_strided_slice %11 {offsets = [0, 24], sizes = [8, 8], strides = [1, 1]} : vector<8x32xbf16> to vector<8x8xbf16>
    %cst_93 = arith.constant dense<0.000000e+00> : vector<8x8xf32>
    %168 = tpu.matmul %166, %167, %cst_93 {dimension_numbers = #tpu.dot_dimension_numbers<[1], [0], [0], [1], [0, 0, 1, 1], [], []>} : vector<8x8xbf16>, vector<8x8xbf16>, vector<8x8xf32> -> vector<8x8xf32>
    %169 = arith.addf %165, %168 : vector<8x8xf32>
    %c3_94 = arith.constant 3 : index
    %c0_95 = arith.constant 0 : index
    %c0_96 = arith.constant 0 : index
    %170 = vector.load %arg11[%c3_94, %c0_95, %c0_96] : memref<4x8x8xf32, #tpu.memory_space<vmem>>, vector<1x8x8xf32>
    %171 = vector.shape_cast %170 : vector<1x8x8xf32> to vector<8x8xf32>
    %172 = vector.shape_cast %169 : vector<8x8xf32> to vector<1x8x8xf32>
    tpu.vector_store %arg11[%c3_94, %c0_95, %c0_96], %172 {strides = array<i32>} : memref<4x8x8xf32, #tpu.memory_space<vmem>>, vector<1x8x8xf32>,
    %c3_97 = arith.constant 3 : index
    %c0_98 = arith.constant 0 : index
    %c0_99 = arith.constant 0 : index
    %173 = vector.load %arg9[%c3_97, %c0_98, %c0_99] : memref<4x8x1xf32, #tpu.memory_space<vmem>>, vector<1x8x1xf32>
    %174 = vector.shape_cast %173 : vector<1x8x1xf32> to vector<8x1xf32>
    %175 = vector.shape_cast %147 : vector<8x1xf32> to vector<1x8x1xf32>
    tpu.vector_store %arg9[%c3_97, %c0_98, %c0_99], %175 {strides = array<i32>} : memref<4x8x1xf32, #tpu.memory_space<vmem>>, vector<1x8x1xf32>,
    %c0_i32_100 = arith.constant 0 : i32
    %176 = arith.cmpi eq, %arg3, %c0_i32_100 : i32
    %177 = arith.extui %176 : i1 to i32
    %c0_i32_101 = arith.constant 0 : i32
    %178 = arith.cmpi ne, %177, %c0_i32_101 : i32
    scf.if %178 {
      %c0_102 = arith.constant 0 : index
      %c0_103 = arith.constant 0 : index
      %c0_104 = arith.constant 0 : index
      %179 = vector.load %arg11[%c0_102, %c0_103, %c0_104] : memref<4x8x8xf32, #tpu.memory_space<vmem>>, vector<1x8x8xf32>
      %180 = vector.shape_cast %179 : vector<1x8x8xf32> to vector<8x8xf32>
      %c0_105 = arith.constant 0 : index
      %c0_106 = arith.constant 0 : index
      %c0_107 = arith.constant 0 : index
      %181 = vector.load %arg10[%c0_105, %c0_106, %c0_107] : memref<4x8x1xf32, #tpu.memory_space<vmem>>, vector<1x8x1xf32>
      %182 = vector.shape_cast %181 : vector<1x8x1xf32> to vector<8x1xf32>
      %183 = tpu.reciprocal %182 {approx = true} : vector<8x1xf32> -> vector<8x1xf32>
      %184 = vector.broadcast %183 : vector<8x1xf32> to vector<8x8xf32>
      %185 = arith.mulf %180, %184 : vector<8x8xf32>
      %c1_108 = arith.constant 1 : index
      %c0_109 = arith.constant 0 : index
      %c0_110 = arith.constant 0 : index
      %186 = vector.load %arg11[%c1_108, %c0_109, %c0_110] : memref<4x8x8xf32, #tpu.memory_space<vmem>>, vector<1x8x8xf32>
      %187 = vector.shape_cast %186 : vector<1x8x8xf32> to vector<8x8xf32>
      %c1_111 = arith.constant 1 : index
      %c0_112 = arith.constant 0 : index
      %c0_113 = arith.constant 0 : index
      %188 = vector.load %arg10[%c1_111, %c0_112, %c0_113] : memref<4x8x1xf32, #tpu.memory_space<vmem>>, vector<1x8x1xf32>
      %189 = vector.shape_cast %188 : vector<1x8x1xf32> to vector<8x1xf32>
      %190 = tpu.reciprocal %189 {approx = true} : vector<8x1xf32> -> vector<8x1xf32>
      %191 = vector.broadcast %190 : vector<8x1xf32> to vector<8x8xf32>
      %192 = arith.mulf %187, %191 : vector<8x8xf32>
      %c2_114 = arith.constant 2 : index
      %c0_115 = arith.constant 0 : index
      %c0_116 = arith.constant 0 : index
      %193 = vector.load %arg11[%c2_114, %c0_115, %c0_116] : memref<4x8x8xf32, #tpu.memory_space<vmem>>, vector<1x8x8xf32>
      %194 = vector.shape_cast %193 : vector<1x8x8xf32> to vector<8x8xf32>
      %c2_117 = arith.constant 2 : index
      %c0_118 = arith.constant 0 : index
      %c0_119 = arith.constant 0 : index
      %195 = vector.load %arg10[%c2_117, %c0_118, %c0_119] : memref<4x8x1xf32, #tpu.memory_space<vmem>>, vector<1x8x1xf32>
      %196 = vector.shape_cast %195 : vector<1x8x1xf32> to vector<8x1xf32>
      %197 = tpu.reciprocal %196 {approx = true} : vector<8x1xf32> -> vector<8x1xf32>
      %198 = vector.broadcast %197 : vector<8x1xf32> to vector<8x8xf32>
      %199 = arith.mulf %194, %198 : vector<8x8xf32>
      %c3_120 = arith.constant 3 : index
      %c0_121 = arith.constant 0 : index
      %c0_122 = arith.constant 0 : index
      %200 = vector.load %arg11[%c3_120, %c0_121, %c0_122] : memref<4x8x8xf32, #tpu.memory_space<vmem>>, vector<1x8x8xf32>
      %201 = vector.shape_cast %200 : vector<1x8x8xf32> to vector<8x8xf32>
      %c3_123 = arith.constant 3 : index
      %c0_124 = arith.constant 0 : index
      %c0_125 = arith.constant 0 : index
      %202 = vector.load %arg10[%c3_123, %c0_124, %c0_125] : memref<4x8x1xf32, #tpu.memory_space<vmem>>, vector<1x8x1xf32>
      %203 = vector.shape_cast %202 : vector<1x8x1xf32> to vector<8x1xf32>
      %204 = tpu.reciprocal %203 {approx = true} : vector<8x1xf32> -> vector<8x1xf32>
      %205 = vector.broadcast %204 : vector<8x1xf32> to vector<8x8xf32>
      %206 = arith.mulf %201, %205 : vector<8x8xf32>
      %207 = tpu.concatenate %185, %192, %199, %206 in 1 : vector<8x8xf32>, vector<8x8xf32>, vector<8x8xf32>, vector<8x8xf32> -> vector<8x32xf32>
      %208 = arith.truncf %207 : vector<8x32xf32> to vector<8x32xbf16>
      %c0_126 = arith.constant 0 : index
      %c0_127 = arith.constant 0 : index
      %c0_128 = arith.constant 0 : index
      %209 = vector.load %arg8[%c0_126, %c0_127, %c0_128] : memref<1x8x32xbf16, #tpu.memory_space<vmem>>, vector<1x8x32xbf16>
      %210 = vector.shape_cast %209 : vector<1x8x32xbf16> to vector<8x32xbf16>
      %211 = vector.shape_cast %208 : vector<8x32xbf16> to vector<1x8x32xbf16>
      tpu.vector_store %arg8[%c0_126, %c0_127, %c0_128], %211 {strides = array<i32>} : memref<1x8x32xbf16, #tpu.memory_space<vmem>>, vector<1x8x32xbf16>,
    } else {
    }
    return
  }
  func.func @transform_0(%arg0: i32, %arg1: i32, %arg2: i32, %arg3: i32) -> (i32, i32, i32) {
    %c0_i32 = arith.constant 0 : i32
    %0 = arith.addi %arg1, %c0_i32 : i32
    %c0_i32_0 = arith.constant 0 : i32
    return %arg0, %arg2, %0 : i32, i32, i32
  }
  func.func @transform_1(%arg0: i32, %arg1: i32, %arg2: i32, %arg3: i32) -> (i32, i32, i32) {
    %c0_i32 = arith.constant 0 : i32
    %0 = arith.addi %arg1, %c0_i32 : i32
    %c0_i32_0 = arith.constant 0 : i32
    return %arg0, %arg3, %0 : i32, i32, i32
  }
  func.func @transform_2(%arg0: i32, %arg1: i32, %arg2: i32, %arg3: i32) -> (i32, i32, i32) {
    %c0_i32 = arith.constant 0 : i32
    %0 = arith.addi %arg1, %c0_i32 : i32
    %c0_i32_0 = arith.constant 0 : i32
    return %arg0, %arg3, %0 : i32, i32, i32
  }
  func.func @transform_3(%arg0: i32, %arg1: i32, %arg2: i32, %arg3: i32) -> (i32, i32, i32) {
    %c0_i32 = arith.constant 0 : i32
    %0 = arith.muli %arg0, %c0_i32 : i32
    %c1_i32 = arith.constant 1 : i32
    %1 = arith.muli %arg2, %c1_i32 : i32
    %c0_i32_0 = arith.constant 0 : i32
    return %0, %1, %arg3 : i32, i32, i32
  }
  func.func @transform_4(%arg0: i32, %arg1: i32, %arg2: i32, %arg3: i32) -> (i32, i32, i32) {
    %c0_i32 = arith.constant 0 : i32
    return %arg0, %arg2, %arg1 : i32, i32, i32
  }
}

module attributes {stable_mosaic.version = 11 : i64} {
  func.func @_linear_kernel_1k(%arg0: i32, %arg1: i32, %arg2: i32, %arg3: memref<16x32xbf16, #tpu.memory_space<vmem>>, %arg4: memref<32x32xbf16, #tpu.memory_space<vmem>>, %arg5: memref<1x32xf32, #tpu.memory_space<vmem>>, %arg6: memref<16x32xbf16, #tpu.memory_space<vmem>>) attributes {dimension_semantics = [#tpu.dimension_semantics<parallel>, #tpu.dimension_semantics<parallel>, #tpu.dimension_semantics<arbitrary>], iteration_bounds = array<i64: 1, 1, 1>, scalar_prefetch = 0 : i64, scratch_operands = 0 : i64, tpu.core_type = #tpu.core_type<tc>, window_params = [{transform_indices = @transform_0, window_bounds = array<i64: 16, 32>}, {transform_indices = @transform_1, window_bounds = array<i64: 32, 32>}, {transform_indices = @transform_2, window_bounds = array<i64: 1, 32>}, {transform_indices = @transform_3, window_bounds = array<i64: 16, 32>}]} {
    %c0 = arith.constant 0 : index
    %c0_0 = arith.constant 0 : index
    %0 = vector.load %arg3[%c0, %c0_0] : memref<16x32xbf16, #tpu.memory_space<vmem>>, vector<16x32xbf16>
    %c0_1 = arith.constant 0 : index
    %c0_2 = arith.constant 0 : index
    %1 = vector.load %arg4[%c0_1, %c0_2] : memref<32x32xbf16, #tpu.memory_space<vmem>>, vector<32x32xbf16>
    %cst = arith.constant dense<0.000000e+00> : vector<16x32xf32>
    %2 = tpu.matmul %0, %1, %cst {dimension_numbers = #tpu.dot_dimension_numbers<[1], [0], [0], [1], [0, 0, 1, 1], [], []>} : vector<16x32xbf16>, vector<32x32xbf16>, vector<16x32xf32> -> vector<16x32xf32>
    %c0_3 = arith.constant 0 : index
    %c0_4 = arith.constant 0 : index
    %3 = vector.load %arg5[%c0_3, %c0_4] : memref<1x32xf32, #tpu.memory_space<vmem>>, vector<1x32xf32>
    %4 = vector.broadcast %3 : vector<1x32xf32> to vector<16x32xf32>
    %5 = arith.addf %2, %4 : vector<16x32xf32>
    %6 = arith.truncf %5 : vector<16x32xf32> to vector<16x32xbf16>
    %c0_5 = arith.constant 0 : index
    %c0_6 = arith.constant 0 : index
    %7 = vector.load %arg6[%c0_5, %c0_6] : memref<16x32xbf16, #tpu.memory_space<vmem>>, vector<16x32xbf16>
    tpu.vector_store %arg6[%c0_5, %c0_6], %6 {strides = array<i32>} : memref<16x32xbf16, #tpu.memory_space<vmem>>, vector<16x32xbf16>,
    return
  }
  func.func @transform_0(%arg0: i32, %arg1: i32, %arg2: i32) -> (i32, i32) {
    %c0_i32 = arith.constant 0 : i32
    return %arg0, %arg2 : i32, i32
  }
  func.func @transform_1(%arg0: i32, %arg1: i32, %arg2: i32) -> (i32, i32) {
    %c0_i32 = arith.constant 0 : i32
    return %arg2, %arg1 : i32, i32
  }
  func.func @transform_2(%arg0: i32, %arg1: i32, %arg2: i32) -> (i32, i32) {
    %c0_i32 = arith.constant 0 : i32
    %c0_i32_0 = arith.constant 0 : i32
    return %c0_i32, %arg1 : i32, i32
  }
  func.func @transform_3(%arg0: i32, %arg1: i32, %arg2: i32) -> (i32, i32) {
    %c0_i32 = arith.constant 0 : i32
    return %arg0, %arg1 : i32, i32
  }
}

module attributes {stable_mosaic.version = 11 : i64} {
  func.func @_attention_kernel(%arg0: i32, %arg1: i32, %arg2: i32, %arg3: i32, %arg4: memref<1x8x32xbf16, #tpu.memory_space<vmem>>, %arg5: memref<1x8x32xbf16, #tpu.memory_space<vmem>>, %arg6: memref<1x8x32xbf16, #tpu.memory_space<vmem>>, %arg7: memref<1x1x8xbf16, #tpu.memory_space<vmem>>, %arg8: memref<1x8x32xbf16, #tpu.memory_space<vmem>>, %arg9: memref<4x8x1xf32, #tpu.memory_space<vmem>>, %arg10: memref<4x8x1xf32, #tpu.memory_space<vmem>>, %arg11: memref<4x8x8xf32, #tpu.memory_space<vmem>>) attributes {dimension_semantics = [#tpu.dimension_semantics<parallel>, #tpu.dimension_semantics<parallel>, #tpu.dimension_semantics<parallel>, #tpu.dimension_semantics<arbitrary>], iteration_bounds = array<i64: 2, 1, 1, 1>, scalar_prefetch = 0 : i64, scratch_operands = 3 : i64, tpu.core_type = #tpu.core_type<tc>, window_params = [{transform_indices = @transform_0, window_bounds = array<i64: 1, 8, 32>}, {transform_indices = @transform_1, window_bounds = array<i64: 1, 8, 32>}, {transform_indices = @transform_2, window_bounds = array<i64: 1, 8, 32>}, {transform_indices = @transform_3, window_bounds = array<i64: 1, 1, 8>}, {transform_indices = @transform_4, window_bounds = array<i64: 1, 8, 32>}]} {
    %c0_i32 = arith.constant 0 : i32
    %0 = arith.cmpi eq, %arg3, %c0_i32 : i32
    %1 = arith.extui %0 : i1 to i32
    %c0_i32_0 = arith.constant 0 : i32
    %2 = arith.cmpi ne, %1, %c0_i32_0 : i32
    scf.if %2 {
      %cst_102 = arith.constant 0xFF800000 : f32
      %183 = vector.broadcast %cst_102 : f32 to vector<4x8x1xf32>
      %c0_103 = arith.constant 0 : index
      %c0_104 = arith.constant 0 : index
      %c0_105 = arith.constant 0 : index
      %184 = vector.load %arg9[%c0_103, %c0_104, %c0_105] : memref<4x8x1xf32, #tpu.memory_space<vmem>>, vector<4x8x1xf32>
      tpu.vector_store %arg9[%c0_103, %c0_104, %c0_105], %183 {strides = array<i32>} : memref<4x8x1xf32, #tpu.memory_space<vmem>>, vector<4x8x1xf32>,
      %cst_106 = arith.constant 0.000000e+00 : f32
      %185 = vector.broadcast %cst_106 : f32 to vector<4x8x1xf32>
      %c0_107 = arith.constant 0 : index
      %c0_108 = arith.constant 0 : index
      %c0_109 = arith.constant 0 : index
      %186 = vector.load %arg10[%c0_107, %c0_108, %c0_109] : memref<4x8x1xf32, #tpu.memory_space<vmem>>, vector<4x8x1xf32>
      tpu.vector_store %arg10[%c0_107, %c0_108, %c0_109], %185 {strides = array<i32>} : memref<4x8x1xf32, #tpu.memory_space<vmem>>, vector<4x8x1xf32>,
      %cst_110 = arith.constant 0.000000e+00 : f32
      %187 = vector.broadcast %cst_110 : f32 to vector<4x8x8xf32>
      %c0_111 = arith.constant 0 : index
      %c0_112 = arith.constant 0 : index
      %c0_113 = arith.constant 0 : index
      %188 = vector.load %arg11[%c0_111, %c0_112, %c0_113] : memref<4x8x8xf32, #tpu.memory_space<vmem>>, vector<4x8x8xf32>
      tpu.vector_store %arg11[%c0_111, %c0_112, %c0_113], %187 {strides = array<i32>} : memref<4x8x8xf32, #tpu.memory_space<vmem>>, vector<4x8x8xf32>,
    } else {
    }
    %c0 = arith.constant 0 : index
    %c0_1 = arith.constant 0 : index
    %c0_2 = arith.constant 0 : index
    %3 = vector.load %arg7[%c0, %c0_1, %c0_2] : memref<1x1x8xbf16, #tpu.memory_space<vmem>>, vector<1x1x8xbf16>
    %4 = vector.shape_cast %3 : vector<1x1x8xbf16> to vector<1x8xbf16>
    %5 = arith.extf %4 : vector<1x8xbf16> to vector<1x8xf32>
    %c0_3 = arith.constant 0 : index
    %c0_4 = arith.constant 0 : index
    %c0_5 = arith.constant 0 : index
    %6 = vector.load %arg4[%c0_3, %c0_4, %c0_5] : memref<1x8x32xbf16, #tpu.memory_space<vmem>>, vector<1x8x32xbf16>
    %7 = vector.shape_cast %6 : vector<1x8x32xbf16> to vector<8x32xbf16>
    %c0_6 = arith.constant 0 : index
    %c0_7 = arith.constant 0 : index
    %c0_8 = arith.constant 0 : index
    %8 = vector.load %arg5[%c0_6, %c0_7, %c0_8] : memref<1x8x32xbf16, #tpu.memory_space<vmem>>, vector<1x8x32xbf16>
    %9 = vector.shape_cast %8 : vector<1x8x32xbf16> to vector<8x32xbf16>
    %c0_9 = arith.constant 0 : index
    %c0_10 = arith.constant 0 : index
    %c0_11 = arith.constant 0 : index
    %10 = vector.load %arg6[%c0_9, %c0_10, %c0_11] : memref<1x8x32xbf16, #tpu.memory_space<vmem>>, vector<1x8x32xbf16>
    %11 = vector.shape_cast %10 : vector<1x8x32xbf16> to vector<8x32xbf16>
    %12 = vector.extract_strided_slice %7 {offsets = [0, 0], sizes = [8, 8], strides = [1, 1]} : vector<8x32xbf16> to vector<8x8xbf16>
    %13 = arith.extf %12 : vector<8x8xbf16> to vector<8x8xf32>
    %cst = arith.constant 0.353553385 : f32
    %14 = vector.broadcast %cst : f32 to vector<8x8xf32>
    %15 = arith.mulf %13, %14 : vector<8x8xf32>
    %16 = arith.truncf %15 : vector<8x8xf32> to vector<8x8xbf16>
    %17 = vector.extract_strided_slice %9 {offsets = [0, 0], sizes = [8, 8], strides = [1, 1]} : vector<8x32xbf16> to vector<8x8xbf16>
    %cst_12 = arith.constant dense<0.000000e+00> : vector<8x8xf32>
    %18 = tpu.matmul %16, %17, %cst_12 {dimension_numbers = #tpu.dot_dimension_numbers<[1], [1], [0], [0], [0, 0, 1, 0], [], []>} : vector<8x8xbf16>, vector<8x8xbf16>, vector<8x8xf32> -> vector<8x8xf32>
    %19 = vector.broadcast %5 : vector<1x8xf32> to vector<8x8xf32>
    %20 = arith.addf %18, %19 : vector<8x8xf32>
    %c0_13 = arith.constant 0 : index
    %c0_14 = arith.constant 0 : index
    %c0_15 = arith.constant 0 : index
    %21 = vector.load %arg9[%c0_13, %c0_14, %c0_15] : memref<4x8x1xf32, #tpu.memory_space<vmem>>, vector<1x8x1xf32>
    %22 = vector.shape_cast %21 : vector<1x8x1xf32> to vector<8x1xf32>
    %cst_16 = arith.constant dense<0xFF800000> : vector<8xf32>
    %23 = vector.multi_reduction <maximumf>, %20, %cst_16 [1] : vector<8x8xf32> to vector<8xf32>
    %24 = vector.shape_cast %23 : vector<8xf32> to vector<8x1xf32>
    %25 = arith.maximumf %22, %24 : vector<8x1xf32>
    %26 = arith.subf %22, %25 : vector<8x1xf32>
    %27 = math.exp %26 : vector<8x1xf32>
    %28 = vector.broadcast %25 : vector<8x1xf32> to vector<8x8xf32>
    %29 = arith.subf %20, %28 : vector<8x8xf32>
    %30 = math.exp %29 : vector<8x8xf32>
    %c0_17 = arith.constant 0 : index
    %c0_18 = arith.constant 0 : index
    %c0_19 = arith.constant 0 : index
    %31 = vector.load %arg10[%c0_17, %c0_18, %c0_19] : memref<4x8x1xf32, #tpu.memory_space<vmem>>, vector<1x8x1xf32>
    %32 = vector.shape_cast %31 : vector<1x8x1xf32> to vector<8x1xf32>
    %33 = arith.mulf %27, %32 : vector<8x1xf32>
    %cst_20 = arith.constant dense<0.000000e+00> : vector<8xf32>
    %34 = vector.multi_reduction <add>, %30, %cst_20 [1] : vector<8x8xf32> to vector<8xf32>
    %35 = vector.shape_cast %34 : vector<8xf32> to vector<8x1xf32>
    %36 = arith.addf %33, %35 : vector<8x1xf32>
    %c0_21 = arith.constant 0 : index
    %c0_22 = arith.constant 0 : index
    %c0_23 = arith.constant 0 : index
    %37 = vector.load %arg10[%c0_21, %c0_22, %c0_23] : memref<4x8x1xf32, #tpu.memory_space<vmem>>, vector<1x8x1xf32>
    %38 = vector.shape_cast %37 : vector<1x8x1xf32> to vector<8x1xf32>
    %39 = vector.shape_cast %36 : vector<8x1xf32> to vector<1x8x1xf32>
    tpu.vector_store %arg10[%c0_21, %c0_22, %c0_23], %39 {strides = array<i32>} : memref<4x8x1xf32, #tpu.memory_space<vmem>>, vector<1x8x1xf32>,
    %c0_24 = arith.constant 0 : index
    %c0_25 = arith.constant 0 : index
    %c0_26 = arith.constant 0 : index
    %40 = vector.load %arg11[%c0_24, %c0_25, %c0_26] : memref<4x8x8xf32, #tpu.memory_space<vmem>>, vector<1x8x8xf32>
    %41 = vector.shape_cast %40 : vector<1x8x8xf32> to vector<8x8xf32>
    %42 = vector.broadcast %27 : vector<8x1xf32> to vector<8x8xf32>
    %43 = arith.mulf %42, %41 : vector<8x8xf32>
    %44 = arith.truncf %30 : vector<8x8xf32> to vector<8x8xbf16>
    %45 = vector.extract_strided_slice %11 {offsets = [0, 0], sizes = [8, 8], strides = [1, 1]} : vector<8x32xbf16> to vector<8x8xbf16>
    %cst_27 = arith.constant dense<0.000000e+00> : vector<8x8xf32>
    %46 = tpu.matmul %44, %45, %cst_27 {dimension_numbers = #tpu.dot_dimension_numbers<[1], [0], [0], [1], [0, 0, 1, 1], [], []>} : vector<8x8xbf16>, vector<8x8xbf16>, vector<8x8xf32> -> vector<8x8xf32>
    %47 = arith.addf %43, %46 : vector<8x8xf32>
    %c0_28 = arith.constant 0 : index
    %c0_29 = arith.constant 0 : index
    %c0_30 = arith.constant 0 : index
    %48 = vector.load %arg11[%c0_28, %c0_29, %c0_30] : memref<4x8x8xf32, #tpu.memory_space<vmem>>, vector<1x8x8xf32>
    %49 = vector.shape_cast %48 : vector<1x8x8xf32> to vector<8x8xf32>
    %50 = vector.shape_cast %47 : vector<8x8xf32> to vector<1x8x8xf32>
    tpu.vector_store %arg11[%c0_28, %c0_29, %c0_30], %50 {strides = array<i32>} : memref<4x8x8xf32, #tpu.memory_space<vmem>>, vector<1x8x8xf32>,
    %c0_31 = arith.constant 0 : index
    %c0_32 = arith.constant 0 : index
    %c0_33 = arith.constant 0 : index
    %51 = vector.load %arg9[%c0_31, %c0_32, %c0_33] : memref<4x8x1xf32, #tpu.memory_space<vmem>>, vector<1x8x1xf32>
    %52 = vector.shape_cast %51 : vector<1x8x1xf32> to vector<8x1xf32>
    %53 = vector.shape_cast %25 : vector<8x1xf32> to vector<1x8x1xf32>
    tpu.vector_store %arg9[%c0_31, %c0_32, %c0_33], %53 {strides = array<i32>} : memref<4x8x1xf32, #tpu.memory_space<vmem>>, vector<1x8x1xf32>,
    %54 = vector.extract_strided_slice %7 {offsets = [0, 8], sizes = [8, 8], strides = [1, 1]} : vector<8x32xbf16> to vector<8x8xbf16>
    %55 = arith.extf %54 : vector<8x8xbf16> to vector<8x8xf32>
    %cst_34 = arith.constant 0.353553385 : f32
    %56 = vector.broadcast %cst_34 : f32 to vector<8x8xf32>
    %57 = arith.mulf %55, %56 : vector<8x8xf32>
    %58 = arith.truncf %57 : vector<8x8xf32> to vector<8x8xbf16>
    %59 = vector.extract_strided_slice %9 {offsets = [0, 8], sizes = [8, 8], strides = [1, 1]} : vector<8x32xbf16> to vector<8x8xbf16>
    %cst_35 = arith.constant dense<0.000000e+00> : vector<8x8xf32>
    %60 = tpu.matmul %58, %59, %cst_35 {dimension_numbers = #tpu.dot_dimension_numbers<[1], [1], [0], [0], [0, 0, 1, 0], [], []>} : vector<8x8xbf16>, vector<8x8xbf16>, vector<8x8xf32> -> vector<8x8xf32>
    %61 = vector.broadcast %5 : vector<1x8xf32> to vector<8x8xf32>
    %62 = arith.addf %60, %61 : vector<8x8xf32>
    %c1 = arith.constant 1 : index
    %c0_36 = arith.constant 0 : index
    %c0_37 = arith.constant 0 : index
    %63 = vector.load %arg9[%c1, %c0_36, %c0_37] : memref<4x8x1xf32, #tpu.memory_space<vmem>>, vector<1x8x1xf32>
    %64 = vector.shape_cast %63 : vector<1x8x1xf32> to vector<8x1xf32>
    %cst_38 = arith.constant dense<0xFF800000> : vector<8xf32>
    %65 = vector.multi_reduction <maximumf>, %62, %cst_38 [1] : vector<8x8xf32> to vector<8xf32>
    %66 = vector.shape_cast %65 : vector<8xf32> to vector<8x1xf32>
    %67 = arith.maximumf %64, %66 : vector<8x1xf32>
    %68 = arith.subf %64, %67 : vector<8x1xf32>
    %69 = math.exp %68 : vector<8x1xf32>
    %70 = vector.broadcast %67 : vector<8x1xf32> to vector<8x8xf32>
    %71 = arith.subf %62, %70 : vector<8x8xf32>
    %72 = math.exp %71 : vector<8x8xf32>
    %c1_39 = arith.constant 1 : index
    %c0_40 = arith.constant 0 : index
    %c0_41 = arith.constant 0 : index
    %73 = vector.load %arg10[%c1_39, %c0_40, %c0_41] : memref<4x8x1xf32, #tpu.memory_space<vmem>>, vector<1x8x1xf32>
    %74 = vector.shape_cast %73 : vector<1x8x1xf32> to vector<8x1xf32>
    %75 = arith.mulf %69, %74 : vector<8x1xf32>
    %cst_42 = arith.constant dense<0.000000e+00> : vector<8xf32>
    %76 = vector.multi_reduction <add>, %72, %cst_42 [1] : vector<8x8xf32> to vector<8xf32>
    %77 = vector.shape_cast %76 : vector<8xf32> to vector<8x1xf32>
    %78 = arith.addf %75, %77 : vector<8x1xf32>
    %c1_43 = arith.constant 1 : index
    %c0_44 = arith.constant 0 : index
    %c0_45 = arith.constant 0 : index
    %79 = vector.load %arg10[%c1_43, %c0_44, %c0_45] : memref<4x8x1xf32, #tpu.memory_space<vmem>>, vector<1x8x1xf32>
    %80 = vector.shape_cast %79 : vector<1x8x1xf32> to vector<8x1xf32>
    %81 = vector.shape_cast %78 : vector<8x1xf32> to vector<1x8x1xf32>
    tpu.vector_store %arg10[%c1_43, %c0_44, %c0_45], %81 {strides = array<i32>} : memref<4x8x1xf32, #tpu.memory_space<vmem>>, vector<1x8x1xf32>,
    %c1_46 = arith.constant 1 : index
    %c0_47 = arith.constant 0 : index
    %c0_48 = arith.constant 0 : index
    %82 = vector.load %arg11[%c1_46, %c0_47, %c0_48] : memref<4x8x8xf32, #tpu.memory_space<vmem>>, vector<1x8x8xf32>
    %83 = vector.shape_cast %82 : vector<1x8x8xf32> to vector<8x8xf32>
    %84 = vector.broadcast %69 : vector<8x1xf32> to vector<8x8xf32>
    %85 = arith.mulf %84, %83 : vector<8x8xf32>
    %86 = arith.truncf %72 : vector<8x8xf32> to vector<8x8xbf16>
    %87 = vector.extract_strided_slice %11 {offsets = [0, 8], sizes = [8, 8], strides = [1, 1]} : vector<8x32xbf16> to vector<8x8xbf16>
    %cst_49 = arith.constant dense<0.000000e+00> : vector<8x8xf32>
    %88 = tpu.matmul %86, %87, %cst_49 {dimension_numbers = #tpu.dot_dimension_numbers<[1], [0], [0], [1], [0, 0, 1, 1], [], []>} : vector<8x8xbf16>, vector<8x8xbf16>, vector<8x8xf32> -> vector<8x8xf32>
    %89 = arith.addf %85, %88 : vector<8x8xf32>
    %c1_50 = arith.constant 1 : index
    %c0_51 = arith.constant 0 : index
    %c0_52 = arith.constant 0 : index
    %90 = vector.load %arg11[%c1_50, %c0_51, %c0_52] : memref<4x8x8xf32, #tpu.memory_space<vmem>>, vector<1x8x8xf32>
    %91 = vector.shape_cast %90 : vector<1x8x8xf32> to vector<8x8xf32>
    %92 = vector.shape_cast %89 : vector<8x8xf32> to vector<1x8x8xf32>
    tpu.vector_store %arg11[%c1_50, %c0_51, %c0_52], %92 {strides = array<i32>} : memref<4x8x8xf32, #tpu.memory_space<vmem>>, vector<1x8x8xf32>,
    %c1_53 = arith.constant 1 : index
    %c0_54 = arith.constant 0 : index
    %c0_55 = arith.constant 0 : index
    %93 = vector.load %arg9[%c1_53, %c0_54, %c0_55] : memref<4x8x1xf32, #tpu.memory_space<vmem>>, vector<1x8x1xf32>
    %94 = vector.shape_cast %93 : vector<1x8x1xf32> to vector<8x1xf32>
    %95 = vector.shape_cast %67 : vector<8x1xf32> to vector<1x8x1xf32>
    tpu.vector_store %arg9[%c1_53, %c0_54, %c0_55], %95 {strides = array<i32>} : memref<4x8x1xf32, #tpu.memory_space<vmem>>, vector<1x8x1xf32>,
    %96 = vector.extract_strided_slice %7 {offsets = [0, 16], sizes = [8, 8], strides = [1, 1]} : vector<8x32xbf16> to vector<8x8xbf16>
    %97 = arith.extf %96 : vector<8x8xbf16> to vector<8x8xf32>
    %cst_56 = arith.constant 0.353553385 : f32
    %98 = vector.broadcast %cst_56 : f32 to vector<8x8xf32>
    %99 = arith.mulf %97, %98 : vector<8x8xf32>
    %100 = arith.truncf %99 : vector<8x8xf32> to vector<8x8xbf16>
    %101 = vector.extract_strided_slice %9 {offsets = [0, 16], sizes = [8, 8], strides = [1, 1]} : vector<8x32xbf16> to vector<8x8xbf16>
    %cst_57 = arith.constant dense<0.000000e+00> : vector<8x8xf32>
    %102 = tpu.matmul %100, %101, %cst_57 {dimension_numbers = #tpu.dot_dimension_numbers<[1], [1], [0], [0], [0, 0, 1, 0], [], []>} : vector<8x8xbf16>, vector<8x8xbf16>, vector<8x8xf32> -> vector<8x8xf32>
    %103 = vector.broadcast %5 : vector<1x8xf32> to vector<8x8xf32>
    %104 = arith.addf %102, %103 : vector<8x8xf32>
    %c2 = arith.constant 2 : index
    %c0_58 = arith.constant 0 : index
    %c0_59 = arith.constant 0 : index
    %105 = vector.load %arg9[%c2, %c0_58, %c0_59] : memref<4x8x1xf32, #tpu.memory_space<vmem>>, vector<1x8x1xf32>
    %106 = vector.shape_cast %105 : vector<1x8x1xf32> to vector<8x1xf32>
    %cst_60 = arith.constant dense<0xFF800000> : vector<8xf32>
    %107 = vector.multi_reduction <maximumf>, %104, %cst_60 [1] : vector<8x8xf32> to vector<8xf32>
    %108 = vector.shape_cast %107 : vector<8xf32> to vector<8x1xf32>
    %109 = arith.maximumf %106, %108 : vector<8x1xf32>
    %110 = arith.subf %106, %109 : vector<8x1xf32>
    %111 = math.exp %110 : vector<8x1xf32>
    %112 = vector.broadcast %109 : vector<8x1xf32> to vector<8x8xf32>
    %113 = arith.subf %104, %112 : vector<8x8xf32>
    %114 = math.exp %113 : vector<8x8xf32>
    %c2_61 = arith.constant 2 : index
    %c0_62 = arith.constant 0 : index
    %c0_63 = arith.constant 0 : index
    %115 = vector.load %arg10[%c2_61, %c0_62, %c0_63] : memref<4x8x1xf32, #tpu.memory_space<vmem>>, vector<1x8x1xf32>
    %116 = vector.shape_cast %115 : vector<1x8x1xf32> to vector<8x1xf32>
    %117 = arith.mulf %111, %116 : vector<8x1xf32>
    %cst_64 = arith.constant dense<0.000000e+00> : vector<8xf32>
    %118 = vector.multi_reduction <add>, %114, %cst_64 [1] : vector<8x8xf32> to vector<8xf32>
    %119 = vector.shape_cast %118 : vector<8xf32> to vector<8x1xf32>
    %120 = arith.addf %117, %119 : vector<8x1xf32>
    %c2_65 = arith.constant 2 : index
    %c0_66 = arith.constant 0 : index
    %c0_67 = arith.constant 0 : index
    %121 = vector.load %arg10[%c2_65, %c0_66, %c0_67] : memref<4x8x1xf32, #tpu.memory_space<vmem>>, vector<1x8x1xf32>
    %122 = vector.shape_cast %121 : vector<1x8x1xf32> to vector<8x1xf32>
    %123 = vector.shape_cast %120 : vector<8x1xf32> to vector<1x8x1xf32>
    tpu.vector_store %arg10[%c2_65, %c0_66, %c0_67], %123 {strides = array<i32>} : memref<4x8x1xf32, #tpu.memory_space<vmem>>, vector<1x8x1xf32>,
    %c2_68 = arith.constant 2 : index
    %c0_69 = arith.constant 0 : index
    %c0_70 = arith.constant 0 : index
    %124 = vector.load %arg11[%c2_68, %c0_69, %c0_70] : memref<4x8x8xf32, #tpu.memory_space<vmem>>, vector<1x8x8xf32>
    %125 = vector.shape_cast %124 : vector<1x8x8xf32> to vector<8x8xf32>
    %126 = vector.broadcast %111 : vector<8x1xf32> to vector<8x8xf32>
    %127 = arith.mulf %126, %125 : vector<8x8xf32>
    %128 = arith.truncf %114 : vector<8x8xf32> to vector<8x8xbf16>
    %129 = vector.extract_strided_slice %11 {offsets = [0, 16], sizes = [8, 8], strides = [1, 1]} : vector<8x32xbf16> to vector<8x8xbf16>
    %cst_71 = arith.constant dense<0.000000e+00> : vector<8x8xf32>
    %130 = tpu.matmul %128, %129, %cst_71 {dimension_numbers = #tpu.dot_dimension_numbers<[1], [0], [0], [1], [0, 0, 1, 1], [], []>} : vector<8x8xbf16>, vector<8x8xbf16>, vector<8x8xf32> -> vector<8x8xf32>
    %131 = arith.addf %127, %130 : vector<8x8xf32>
    %c2_72 = arith.constant 2 : index
    %c0_73 = arith.constant 0 : index
    %c0_74 = arith.constant 0 : index
    %132 = vector.load %arg11[%c2_72, %c0_73, %c0_74] : memref<4x8x8xf32, #tpu.memory_space<vmem>>, vector<1x8x8xf32>
    %133 = vector.shape_cast %132 : vector<1x8x8xf32> to vector<8x8xf32>
    %134 = vector.shape_cast %131 : vector<8x8xf32> to vector<1x8x8xf32>
    tpu.vector_store %arg11[%c2_72, %c0_73, %c0_74], %134 {strides = array<i32>} : memref<4x8x8xf32, #tpu.memory_space<vmem>>, vector<1x8x8xf32>,
    %c2_75 = arith.constant 2 : index
    %c0_76 = arith.constant 0 : index
    %c0_77 = arith.constant 0 : index
    %135 = vector.load %arg9[%c2_75, %c0_76, %c0_77] : memref<4x8x1xf32, #tpu.memory_space<vmem>>, vector<1x8x1xf32>
    %136 = vector.shape_cast %135 : vector<1x8x1xf32> to vector<8x1xf32>
    %137 = vector.shape_cast %109 : vector<8x1xf32> to vector<1x8x1xf32>
    tpu.vector_store %arg9[%c2_75, %c0_76, %c0_77], %137 {strides = array<i32>} : memref<4x8x1xf32, #tpu.memory_space<vmem>>, vector<1x8x1xf32>,
    %138 = vector.extract_strided_slice %7 {offsets = [0, 24], sizes = [8, 8], strides = [1, 1]} : vector<8x32xbf16> to vector<8x8xbf16>
    %139 = arith.extf %138 : vector<8x8xbf16> to vector<8x8xf32>
    %cst_78 = arith.constant 0.353553385 : f32
    %140 = vector.broadcast %cst_78 : f32 to vector<8x8xf32>
    %141 = arith.mulf %139, %140 : vector<8x8xf32>
    %142 = arith.truncf %141 : vector<8x8xf32> to vector<8x8xbf16>
    %143 = vector.extract_strided_slice %9 {offsets = [0, 24], sizes = [8, 8], strides = [1, 1]} : vector<8x32xbf16> to vector<8x8xbf16>
    %cst_79 = arith.constant dense<0.000000e+00> : vector<8x8xf32>
    %144 = tpu.matmul %142, %143, %cst_79 {dimension_numbers = #tpu.dot_dimension_numbers<[1], [1], [0], [0], [0, 0, 1, 0], [], []>} : vector<8x8xbf16>, vector<8x8xbf16>, vector<8x8xf32> -> vector<8x8xf32>
    %145 = vector.broadcast %5 : vector<1x8xf32> to vector<8x8xf32>
    %146 = arith.addf %144, %145 : vector<8x8xf32>
    %c3 = arith.constant 3 : index
    %c0_80 = arith.constant 0 : index
    %c0_81 = arith.constant 0 : index
    %147 = vector.load %arg9[%c3, %c0_80, %c0_81] : memref<4x8x1xf32, #tpu.memory_space<vmem>>, vector<1x8x1xf32>
    %148 = vector.shape_cast %147 : vector<1x8x1xf32> to vector<8x1xf32>
    %cst_82 = arith.constant dense<0xFF800000> : vector<8xf32>
    %149 = vector.multi_reduction <maximumf>, %146, %cst_82 [1] : vector<8x8xf32> to vector<8xf32>
    %150 = vector.shape_cast %149 : vector<8xf32> to vector<8x1xf32>
    %151 = arith.maximumf %148, %150 : vector<8x1xf32>
    %152 = arith.subf %148, %151 : vector<8x1xf32>
    %153 = math.exp %152 : vector<8x1xf32>
    %154 = vector.broadcast %151 : vector<8x1xf32> to vector<8x8xf32>
    %155 = arith.subf %146, %154 : vector<8x8xf32>
    %156 = math.exp %155 : vector<8x8xf32>
    %c3_83 = arith.constant 3 : index
    %c0_84 = arith.constant 0 : index
    %c0_85 = arith.constant 0 : index
    %157 = vector.load %arg10[%c3_83, %c0_84, %c0_85] : memref<4x8x1xf32, #tpu.memory_space<vmem>>, vector<1x8x1xf32>
    %158 = vector.shape_cast %157 : vector<1x8x1xf32> to vector<8x1xf32>
    %159 = arith.mulf %153, %158 : vector<8x1xf32>
    %cst_86 = arith.constant dense<0.000000e+00> : vector<8xf32>
    %160 = vector.multi_reduction <add>, %156, %cst_86 [1] : vector<8x8xf32> to vector<8xf32>
    %161 = vector.shape_cast %160 : vector<8xf32> to vector<8x1xf32>
    %162 = arith.addf %159, %161 : vector<8x1xf32>
    %c3_87 = arith.constant 3 : index
    %c0_88 = arith.constant 0 : index
    %c0_89 = arith.constant 0 : index
    %163 = vector.load %arg10[%c3_87, %c0_88, %c0_89] : memref<4x8x1xf32, #tpu.memory_space<vmem>>, vector<1x8x1xf32>
    %164 = vector.shape_cast %163 : vector<1x8x1xf32> to vector<8x1xf32>
    %165 = vector.shape_cast %162 : vector<8x1xf32> to vector<1x8x1xf32>
    tpu.vector_store %arg10[%c3_87, %c0_88, %c0_89], %165 {strides = array<i32>} : memref<4x8x1xf32, #tpu.memory_space<vmem>>, vector<1x8x1xf32>,
    %c3_90 = arith.constant 3 : index
    %c0_91 = arith.constant 0 : index
    %c0_92 = arith.constant 0 : index
    %166 = vector.load %arg11[%c3_90, %c0_91, %c0_92] : memref<4x8x8xf32, #tpu.memory_space<vmem>>, vector<1x8x8xf32>
    %167 = vector.shape_cast %166 : vector<1x8x8xf32> to vector<8x8xf32>
    %168 = vector.broadcast %153 : vector<8x1xf32> to vector<8x8xf32>
    %169 = arith.mulf %168, %167 : vector<8x8xf32>
    %170 = arith.truncf %156 : vector<8x8xf32> to vector<8x8xbf16>
    %171 = vector.extract_strided_slice %11 {offsets = [0, 24], sizes = [8, 8], strides = [1, 1]} : vector<8x32xbf16> to vector<8x8xbf16>
    %cst_93 = arith.constant dense<0.000000e+00> : vector<8x8xf32>
    %172 = tpu.matmul %170, %171, %cst_93 {dimension_numbers = #tpu.dot_dimension_numbers<[1], [0], [0], [1], [0, 0, 1, 1], [], []>} : vector<8x8xbf16>, vector<8x8xbf16>, vector<8x8xf32> -> vector<8x8xf32>
    %173 = arith.addf %169, %172 : vector<8x8xf32>
    %c3_94 = arith.constant 3 : index
    %c0_95 = arith.constant 0 : index
    %c0_96 = arith.constant 0 : index
    %174 = vector.load %arg11[%c3_94, %c0_95, %c0_96] : memref<4x8x8xf32, #tpu.memory_space<vmem>>, vector<1x8x8xf32>
    %175 = vector.shape_cast %174 : vector<1x8x8xf32> to vector<8x8xf32>
    %176 = vector.shape_cast %173 : vector<8x8xf32> to vector<1x8x8xf32>
    tpu.vector_store %arg11[%c3_94, %c0_95, %c0_96], %176 {strides = array<i32>} : memref<4x8x8xf32, #tpu.memory_space<vmem>>, vector<1x8x8xf32>,
    %c3_97 = arith.constant 3 : index
    %c0_98 = arith.constant 0 : index
    %c0_99 = arith.constant 0 : index
    %177 = vector.load %arg9[%c3_97, %c0_98, %c0_99] : memref<4x8x1xf32, #tpu.memory_space<vmem>>, vector<1x8x1xf32>
    %178 = vector.shape_cast %177 : vector<1x8x1xf32> to vector<8x1xf32>
    %179 = vector.shape_cast %151 : vector<8x1xf32> to vector<1x8x1xf32>
    tpu.vector_store %arg9[%c3_97, %c0_98, %c0_99], %179 {strides = array<i32>} : memref<4x8x1xf32, #tpu.memory_space<vmem>>, vector<1x8x1xf32>,
    %c0_i32_100 = arith.constant 0 : i32
    %180 = arith.cmpi eq, %arg3, %c0_i32_100 : i32
    %181 = arith.extui %180 : i1 to i32
    %c0_i32_101 = arith.constant 0 : i32
    %182 = arith.cmpi ne, %181, %c0_i32_101 : i32
    scf.if %182 {
      %c0_102 = arith.constant 0 : index
      %c0_103 = arith.constant 0 : index
      %c0_104 = arith.constant 0 : index
      %183 = vector.load %arg11[%c0_102, %c0_103, %c0_104] : memref<4x8x8xf32, #tpu.memory_space<vmem>>, vector<1x8x8xf32>
      %184 = vector.shape_cast %183 : vector<1x8x8xf32> to vector<8x8xf32>
      %c0_105 = arith.constant 0 : index
      %c0_106 = arith.constant 0 : index
      %c0_107 = arith.constant 0 : index
      %185 = vector.load %arg10[%c0_105, %c0_106, %c0_107] : memref<4x8x1xf32, #tpu.memory_space<vmem>>, vector<1x8x1xf32>
      %186 = vector.shape_cast %185 : vector<1x8x1xf32> to vector<8x1xf32>
      %187 = tpu.reciprocal %186 {approx = true} : vector<8x1xf32> -> vector<8x1xf32>
      %188 = vector.broadcast %187 : vector<8x1xf32> to vector<8x8xf32>
      %189 = arith.mulf %184, %188 : vector<8x8xf32>
      %c1_108 = arith.constant 1 : index
      %c0_109 = arith.constant 0 : index
      %c0_110 = arith.constant 0 : index
      %190 = vector.load %arg11[%c1_108, %c0_109, %c0_110] : memref<4x8x8xf32, #tpu.memory_space<vmem>>, vector<1x8x8xf32>
      %191 = vector.shape_cast %190 : vector<1x8x8xf32> to vector<8x8xf32>
      %c1_111 = arith.constant 1 : index
      %c0_112 = arith.constant 0 : index
      %c0_113 = arith.constant 0 : index
      %192 = vector.load %arg10[%c1_111, %c0_112, %c0_113] : memref<4x8x1xf32, #tpu.memory_space<vmem>>, vector<1x8x1xf32>
      %193 = vector.shape_cast %192 : vector<1x8x1xf32> to vector<8x1xf32>
      %194 = tpu.reciprocal %193 {approx = true} : vector<8x1xf32> -> vector<8x1xf32>
      %195 = vector.broadcast %194 : vector<8x1xf32> to vector<8x8xf32>
      %196 = arith.mulf %191, %195 : vector<8x8xf32>
      %c2_114 = arith.constant 2 : index
      %c0_115 = arith.constant 0 : index
      %c0_116 = arith.constant 0 : index
      %197 = vector.load %arg11[%c2_114, %c0_115, %c0_116] : memref<4x8x8xf32, #tpu.memory_space<vmem>>, vector<1x8x8xf32>
      %198 = vector.shape_cast %197 : vector<1x8x8xf32> to vector<8x8xf32>
      %c2_117 = arith.constant 2 : index
      %c0_118 = arith.constant 0 : index
      %c0_119 = arith.constant 0 : index
      %199 = vector.load %arg10[%c2_117, %c0_118, %c0_119] : memref<4x8x1xf32, #tpu.memory_space<vmem>>, vector<1x8x1xf32>
      %200 = vector.shape_cast %199 : vector<1x8x1xf32> to vector<8x1xf32>
      %201 = tpu.reciprocal %200 {approx = true} : vector<8x1xf32> -> vector<8x1xf32>
      %202 = vector.broadcast %201 : vector<8x1xf32> to vector<8x8xf32>
      %203 = arith.mulf %198, %202 : vector<8x8xf32>
      %c3_120 = arith.constant 3 : index
      %c0_121 = arith.constant 0 : index
      %c0_122 = arith.constant 0 : index
      %204 = vector.load %arg11[%c3_120, %c0_121, %c0_122] : memref<4x8x8xf32, #tpu.memory_space<vmem>>, vector<1x8x8xf32>
      %205 = vector.shape_cast %204 : vector<1x8x8xf32> to vector<8x8xf32>
      %c3_123 = arith.constant 3 : index
      %c0_124 = arith.constant 0 : index
      %c0_125 = arith.constant 0 : index
      %206 = vector.load %arg10[%c3_123, %c0_124, %c0_125] : memref<4x8x1xf32, #tpu.memory_space<vmem>>, vector<1x8x1xf32>
      %207 = vector.shape_cast %206 : vector<1x8x1xf32> to vector<8x1xf32>
      %208 = tpu.reciprocal %207 {approx = true} : vector<8x1xf32> -> vector<8x1xf32>
      %209 = vector.broadcast %208 : vector<8x1xf32> to vector<8x8xf32>
      %210 = arith.mulf %205, %209 : vector<8x8xf32>
      %211 = tpu.concatenate %189, %196, %203, %210 in 1 : vector<8x8xf32>, vector<8x8xf32>, vector<8x8xf32>, vector<8x8xf32> -> vector<8x32xf32>
      %212 = arith.truncf %211 : vector<8x32xf32> to vector<8x32xbf16>
      %c0_126 = arith.constant 0 : index
      %c0_127 = arith.constant 0 : index
      %c0_128 = arith.constant 0 : index
      %213 = vector.load %arg8[%c0_126, %c0_127, %c0_128] : memref<1x8x32xbf16, #tpu.memory_space<vmem>>, vector<1x8x32xbf16>
      %214 = vector.shape_cast %213 : vector<1x8x32xbf16> to vector<8x32xbf16>
      %215 = vector.shape_cast %212 : vector<8x32xbf16> to vector<1x8x32xbf16>
      tpu.vector_store %arg8[%c0_126, %c0_127, %c0_128], %215 {strides = array<i32>} : memref<1x8x32xbf16, #tpu.memory_space<vmem>>, vector<1x8x32xbf16>,
    } else {
    }
    return
  }
  func.func @transform_0(%arg0: i32, %arg1: i32, %arg2: i32, %arg3: i32) -> (i32, i32, i32) {
    %c0_i32 = arith.constant 0 : i32
    %0 = arith.addi %arg1, %c0_i32 : i32
    %c0_i32_0 = arith.constant 0 : i32
    return %arg0, %arg2, %0 : i32, i32, i32
  }
  func.func @transform_1(%arg0: i32, %arg1: i32, %arg2: i32, %arg3: i32) -> (i32, i32, i32) {
    %c0_i32 = arith.constant 0 : i32
    %0 = arith.addi %arg1, %c0_i32 : i32
    %c0_i32_0 = arith.constant 0 : i32
    return %arg0, %arg3, %0 : i32, i32, i32
  }
  func.func @transform_2(%arg0: i32, %arg1: i32, %arg2: i32, %arg3: i32) -> (i32, i32, i32) {
    %c0_i32 = arith.constant 0 : i32
    %0 = arith.addi %arg1, %c0_i32 : i32
    %c0_i32_0 = arith.constant 0 : i32
    return %arg0, %arg3, %0 : i32, i32, i32
  }
  func.func @transform_3(%arg0: i32, %arg1: i32, %arg2: i32, %arg3: i32) -> (i32, i32, i32) {
    %c1_i32 = arith.constant 1 : i32
    %0 = arith.muli %arg0, %c1_i32 : i32
    %c0_i32 = arith.constant 0 : i32
    %1 = arith.muli %arg2, %c0_i32 : i32
    %c0_i32_0 = arith.constant 0 : i32
    return %0, %1, %arg3 : i32, i32, i32
  }
  func.func @transform_4(%arg0: i32, %arg1: i32, %arg2: i32, %arg3: i32) -> (i32, i32, i32) {
    %c0_i32 = arith.constant 0 : i32
    return %arg0, %arg2, %arg1 : i32, i32, i32
  }
}

module attributes {stable_mosaic.version = 11 : i64} {
  func.func @_linear_kernel_1k(%arg0: i32, %arg1: i32, %arg2: i32, %arg3: memref<16x32xbf16, #tpu.memory_space<vmem>>, %arg4: memref<32x128xbf16, #tpu.memory_space<vmem>>, %arg5: memref<1x128xf32, #tpu.memory_space<vmem>>, %arg6: memref<16x128xbf16, #tpu.memory_space<vmem>>) attributes {dimension_semantics = [#tpu.dimension_semantics<parallel>, #tpu.dimension_semantics<parallel>, #tpu.dimension_semantics<arbitrary>], iteration_bounds = array<i64: 1, 1, 1>, scalar_prefetch = 0 : i64, scratch_operands = 0 : i64, tpu.core_type = #tpu.core_type<tc>, window_params = [{transform_indices = @transform_0, window_bounds = array<i64: 16, 32>}, {transform_indices = @transform_1, window_bounds = array<i64: 32, 128>}, {transform_indices = @transform_2, window_bounds = array<i64: 1, 128>}, {transform_indices = @transform_3, window_bounds = array<i64: 16, 128>}]} {
    %c0 = arith.constant 0 : index
    %c0_0 = arith.constant 0 : index
    %0 = vector.load %arg3[%c0, %c0_0] : memref<16x32xbf16, #tpu.memory_space<vmem>>, vector<16x32xbf16>
    %c0_1 = arith.constant 0 : index
    %c0_2 = arith.constant 0 : index
    %1 = vector.load %arg4[%c0_1, %c0_2] : memref<32x128xbf16, #tpu.memory_space<vmem>>, vector<32x128xbf16>
    %cst = arith.constant dense<0.000000e+00> : vector<16x128xf32>
    %2 = tpu.matmul %0, %1, %cst {dimension_numbers = #tpu.dot_dimension_numbers<[1], [0], [0], [1], [0, 0, 1, 1], [], []>} : vector<16x32xbf16>, vector<32x128xbf16>, vector<16x128xf32> -> vector<16x128xf32>
    %c0_3 = arith.constant 0 : index
    %c0_4 = arith.constant 0 : index
    %3 = vector.load %arg5[%c0_3, %c0_4] : memref<1x128xf32, #tpu.memory_space<vmem>>, vector<1x128xf32>
    %4 = vector.broadcast %3 : vector<1x128xf32> to vector<16x128xf32>
    %5 = arith.addf %2, %4 : vector<16x128xf32>
    %cst_5 = arith.constant 0.000000e+00 : f32
    %6 = vector.broadcast %cst_5 : f32 to vector<16x128xf32>
    %7 = arith.maximumf %5, %6 : vector<16x128xf32>
    %8 = arith.truncf %7 : vector<16x128xf32> to vector<16x128xbf16>
    %c0_6 = arith.constant 0 : index
    %c0_7 = arith.constant 0 : index
    %9 = vector.load %arg6[%c0_6, %c0_7] : memref<16x128xbf16, #tpu.memory_space<vmem>>, vector<16x128xbf16>
    tpu.vector_store %arg6[%c0_6, %c0_7], %8 {strides = array<i32>} : memref<16x128xbf16, #tpu.memory_space<vmem>>, vector<16x128xbf16>,
    return
  }
  func.func @transform_0(%arg0: i32, %arg1: i32, %arg2: i32) -> (i32, i32) {
    %c0_i32 = arith.constant 0 : i32
    return %arg0, %arg2 : i32, i32
  }
  func.func @transform_1(%arg0: i32, %arg1: i32, %arg2: i32) -> (i32, i32) {
    %c0_i32 = arith.constant 0 : i32
    return %arg2, %arg1 : i32, i32
  }
  func.func @transform_2(%arg0: i32, %arg1: i32, %arg2: i32) -> (i32, i32) {
    %c0_i32 = arith.constant 0 : i32
    %c0_i32_0 = arith.constant 0 : i32
    return %c0_i32, %arg1 : i32, i32
  }
  func.func @transform_3(%arg0: i32, %arg1: i32, %arg2: i32) -> (i32, i32) {
    %c0_i32 = arith.constant 0 : i32
    return %arg0, %arg1 : i32, i32
  }
}

module attributes {stable_mosaic.version = 11 : i64} {
  func.func @_linear_kernel_1k(%arg0: i32, %arg1: i32, %arg2: i32, %arg3: memref<16x32xbf16, #tpu.memory_space<vmem>>, %arg4: memref<32x128xbf16, #tpu.memory_space<vmem>>, %arg5: memref<1x128xf32, #tpu.memory_space<vmem>>, %arg6: memref<16x128xbf16, #tpu.memory_space<vmem>>) attributes {dimension_semantics = [#tpu.dimension_semantics<parallel>, #tpu.dimension_semantics<parallel>, #tpu.dimension_semantics<arbitrary>], iteration_bounds = array<i64: 1, 1, 1>, scalar_prefetch = 0 : i64, scratch_operands = 0 : i64, tpu.core_type = #tpu.core_type<tc>, window_params = [{transform_indices = @transform_0, window_bounds = array<i64: 16, 32>}, {transform_indices = @transform_1, window_bounds = array<i64: 32, 128>}, {transform_indices = @transform_2, window_bounds = array<i64: 1, 128>}, {transform_indices = @transform_3, window_bounds = array<i64: 16, 128>}]} {
    %c0 = arith.constant 0 : index
    %c0_0 = arith.constant 0 : index
    %0 = vector.load %arg3[%c0, %c0_0] : memref<16x32xbf16, #tpu.memory_space<vmem>>, vector<16x32xbf16>
    %c0_1 = arith.constant 0 : index
    %c0_2 = arith.constant 0 : index
    %1 = vector.load %arg4[%c0_1, %c0_2] : memref<32x128xbf16, #tpu.memory_space<vmem>>, vector<32x128xbf16>
    %cst = arith.constant dense<0.000000e+00> : vector<16x128xf32>
    %2 = tpu.matmul %0, %1, %cst {dimension_numbers = #tpu.dot_dimension_numbers<[1], [0], [0], [1], [0, 0, 1, 1], [], []>} : vector<16x32xbf16>, vector<32x128xbf16>, vector<16x128xf32> -> vector<16x128xf32>
    %c0_3 = arith.constant 0 : index
    %c0_4 = arith.constant 0 : index
    %3 = vector.load %arg5[%c0_3, %c0_4] : memref<1x128xf32, #tpu.memory_space<vmem>>, vector<1x128xf32>
    %4 = vector.broadcast %3 : vector<1x128xf32> to vector<16x128xf32>
    %5 = arith.addf %2, %4 : vector<16x128xf32>
    %cst_5 = arith.constant 0.000000e+00 : f32
    %6 = vector.broadcast %cst_5 : f32 to vector<16x128xf32>
    %7 = arith.maximumf %5, %6 : vector<16x128xf32>
    %8 = arith.truncf %7 : vector<16x128xf32> to vector<16x128xbf16>
    %c0_6 = arith.constant 0 : index
    %c0_7 = arith.constant 0 : index
    %9 = vector.load %arg6[%c0_6, %c0_7] : memref<16x128xbf16, #tpu.memory_space<vmem>>, vector<16x128xbf16>
    tpu.vector_store %arg6[%c0_6, %c0_7], %8 {strides = array<i32>} : memref<16x128xbf16, #tpu.memory_space<vmem>>, vector<16x128xbf16>,
    return
  }
  func.func @transform_0(%arg0: i32, %arg1: i32, %arg2: i32) -> (i32, i32) {
    %c0_i32 = arith.constant 0 : i32
    return %arg0, %arg2 : i32, i32
  }
  func.func @transform_1(%arg0: i32, %arg1: i32, %arg2: i32) -> (i32, i32) {
    %c0_i32 = arith.constant 0 : i32
    return %arg2, %arg1 : i32, i32
  }
  func.func @transform_2(%arg0: i32, %arg1: i32, %arg2: i32) -> (i32, i32) {
    %c0_i32 = arith.constant 0 : i32
    %c0_i32_0 = arith.constant 0 : i32
    return %c0_i32, %arg1 : i32, i32
  }
  func.func @transform_3(%arg0: i32, %arg1: i32, %arg2: i32) -> (i32, i32) {
    %c0_i32 = arith.constant 0 : i32
    return %arg0, %arg1 : i32, i32
  }
}

module attributes {stable_mosaic.version = 11 : i64} {
  func.func @_linear_kernel_1k(%arg0: i32, %arg1: i32, %arg2: i32, %arg3: memref<16x128xbf16, #tpu.memory_space<vmem>>, %arg4: memref<128x32xbf16, #tpu.memory_space<vmem>>, %arg5: memref<1x32xf32, #tpu.memory_space<vmem>>, %arg6: memref<16x32xbf16, #tpu.memory_space<vmem>>) attributes {dimension_semantics = [#tpu.dimension_semantics<parallel>, #tpu.dimension_semantics<parallel>, #tpu.dimension_semantics<arbitrary>], iteration_bounds = array<i64: 1, 1, 1>, scalar_prefetch = 0 : i64, scratch_operands = 0 : i64, tpu.core_type = #tpu.core_type<tc>, window_params = [{transform_indices = @transform_0, window_bounds = array<i64: 16, 128>}, {transform_indices = @transform_1, window_bounds = array<i64: 128, 32>}, {transform_indices = @transform_2, window_bounds = array<i64: 1, 32>}, {transform_indices = @transform_3, window_bounds = array<i64: 16, 32>}]} {
    %c0 = arith.constant 0 : index
    %c0_0 = arith.constant 0 : index
    %0 = vector.load %arg3[%c0, %c0_0] : memref<16x128xbf16, #tpu.memory_space<vmem>>, vector<16x128xbf16>
    %c0_1 = arith.constant 0 : index
    %c0_2 = arith.constant 0 : index
    %1 = vector.load %arg4[%c0_1, %c0_2] : memref<128x32xbf16, #tpu.memory_space<vmem>>, vector<128x32xbf16>
    %cst = arith.constant dense<0.000000e+00> : vector<16x32xf32>
    %2 = tpu.matmul %0, %1, %cst {dimension_numbers = #tpu.dot_dimension_numbers<[1], [0], [0], [1], [0, 0, 1, 1], [], []>} : vector<16x128xbf16>, vector<128x32xbf16>, vector<16x32xf32> -> vector<16x32xf32>
    %c0_3 = arith.constant 0 : index
    %c0_4 = arith.constant 0 : index
    %3 = vector.load %arg5[%c0_3, %c0_4] : memref<1x32xf32, #tpu.memory_space<vmem>>, vector<1x32xf32>
    %4 = vector.broadcast %3 : vector<1x32xf32> to vector<16x32xf32>
    %5 = arith.addf %2, %4 : vector<16x32xf32>
    %6 = arith.truncf %5 : vector<16x32xf32> to vector<16x32xbf16>
    %c0_5 = arith.constant 0 : index
    %c0_6 = arith.constant 0 : index
    %7 = vector.load %arg6[%c0_5, %c0_6] : memref<16x32xbf16, #tpu.memory_space<vmem>>, vector<16x32xbf16>
    tpu.vector_store %arg6[%c0_5, %c0_6], %6 {strides = array<i32>} : memref<16x32xbf16, #tpu.memory_space<vmem>>, vector<16x32xbf16>,
    return
  }
  func.func @transform_0(%arg0: i32, %arg1: i32, %arg2: i32) -> (i32, i32) {
    %c0_i32 = arith.constant 0 : i32
    return %arg0, %arg2 : i32, i32
  }
  func.func @transform_1(%arg0: i32, %arg1: i32, %arg2: i32) -> (i32, i32) {
    %c0_i32 = arith.constant 0 : i32
    return %arg2, %arg1 : i32, i32
  }
  func.func @transform_2(%arg0: i32, %arg1: i32, %arg2: i32) -> (i32, i32) {
    %c0_i32 = arith.constant 0 : i32
    %c0_i32_0 = arith.constant 0 : i32
    return %c0_i32, %arg1 : i32, i32
  }
  func.func @transform_3(%arg0: i32, %arg1: i32, %arg2: i32) -> (i32, i32) {
    %c0_i32 = arith.constant 0 : i32
    return %arg0, %arg1 : i32, i32
  }
}

module attributes {stable_mosaic.version = 11 : i64} {
  func.func @_linear_kernel_1k(%arg0: i32, %arg1: i32, %arg2: i32, %arg3: memref<16x32xbf16, #tpu.memory_space<vmem>>, %arg4: memref<32x64xbf16, #tpu.memory_space<vmem>>, %arg5: memref<1x64xf32, #tpu.memory_space<vmem>>, %arg6: memref<16x64xbf16, #tpu.memory_space<vmem>>) attributes {dimension_semantics = [#tpu.dimension_semantics<parallel>, #tpu.dimension_semantics<parallel>, #tpu.dimension_semantics<arbitrary>], iteration_bounds = array<i64: 1, 1, 1>, scalar_prefetch = 0 : i64, scratch_operands = 0 : i64, tpu.core_type = #tpu.core_type<tc>, window_params = [{transform_indices = @transform_0, window_bounds = array<i64: 16, 32>}, {transform_indices = @transform_1, window_bounds = array<i64: 32, 64>}, {transform_indices = @transform_2, window_bounds = array<i64: 1, 64>}, {transform_indices = @transform_3, window_bounds = array<i64: 16, 64>}]} {
    %c0 = arith.constant 0 : index
    %c0_0 = arith.constant 0 : index
    %0 = vector.load %arg3[%c0, %c0_0] : memref<16x32xbf16, #tpu.memory_space<vmem>>, vector<16x32xbf16>
    %c0_1 = arith.constant 0 : index
    %c0_2 = arith.constant 0 : index
    %1 = vector.load %arg4[%c0_1, %c0_2] : memref<32x64xbf16, #tpu.memory_space<vmem>>, vector<32x64xbf16>
    %cst = arith.constant dense<0.000000e+00> : vector<16x64xf32>
    %2 = tpu.matmul %0, %1, %cst {dimension_numbers = #tpu.dot_dimension_numbers<[1], [0], [0], [1], [0, 0, 1, 1], [], []>} : vector<16x32xbf16>, vector<32x64xbf16>, vector<16x64xf32> -> vector<16x64xf32>
    %c0_3 = arith.constant 0 : index
    %c0_4 = arith.constant 0 : index
    %3 = vector.load %arg5[%c0_3, %c0_4] : memref<1x64xf32, #tpu.memory_space<vmem>>, vector<1x64xf32>
    %4 = vector.broadcast %3 : vector<1x64xf32> to vector<16x64xf32>
    %5 = arith.addf %2, %4 : vector<16x64xf32>
    %6 = arith.truncf %5 : vector<16x64xf32> to vector<16x64xbf16>
    %c0_5 = arith.constant 0 : index
    %c0_6 = arith.constant 0 : index
    %7 = vector.load %arg6[%c0_5, %c0_6] : memref<16x64xbf16, #tpu.memory_space<vmem>>, vector<16x64xbf16>
    tpu.vector_store %arg6[%c0_5, %c0_6], %6 {strides = array<i32>} : memref<16x64xbf16, #tpu.memory_space<vmem>>, vector<16x64xbf16>,
    return
  }
  func.func @transform_0(%arg0: i32, %arg1: i32, %arg2: i32) -> (i32, i32) {
    %c0_i32 = arith.constant 0 : i32
    return %arg0, %arg2 : i32, i32
  }
  func.func @transform_1(%arg0: i32, %arg1: i32, %arg2: i32) -> (i32, i32) {
    %c0_i32 = arith.constant 0 : i32
    return %arg2, %arg1 : i32, i32
  }
  func.func @transform_2(%arg0: i32, %arg1: i32, %arg2: i32) -> (i32, i32) {
    %c0_i32 = arith.constant 0 : i32
    %c0_i32_0 = arith.constant 0 : i32
    return %c0_i32, %arg1 : i32, i32
  }
  func.func @transform_3(%arg0: i32, %arg1: i32, %arg2: i32) -> (i32, i32) {
    %c0_i32 = arith.constant 0 : i32
    return %arg0, %arg1 : i32, i32
  }
}

module attributes {stable_mosaic.version = 11 : i64} {
  func.func @_linear_kernel_1k(%arg0: i32, %arg1: i32, %arg2: i32, %arg3: memref<16x128xbf16, #tpu.memory_space<vmem>>, %arg4: memref<128x32xbf16, #tpu.memory_space<vmem>>, %arg5: memref<1x32xf32, #tpu.memory_space<vmem>>, %arg6: memref<16x32xbf16, #tpu.memory_space<vmem>>) attributes {dimension_semantics = [#tpu.dimension_semantics<parallel>, #tpu.dimension_semantics<parallel>, #tpu.dimension_semantics<arbitrary>], iteration_bounds = array<i64: 1, 1, 1>, scalar_prefetch = 0 : i64, scratch_operands = 0 : i64, tpu.core_type = #tpu.core_type<tc>, window_params = [{transform_indices = @transform_0, window_bounds = array<i64: 16, 128>}, {transform_indices = @transform_1, window_bounds = array<i64: 128, 32>}, {transform_indices = @transform_2, window_bounds = array<i64: 1, 32>}, {transform_indices = @transform_3, window_bounds = array<i64: 16, 32>}]} {
    %c0 = arith.constant 0 : index
    %c0_0 = arith.constant 0 : index
    %0 = vector.load %arg3[%c0, %c0_0] : memref<16x128xbf16, #tpu.memory_space<vmem>>, vector<16x128xbf16>
    %c0_1 = arith.constant 0 : index
    %c0_2 = arith.constant 0 : index
    %1 = vector.load %arg4[%c0_1, %c0_2] : memref<128x32xbf16, #tpu.memory_space<vmem>>, vector<128x32xbf16>
    %cst = arith.constant dense<0.000000e+00> : vector<16x32xf32>
    %2 = tpu.matmul %0, %1, %cst {dimension_numbers = #tpu.dot_dimension_numbers<[1], [0], [0], [1], [0, 0, 1, 1], [], []>} : vector<16x128xbf16>, vector<128x32xbf16>, vector<16x32xf32> -> vector<16x32xf32>
    %c0_3 = arith.constant 0 : index
    %c0_4 = arith.constant 0 : index
    %3 = vector.load %arg5[%c0_3, %c0_4] : memref<1x32xf32, #tpu.memory_space<vmem>>, vector<1x32xf32>
    %4 = vector.broadcast %3 : vector<1x32xf32> to vector<16x32xf32>
    %5 = arith.addf %2, %4 : vector<16x32xf32>
    %6 = arith.truncf %5 : vector<16x32xf32> to vector<16x32xbf16>
    %c0_5 = arith.constant 0 : index
    %c0_6 = arith.constant 0 : index
    %7 = vector.load %arg6[%c0_5, %c0_6] : memref<16x32xbf16, #tpu.memory_space<vmem>>, vector<16x32xbf16>
    tpu.vector_store %arg6[%c0_5, %c0_6], %6 {strides = array<i32>} : memref<16x32xbf16, #tpu.memory_space<vmem>>, vector<16x32xbf16>,
    return
  }
  func.func @transform_0(%arg0: i32, %arg1: i32, %arg2: i32) -> (i32, i32) {
    %c0_i32 = arith.constant 0 : i32
    return %arg0, %arg2 : i32, i32
  }
  func.func @transform_1(%arg0: i32, %arg1: i32, %arg2: i32) -> (i32, i32) {
    %c0_i32 = arith.constant 0 : i32
    return %arg2, %arg1 : i32, i32
  }
  func.func @transform_2(%arg0: i32, %arg1: i32, %arg2: i32) -> (i32, i32) {
    %c0_i32 = arith.constant 0 : i32
    %c0_i32_0 = arith.constant 0 : i32
    return %c0_i32, %arg1 : i32, i32
  }
  func.func @transform_3(%arg0: i32, %arg1: i32, %arg2: i32) -> (i32, i32) {
    %c0_i32 = arith.constant 0 : i32
    return %arg0, %arg1 : i32, i32
  }
}

module attributes {stable_mosaic.version = 11 : i64} {
  func.func @_linear_kernel_1k(%arg0: i32, %arg1: i32, %arg2: i32, %arg3: memref<16x32xbf16, #tpu.memory_space<vmem>>, %arg4: memref<32x96xbf16, #tpu.memory_space<vmem>>, %arg5: memref<1x96xf32, #tpu.memory_space<vmem>>, %arg6: memref<16x96xbf16, #tpu.memory_space<vmem>>) attributes {dimension_semantics = [#tpu.dimension_semantics<parallel>, #tpu.dimension_semantics<parallel>, #tpu.dimension_semantics<arbitrary>], iteration_bounds = array<i64: 1, 1, 1>, scalar_prefetch = 0 : i64, scratch_operands = 0 : i64, tpu.core_type = #tpu.core_type<tc>, window_params = [{transform_indices = @transform_0, window_bounds = array<i64: 16, 32>}, {transform_indices = @transform_1, window_bounds = array<i64: 32, 96>}, {transform_indices = @transform_2, window_bounds = array<i64: 1, 96>}, {transform_indices = @transform_3, window_bounds = array<i64: 16, 96>}]} {
    %c0 = arith.constant 0 : index
    %c0_0 = arith.constant 0 : index
    %0 = vector.load %arg3[%c0, %c0_0] : memref<16x32xbf16, #tpu.memory_space<vmem>>, vector<16x32xbf16>
    %c0_1 = arith.constant 0 : index
    %c0_2 = arith.constant 0 : index
    %1 = vector.load %arg4[%c0_1, %c0_2] : memref<32x96xbf16, #tpu.memory_space<vmem>>, vector<32x96xbf16>
    %cst = arith.constant dense<0.000000e+00> : vector<16x96xf32>
    %2 = tpu.matmul %0, %1, %cst {dimension_numbers = #tpu.dot_dimension_numbers<[1], [0], [0], [1], [0, 0, 1, 1], [], []>} : vector<16x32xbf16>, vector<32x96xbf16>, vector<16x96xf32> -> vector<16x96xf32>
    %c0_3 = arith.constant 0 : index
    %c0_4 = arith.constant 0 : index
    %3 = vector.load %arg5[%c0_3, %c0_4] : memref<1x96xf32, #tpu.memory_space<vmem>>, vector<1x96xf32>
    %4 = vector.broadcast %3 : vector<1x96xf32> to vector<16x96xf32>
    %5 = arith.addf %2, %4 : vector<16x96xf32>
    %6 = arith.truncf %5 : vector<16x96xf32> to vector<16x96xbf16>
    %c0_5 = arith.constant 0 : index
    %c0_6 = arith.constant 0 : index
    %7 = vector.load %arg6[%c0_5, %c0_6] : memref<16x96xbf16, #tpu.memory_space<vmem>>, vector<16x96xbf16>
    tpu.vector_store %arg6[%c0_5, %c0_6], %6 {strides = array<i32>} : memref<16x96xbf16, #tpu.memory_space<vmem>>, vector<16x96xbf16>,
    return
  }
  func.func @transform_0(%arg0: i32, %arg1: i32, %arg2: i32) -> (i32, i32) {
    %c0_i32 = arith.constant 0 : i32
    return %arg0, %arg2 : i32, i32
  }
  func.func @transform_1(%arg0: i32, %arg1: i32, %arg2: i32) -> (i32, i32) {
    %c0_i32 = arith.constant 0 : i32
    return %arg2, %arg1 : i32, i32
  }
  func.func @transform_2(%arg0: i32, %arg1: i32, %arg2: i32) -> (i32, i32) {
    %c0_i32 = arith.constant 0 : i32
    %c0_i32_0 = arith.constant 0 : i32
    return %c0_i32, %arg1 : i32, i32
  }
  func.func @transform_3(%arg0: i32, %arg1: i32, %arg2: i32) -> (i32, i32) {
    %c0_i32 = arith.constant 0 : i32
    return %arg0, %arg1 : i32, i32
  }
}

module attributes {stable_mosaic.version = 11 : i64} {
  func.func @_layernorm_kernel(%arg0: i32, %arg1: memref<16x32xbf16, #tpu.memory_space<vmem>>, %arg2: memref<16x32xbf16, #tpu.memory_space<vmem>>, %arg3: memref<1x32xf32, #tpu.memory_space<vmem>>, %arg4: memref<1x32xf32, #tpu.memory_space<vmem>>, %arg5: memref<16x32xbf16, #tpu.memory_space<vmem>>) attributes {dimension_semantics = [#tpu.dimension_semantics<parallel>], iteration_bounds = array<i64: 1>, scalar_prefetch = 0 : i64, scratch_operands = 0 : i64, tpu.core_type = #tpu.core_type<tc>, window_params = [{transform_indices = @transform_0, window_bounds = array<i64: 16, 32>}, {transform_indices = @transform_1, window_bounds = array<i64: 16, 32>}, {pipeline_mode = #tpu.pipeline_mode<synchronous>, transform_indices = @transform_2, window_bounds = array<i64: 1, 32>}, {pipeline_mode = #tpu.pipeline_mode<synchronous>, transform_indices = @transform_3, window_bounds = array<i64: 1, 32>}, {transform_indices = @transform_4, window_bounds = array<i64: 16, 32>}]} {
    %c0 = arith.constant 0 : index
    %c0_0 = arith.constant 0 : index
    %0 = vector.load %arg1[%c0, %c0_0] : memref<16x32xbf16, #tpu.memory_space<vmem>>, vector<16x32xbf16>
    %1 = arith.extf %0 : vector<16x32xbf16> to vector<16x32xf32>
    %c0_1 = arith.constant 0 : index
    %c0_2 = arith.constant 0 : index
    %2 = vector.load %arg2[%c0_1, %c0_2] : memref<16x32xbf16, #tpu.memory_space<vmem>>, vector<16x32xbf16>
    %3 = arith.extf %2 : vector<16x32xbf16> to vector<16x32xf32>
    %4 = arith.addf %1, %3 : vector<16x32xf32>
    %cst = arith.constant dense<0.000000e+00> : vector<16xf32>
    %5 = vector.multi_reduction <add>, %4, %cst [1] : vector<16x32xf32> to vector<16xf32>
    %6 = vector.shape_cast %5 : vector<16xf32> to vector<16x1xf32>
    %cst_3 = arith.constant 3.200000e+01 : f32
    %7 = vector.broadcast %cst_3 : f32 to vector<16x1xf32>
    %8 = arith.divf %6, %7 : vector<16x1xf32>
    %9 = vector.broadcast %8 : vector<16x1xf32> to vector<16x32xf32>
    %10 = arith.subf %4, %9 : vector<16x32xf32>
    %11 = arith.mulf %10, %10 : vector<16x32xf32>
    %cst_4 = arith.constant dense<0.000000e+00> : vector<16xf32>
    %12 = vector.multi_reduction <add>, %11, %cst_4 [1] : vector<16x32xf32> to vector<16xf32>
    %13 = vector.shape_cast %12 : vector<16xf32> to vector<16x1xf32>
    %cst_5 = arith.constant 3.200000e+01 : f32
    %14 = vector.broadcast %cst_5 : f32 to vector<16x1xf32>
    %15 = arith.divf %13, %14 : vector<16x1xf32>
    %16 = vector.broadcast %8 : vector<16x1xf32> to vector<16x32xf32>
    %17 = arith.subf %4, %16 : vector<16x32xf32>
    %cst_6 = arith.constant 9.99999974E-6 : f32
    %18 = vector.broadcast %cst_6 : f32 to vector<16x1xf32>
    %19 = arith.addf %15, %18 : vector<16x1xf32>
    %20 = math.rsqrt %19 : vector<16x1xf32>
    %21 = vector.broadcast %20 : vector<16x1xf32> to vector<16x32xf32>
    %22 = arith.mulf %17, %21 : vector<16x32xf32>
    %c0_7 = arith.constant 0 : index
    %c0_8 = arith.constant 0 : index
    %23 = vector.load %arg3[%c0_7, %c0_8] : memref<1x32xf32, #tpu.memory_space<vmem>>, vector<1x32xf32>
    %24 = vector.broadcast %23 : vector<1x32xf32> to vector<16x32xf32>
    %25 = arith.mulf %22, %24 : vector<16x32xf32>
    %c0_9 = arith.constant 0 : index
    %c0_10 = arith.constant 0 : index
    %26 = vector.load %arg4[%c0_9, %c0_10] : memref<1x32xf32, #tpu.memory_space<vmem>>, vector<1x32xf32>
    %27 = vector.broadcast %26 : vector<1x32xf32> to vector<16x32xf32>
    %28 = arith.addf %25, %27 : vector<16x32xf32>
    %29 = arith.truncf %28 : vector<16x32xf32> to vector<16x32xbf16>
    %c0_11 = arith.constant 0 : index
    %c0_12 = arith.constant 0 : index
    %30 = vector.load %arg5[%c0_11, %c0_12] : memref<16x32xbf16, #tpu.memory_space<vmem>>, vector<16x32xbf16>
    tpu.vector_store %arg5[%c0_11, %c0_12], %29 {strides = array<i32>} : memref<16x32xbf16, #tpu.memory_space<vmem>>, vector<16x32xbf16>,
    return
  }
  func.func @transform_0(%arg0: i32) -> (i32, i32) {
    %c0_i32 = arith.constant 0 : i32
    %c0_i32_0 = arith.constant 0 : i32
    return %arg0, %c0_i32 : i32, i32
  }
  func.func @transform_1(%arg0: i32) -> (i32, i32) {
    %c0_i32 = arith.constant 0 : i32
    %c0_i32_0 = arith.constant 0 : i32
    return %arg0, %c0_i32 : i32, i32
  }
  func.func @transform_2(%arg0: i32) -> (i32, i32) {
    %c0_i32 = arith.constant 0 : i32
    %c0_i32_0 = arith.constant 0 : i32
    %c0_i32_1 = arith.constant 0 : i32
    return %c0_i32, %c0_i32_0 : i32, i32
  }
  func.func @transform_3(%arg0: i32) -> (i32, i32) {
    %c0_i32 = arith.constant 0 : i32
    %c0_i32_0 = arith.constant 0 : i32
    %c0_i32_1 = arith.constant 0 : i32
    return %c0_i32, %c0_i32_0 : i32, i32
  }
  func.func @transform_4(%arg0: i32) -> (i32, i32) {
    %c0_i32 = arith.constant 0 : i32
    %c0_i32_0 = arith.constant 0 : i32
    return %arg0, %c0_i32 : i32, i32
  }
}

module attributes {stable_mosaic.version = 11 : i64} {
  func.func @_linear_kernel_1k(%arg0: i32, %arg1: i32, %arg2: i32, %arg3: memref<16x32xbf16, #tpu.memory_space<vmem>>, %arg4: memref<32x32xbf16, #tpu.memory_space<vmem>>, %arg5: memref<1x32xf32, #tpu.memory_space<vmem>>, %arg6: memref<16x32xbf16, #tpu.memory_space<vmem>>) attributes {dimension_semantics = [#tpu.dimension_semantics<parallel>, #tpu.dimension_semantics<parallel>, #tpu.dimension_semantics<arbitrary>], iteration_bounds = array<i64: 1, 1, 1>, scalar_prefetch = 0 : i64, scratch_operands = 0 : i64, tpu.core_type = #tpu.core_type<tc>, window_params = [{transform_indices = @transform_0, window_bounds = array<i64: 16, 32>}, {transform_indices = @transform_1, window_bounds = array<i64: 32, 32>}, {transform_indices = @transform_2, window_bounds = array<i64: 1, 32>}, {transform_indices = @transform_3, window_bounds = array<i64: 16, 32>}]} {
    %c0 = arith.constant 0 : index
    %c0_0 = arith.constant 0 : index
    %0 = vector.load %arg3[%c0, %c0_0] : memref<16x32xbf16, #tpu.memory_space<vmem>>, vector<16x32xbf16>
    %c0_1 = arith.constant 0 : index
    %c0_2 = arith.constant 0 : index
    %1 = vector.load %arg4[%c0_1, %c0_2] : memref<32x32xbf16, #tpu.memory_space<vmem>>, vector<32x32xbf16>
    %cst = arith.constant dense<0.000000e+00> : vector<16x32xf32>
    %2 = tpu.matmul %0, %1, %cst {dimension_numbers = #tpu.dot_dimension_numbers<[1], [0], [0], [1], [0, 0, 1, 1], [], []>} : vector<16x32xbf16>, vector<32x32xbf16>, vector<16x32xf32> -> vector<16x32xf32>
    %c0_3 = arith.constant 0 : index
    %c0_4 = arith.constant 0 : index
    %3 = vector.load %arg5[%c0_3, %c0_4] : memref<1x32xf32, #tpu.memory_space<vmem>>, vector<1x32xf32>
    %4 = vector.broadcast %3 : vector<1x32xf32> to vector<16x32xf32>
    %5 = arith.addf %2, %4 : vector<16x32xf32>
    %6 = arith.truncf %5 : vector<16x32xf32> to vector<16x32xbf16>
    %c0_5 = arith.constant 0 : index
    %c0_6 = arith.constant 0 : index
    %7 = vector.load %arg6[%c0_5, %c0_6] : memref<16x32xbf16, #tpu.memory_space<vmem>>, vector<16x32xbf16>
    tpu.vector_store %arg6[%c0_5, %c0_6], %6 {strides = array<i32>} : memref<16x32xbf16, #tpu.memory_space<vmem>>, vector<16x32xbf16>,
    return
  }
  func.func @transform_0(%arg0: i32, %arg1: i32, %arg2: i32) -> (i32, i32) {
    %c0_i32 = arith.constant 0 : i32
    return %arg0, %arg2 : i32, i32
  }
  func.func @transform_1(%arg0: i32, %arg1: i32, %arg2: i32) -> (i32, i32) {
    %c0_i32 = arith.constant 0 : i32
    return %arg2, %arg1 : i32, i32
  }
  func.func @transform_2(%arg0: i32, %arg1: i32, %arg2: i32) -> (i32, i32) {
    %c0_i32 = arith.constant 0 : i32
    %c0_i32_0 = arith.constant 0 : i32
    return %c0_i32, %arg1 : i32, i32
  }
  func.func @transform_3(%arg0: i32, %arg1: i32, %arg2: i32) -> (i32, i32) {
    %c0_i32 = arith.constant 0 : i32
    return %arg0, %arg1 : i32, i32
  }
}

module attributes {stable_mosaic.version = 11 : i64} {
  func.func @_linear_kernel_1k(%arg0: i32, %arg1: i32, %arg2: i32, %arg3: memref<16x32xbf16, #tpu.memory_space<vmem>>, %arg4: memref<32x512xbf16, #tpu.memory_space<vmem>>, %arg5: memref<1x512xf32, #tpu.memory_space<vmem>>, %arg6: memref<16x512xf32, #tpu.memory_space<vmem>>) attributes {dimension_semantics = [#tpu.dimension_semantics<parallel>, #tpu.dimension_semantics<parallel>, #tpu.dimension_semantics<arbitrary>], iteration_bounds = array<i64: 1, 59, 1>, scalar_prefetch = 0 : i64, scratch_operands = 0 : i64, tpu.core_type = #tpu.core_type<tc>, window_params = [{transform_indices = @transform_0, window_bounds = array<i64: 16, 32>}, {transform_indices = @transform_1, window_bounds = array<i64: 32, 512>}, {transform_indices = @transform_2, window_bounds = array<i64: 1, 512>}, {transform_indices = @transform_3, window_bounds = array<i64: 16, 512>}]} {
    %c0 = arith.constant 0 : index
    %c0_0 = arith.constant 0 : index
    %0 = vector.load %arg3[%c0, %c0_0] : memref<16x32xbf16, #tpu.memory_space<vmem>>, vector<16x32xbf16>
    %c0_1 = arith.constant 0 : index
    %c0_2 = arith.constant 0 : index
    %1 = vector.load %arg4[%c0_1, %c0_2] : memref<32x512xbf16, #tpu.memory_space<vmem>>, vector<32x512xbf16>
    %cst = arith.constant dense<0.000000e+00> : vector<16x512xf32>
    %2 = tpu.matmul %0, %1, %cst {dimension_numbers = #tpu.dot_dimension_numbers<[1], [0], [0], [1], [0, 0, 1, 1], [], []>} : vector<16x32xbf16>, vector<32x512xbf16>, vector<16x512xf32> -> vector<16x512xf32>
    %c0_3 = arith.constant 0 : index
    %c0_4 = arith.constant 0 : index
    %3 = vector.load %arg5[%c0_3, %c0_4] : memref<1x512xf32, #tpu.memory_space<vmem>>, vector<1x512xf32>
    %4 = vector.broadcast %3 : vector<1x512xf32> to vector<16x512xf32>
    %5 = arith.addf %2, %4 : vector<16x512xf32>
    %c0_5 = arith.constant 0 : index
    %c0_6 = arith.constant 0 : index
    %6 = vector.load %arg6[%c0_5, %c0_6] : memref<16x512xf32, #tpu.memory_space<vmem>>, vector<16x512xf32>
    tpu.vector_store %arg6[%c0_5, %c0_6], %5 {strides = array<i32>} : memref<16x512xf32, #tpu.memory_space<vmem>>, vector<16x512xf32>,
    return
  }
  func.func @transform_0(%arg0: i32, %arg1: i32, %arg2: i32) -> (i32, i32) {
    %c0_i32 = arith.constant 0 : i32
    return %arg0, %arg2 : i32, i32
  }
  func.func @transform_1(%arg0: i32, %arg1: i32, %arg2: i32) -> (i32, i32) {
    %c0_i32 = arith.constant 0 : i32
    return %arg2, %arg1 : i32, i32
  }
  func.func @transform_2(%arg0: i32, %arg1: i32, %arg2: i32) -> (i32, i32) {
    %c0_i32 = arith.constant 0 : i32
    %c0_i32_0 = arith.constant 0 : i32
    return %c0_i32, %arg1 : i32, i32
  }
  func.func @transform_3(%arg0: i32, %arg1: i32, %arg2: i32) -> (i32, i32) {
    %c0_i32 = arith.constant 0 : i32
    return %arg0, %arg1 : i32, i32
  }
}

</mosaic_0001>

<bundles_post_ra>
// kernel: transformer_forward.55
= control target key start
LH: loop header
LB: loop body
LE: loop exit
PB: predicated region body
PF: predicated region fallthrough
CT: control target
= control target key end

     0   :  { %vm42_vm0 = vcmask 261120   ;;  %vm62_vm1 = vcmask 781312   ;;  %s124_s1 = inlined_call_operand.vmem [shape: bf16[32,96], index: 1, kind: input, shape index: {}]   ;;  %s125_s2 = inlined_call_operand.vmem [shape: f32[1,96], index: 2, kind: input, shape index: {}]   ;;  %s126_s0 = inlined_call_operand.vmem [shape: bf16[16,32], index: 0, kind: input, shape index: {}]   ;;  %s127_s3 = inlined_call_operand.vmem [shape: bf16[16,96], index: 3, kind: output, shape index: {}]  }
   0x1   :  { %v84_v0 = vld [vmem:[%s124_s1 + $0x8] sm:$0xff]  ;;  %v83_v1 = vld [vmem:[%s124_s1] sm:$0xff] }
   0x2   :  { %52 = vmatpush.bf16.msra.mxu0 %v84_v0  ;;  %v82_v2 = vld [vmem:[%s126_s0] sm:$0xff] }
   0x3   :  { %v85_v3 = vld [vmem:[%s125_s2] ss:$0 sm:$0xff] }
   0x6   :  { %53 = vmatpush.bf16.msra.mxu0 %v83_v1 }
   0x9   :  { %81 = vmatmul.msk.bf16.vlgmr.msra.gmra.mxu0 %vm42_vm0, %v82_v2 }
  0x86   :  { %v55_v4 = vpop.f32.mrf.mxu0 }
  0x87   :  { %v56_v5 = vadd.f32 %v85_v3, %v55_v4 }
  0x89   :  { %v60_v6 = vpack.c.bf16 %v56_v5, %v56_v5 }
  0x8b   :  { %63 = vst.msk [vmem:[%s127_s3] sm:$0xf] %vm62_vm1, %v60_v6 }
  0x8e   :  { %v57_v7 = vpop.f32.mrf.mxu0 }
  0x8f   :  { %v58_v8 = vadd.f32 %v85_v3, %v57_v7 }
  0x91   :  { %v61_v9 = vpack.c.bf16 %v58_v8, %v58_v8 }
  0x93   :  { %64 = vst.msk [vmem:[%s127_s3 + $0x4] sm:$0xf] %vm62_vm1, %v61_v9 }

// kernel: transformer_forward.54
= control target key start
LH: loop header
LB: loop body
LE: loop exit
PB: predicated region body
PF: predicated region fallthrough
CT: control target
= control target key end

     0   :  { %vm18_vm0 = vcmask 261120   ;;  %v104_v5 = vmov 32.0   ;;  %vm84_vm6 = vcmask 257024   ;;  %s144_s0 = inlined_call_operand.vmem [shape: bf16[16,32], index: 0, kind: input, shape index: {}]   ;;  %s145_s1 = inlined_call_operand.vmem [shape: f32[1,32], index: 1, kind: input, shape index: {}]   ;;  %s146_s2 = inlined_call_operand.vmem [shape: f32[1,32], index: 2, kind: input, shape index: {}]   ;;  %s147_s3 = inlined_call_operand.vmem [shape: bf16[16,32], index: 3, kind: output, shape index: {}]  }
   0x1   :  { %v92_v0 = vld [vmem:[%s144_s0] sm:$0xff]   ;;  %98 = vrcp.f32 %v104_v5 }
   0x2   :  { %v93_v1 = vunpack.c.l.bf16 %v92_v0  ;;  %v94_v3 = vunpack.c.h.bf16 %v92_v0  ;;  %v96_v36 = vld [vmem:[%s145_s1] ss:$0 sm:$0xff] }
   0x3   :  { %v97_v39 = vld [vmem:[%s146_s2] ss:$0 sm:$0xff] }
   0x4   :  { %v19_v2 = vsel %vm18_vm0, %v93_v1, 0.0  ;;  %v22_v4 = vsel %vm18_vm0, %v94_v3, 0.0 }
   0x5   :  { %20 = vadd.xlane.f32.xlu0 %v19_v2 }
   0x7   :  { %v99_v6 = vpop.eup %98 }
   0x8   :  { %v26_v7 = vmul.f32 32.0, %v99_v6  ;;  %vm30_vm1 = vweird.f32 %v99_v6 }
   0xa   :  { %v27_v8 = vsub.f32 1.0, %v26_v7 }
   0xc   :  { %v28_v9 = vmul.f32 %v99_v6, %v27_v8 }
   0xd   :  { %23 = vadd.xlane.f32.xlu0 %v22_v4 }
   0xe   :  { %v29_v10 = vadd.f32 %v99_v6, %v28_v9 }
  0x10   :  { %v31_v11 = vsel %vm30_vm1, %v99_v6, %v29_v10 }
  0x78   :  { %v21_v12 = vpop.xlane.xlu0 %20 }
  0x79   :  { %v32_v13 = vmul.f32 %v31_v11, %v21_v12 }
  0x7b   :  { %v34_v14 = vsub.f32 %v93_v1, %v32_v13 }
  0x7d   :  { %v36_v15 = vmul.f32 %v34_v14, %v34_v14 }
  0x7f   :  { %v38_v16 = vsel %vm18_vm0, %v36_v15, 0.0 }
  0x80   :  { %39 = vadd.xlane.f32.xlu1 %v38_v16  ;;  %v24_v17 = vpop.xlane.xlu0 %23 }
  0x81   :  { %v33_v18 = vmul.f32 %v31_v11, %v24_v17 }
  0x83   :  { %v35_v19 = vsub.f32 %v94_v3, %v33_v18 }
  0x85   :  { %v37_v20 = vmul.f32 %v35_v19, %v35_v19 }
  0x87   :  { %v41_v21 = vsel %vm18_vm0, %v37_v20, 0.0 }
  0x88   :  { %42 = vadd.xlane.f32.xlu1 %v41_v21 }
  0xf3   :  { %v40_v22 = vpop.xlane.xlu1 %39 }
  0xf4   :  { %v44_v23 = vmul.f32 %v40_v22, %v31_v11 }
  0xf6   :  { %v46_v24 = vadd.f32 1e-06, %v44_v23 }
  0xf8   :  { %100 = vrsqrt.f32 %v46_v24  ;;  %vm54_vm3 = vweird.f32 %v46_v24 }
  0xfb   :  { %v43_v25 = vpop.xlane.xlu1 %42 }
  0xfc   :  { %v45_v26 = vmul.f32 %v43_v25, %v31_v11 }
  0xfe   :  { %v101_v27 = vpop.eup %100  ;;  %v47_v28 = vadd.f32 1e-06, %v45_v26 }
  0xff   :  { %v49_v29 = vmul.f32 %v101_v27, %v46_v24  ;;  %vm55_vm2 = vweird.f32 %v101_v27 }
 0x100   :  { %102 = vrsqrt.f32 %v47_v28  ;;  %vm56_vm4 = vmor %vm54_vm3, %vm55_vm2  ;;  %vm64_vm7 = vweird.f32 %v47_v28 }
 0x101   :  { %v50_v30 = vmul.f32 %v101_v27, %v49_v29 }
 0x103   :  { %v51_v31 = vmul.f32 0.5, %v50_v30 }
 0x105   :  { %v52_v32 = vsub.f32 1.5, %v51_v31 }
 0x106   :  { %v103_v33 = vpop.eup %102 }
 0x107   :  { %v53_v34 = vmul.f32 %v101_v27, %v52_v32  ;;  %v59_v35 = vmul.f32 %v103_v33, %v47_v28  ;;  %vm65_vm5 = vweird.f32 %v103_v33 }
 0x108   :  { %vm66_vm8 = vmor %vm64_vm7, %vm65_vm5 }
 0x109   :  { %v57_v37 = vsel %vm56_vm4, %v101_v27, %v53_v34  ;;  %v60_v38 = vmul.f32 %v103_v33, %v59_v35 }
 0x10a   :  { %v68_v40 = vmul.f32 %v57_v37, %v34_v14 }
 0x10b   :  { %v61_v41 = vmul.f32 0.5, %v60_v38 }
 0x10c   :  { %v74_v42 = vmul.f32 %v96_v36, %v68_v40 }
 0x10d   :  { %v62_v43 = vsub.f32 1.5, %v61_v41 }
 0x10e   :  { %v80_v44 = vadd.f32 %v97_v39, %v74_v42 }
 0x10f   :  { %v63_v45 = vmul.f32 %v103_v33, %v62_v43 }
 0x110   :  { %v82_v46 = vpack.c.bf16 %v80_v44, %v80_v44 }
 0x111   :  { %v67_v47 = vsel %vm66_vm8, %v103_v33, %v63_v45 }
 0x112   :  { %85 = vst.msk [vmem:[%s147_s3] sm:$0xf] %vm84_vm6, %v82_v46  ;;  %v69_v48 = vmul.f32 %v67_v47, %v35_v19 }
 0x114   :  { %v75_v49 = vmul.f32 %v96_v36, %v69_v48 }
 0x116   :  { %v81_v50 = vadd.f32 %v97_v39, %v75_v49 }
 0x118   :  { %v83_v51 = vpack.c.bf16 %v81_v50, %v81_v50 }
 0x11a   :  { %86 = vst.msk [vmem:[%s147_s3 + $0x4] sm:$0xf] %vm84_vm6, %v83_v51 }

// kernel: transformer_forward.58
= control target key start
LH: loop header
LB: loop body
LE: loop exit
PB: predicated region body
PF: predicated region fallthrough
CT: control target
= control target key end

     0   :  { %vm27_vm0 = vcmask 261120   ;;  %v117_v10 = vmov 32.0   ;;  %vm93_vm6 = vcmask 257024   ;;  %s165_s0 = inlined_call_operand.vmem [shape: bf16[16,32], index: 0, kind: input, shape index: {}]   ;;  %s166_s1 = inlined_call_operand.vmem [shape: bf16[16,32], index: 1, kind: input, shape index: {}]   ;;  %s167_s2 = inlined_call_operand.vmem [shape: f32[1,32], index: 2, kind: input, shape index: {}]   ;;  %s168_s3 = inlined_call_operand.vmem [shape: f32[1,32], index: 3, kind: input, shape index: {}]   ;;  %s169_s4 = inlined_call_operand.vmem [shape: bf16[16,32], index: 4, kind: output, shape index: {}]  }
   0x1   :  { %v101_v0 = vld [vmem:[%s165_s0] sm:$0xff]   ;;  %111 = vrcp.f32 %v117_v10 }
   0x2   :  { %v105_v1 = vld [vmem:[%s166_s1] sm:$0xff]   ;;  %v102_v2 = vunpack.c.l.bf16 %v101_v0  ;;  %v103_v5 = vunpack.c.h.bf16 %v101_v0 }
   0x3   :  { %v106_v3 = vunpack.c.l.bf16 %v105_v1  ;;  %v107_v6 = vunpack.c.h.bf16 %v105_v1  ;;  %v109_v41 = vld [vmem:[%s167_s2] ss:$0 sm:$0xff] }
   0x4   :  { %v110_v44 = vld [vmem:[%s168_s3] ss:$0 sm:$0xff] }
   0x5   :  { %v25_v4 = vadd.f32 %v106_v3, %v102_v2  ;;  %v26_v8 = vadd.f32 %v107_v6, %v103_v5 }
   0x7   :  { %v28_v7 = vsel %vm27_vm0, %v25_v4, 0.0  ;;  %v31_v9 = vsel %vm27_vm0, %v26_v8, 0.0  ;;  %v112_v11 = vpop.eup %111 }
   0x8   :  { %29 = vadd.xlane.f32.xlu0 %v28_v7  ;;  %v35_v12 = vmul.f32 32.0, %v112_v11  ;;  %vm39_vm1 = vweird.f32 %v112_v11 }
   0xa   :  { %v36_v13 = vsub.f32 1.0, %v35_v12 }
   0xc   :  { %v37_v14 = vmul.f32 %v112_v11, %v36_v13 }
   0xe   :  { %v38_v15 = vadd.f32 %v112_v11, %v37_v14 }
  0x10   :  { %32 = vadd.xlane.f32.xlu0 %v31_v9  ;;  %v40_v16 = vsel %vm39_vm1, %v112_v11, %v38_v15 }
  0x7b   :  { %v30_v17 = vpop.xlane.xlu0 %29 }
  0x7c   :  { %v41_v18 = vmul.f32 %v40_v16, %v30_v17 }
  0x7e   :  { %v43_v19 = vsub.f32 %v25_v4, %v41_v18 }
  0x80   :  { %v45_v20 = vmul.f32 %v43_v19, %v43_v19 }
  0x82   :  { %v47_v21 = vsel %vm27_vm0, %v45_v20, 0.0 }
  0x83   :  { %48 = vadd.xlane.f32.xlu1 %v47_v21  ;;  %v33_v22 = vpop.xlane.xlu0 %32 }
  0x84   :  { %v42_v23 = vmul.f32 %v40_v16, %v33_v22 }
  0x86   :  { %v44_v24 = vsub.f32 %v26_v8, %v42_v23 }
  0x88   :  { %v46_v25 = vmul.f32 %v44_v24, %v44_v24 }
  0x8a   :  { %v50_v26 = vsel %vm27_vm0, %v46_v25, 0.0 }
  0x8b   :  { %51 = vadd.xlane.f32.xlu1 %v50_v26 }
  0xf6   :  { %v49_v27 = vpop.xlane.xlu1 %48 }
  0xf7   :  { %v53_v28 = vmul.f32 %v49_v27, %v40_v16 }
  0xf9   :  { %v55_v29 = vadd.f32 1e-05, %v53_v28 }
  0xfb   :  { %113 = vrsqrt.f32 %v55_v29  ;;  %vm63_vm3 = vweird.f32 %v55_v29 }
  0xfe   :  { %v52_v30 = vpop.xlane.xlu1 %51 }
  0xff   :  { %v54_v31 = vmul.f32 %v52_v30, %v40_v16 }
 0x101   :  { %v114_v32 = vpop.eup %113  ;;  %v56_v33 = vadd.f32 1e-05, %v54_v31 }
 0x102   :  { %v58_v34 = vmul.f32 %v114_v32, %v55_v29  ;;  %vm64_vm2 = vweird.f32 %v114_v32 }
 0x103   :  { %115 = vrsqrt.f32 %v56_v33  ;;  %vm65_vm4 = vmor %vm63_vm3, %vm64_vm2  ;;  %vm73_vm7 = vweird.f32 %v56_v33 }
 0x104   :  { %v59_v35 = vmul.f32 %v114_v32, %v58_v34 }
 0x106   :  { %v60_v36 = vmul.f32 0.5, %v59_v35 }
 0x108   :  { %v61_v37 = vsub.f32 1.5, %v60_v36 }
 0x109   :  { %v116_v38 = vpop.eup %115 }
 0x10a   :  { %v62_v39 = vmul.f32 %v114_v32, %v61_v37  ;;  %v68_v40 = vmul.f32 %v116_v38, %v56_v33  ;;  %vm74_vm5 = vweird.f32 %v116_v38 }
 0x10b   :  { %vm75_vm8 = vmor %vm73_vm7, %vm74_vm5 }
 0x10c   :  { %v66_v42 = vsel %vm65_vm4, %v114_v32, %v62_v39  ;;  %v69_v43 = vmul.f32 %v116_v38, %v68_v40 }
 0x10d   :  { %v77_v45 = vmul.f32 %v66_v42, %v43_v19 }
 0x10e   :  { %v70_v46 = vmul.f32 0.5, %v69_v43 }
 0x10f   :  { %v83_v47 = vmul.f32 %v109_v41, %v77_v45 }
 0x110   :  { %v71_v48 = vsub.f32 1.5, %v70_v46 }
 0x111   :  { %v89_v49 = vadd.f32 %v110_v44, %v83_v47 }
 0x112   :  { %v72_v50 = vmul.f32 %v116_v38, %v71_v48 }
 0x113   :  { %v91_v51 = vpack.c.bf16 %v89_v49, %v89_v49 }
 0x114   :  { %v76_v52 = vsel %vm75_vm8, %v116_v38, %v72_v50 }
 0x115   :  { %94 = vst.msk [vmem:[%s169_s4] sm:$0xf] %vm93_vm6, %v91_v51  ;;  %v78_v53 = vmul.f32 %v76_v52, %v44_v24 }
 0x117   :  { %v84_v54 = vmul.f32 %v109_v41, %v78_v53 }
 0x119   :  { %v90_v55 = vadd.f32 %v110_v44, %v84_v54 }
 0x11b   :  { %v92_v56 = vpack.c.bf16 %v90_v55, %v90_v55 }
 0x11d   :  { %95 = vst.msk [vmem:[%s169_s4 + $0x4] sm:$0xf] %vm93_vm6, %v92_v56 }

// kernel: transformer_forward.57
= control target key start
LH: loop header
LB: loop body
LE: loop exit
PB: predicated region body
PF: predicated region fallthrough
CT: control target
= control target key end

     0   :  { %vm42_vm0 = vcmask 261120   ;;  %vm62_vm1 = vcmask 257024   ;;  %s124_s1 = inlined_call_operand.vmem [shape: bf16[32,32], index: 1, kind: input, shape index: {}]   ;;  %s125_s2 = inlined_call_operand.vmem [shape: f32[1,32], index: 2, kind: input, shape index: {}]   ;;  %s126_s0 = inlined_call_operand.vmem [shape: bf16[16,32], index: 0, kind: input, shape index: {}]   ;;  %s127_s3 = inlined_call_operand.vmem [shape: bf16[16,32], index: 3, kind: output, shape index: {}]  }
   0x1   :  { %v84_v0 = vld [vmem:[%s124_s1 + $0x8] sm:$0xff]  ;;  %v83_v1 = vld [vmem:[%s124_s1] sm:$0xff] }
   0x2   :  { %52 = vmatpush.bf16.msra.mxu0 %v84_v0  ;;  %v82_v2 = vld [vmem:[%s126_s0] sm:$0xff] }
   0x3   :  { %v85_v3 = vld [vmem:[%s125_s2] ss:$0 sm:$0xff] }
   0x6   :  { %53 = vmatpush.bf16.msra.mxu0 %v83_v1 }
   0x9   :  { %81 = vmatmul.msk.bf16.vlgmr.msra.gmra.mxu0 %vm42_vm0, %v82_v2 }
  0x86   :  { %v55_v4 = vpop.f32.mrf.mxu0 }
  0x87   :  { %v56_v5 = vadd.f32 %v85_v3, %v55_v4 }
  0x89   :  { %v60_v6 = vpack.c.bf16 %v56_v5, %v56_v5 }
  0x8b   :  { %63 = vst.msk [vmem:[%s127_s3] sm:$0xf] %vm62_vm1, %v60_v6 }
  0x8e   :  { %v57_v7 = vpop.f32.mrf.mxu0 }
  0x8f   :  { %v58_v8 = vadd.f32 %v85_v3, %v57_v7 }
  0x91   :  { %v61_v9 = vpack.c.bf16 %v58_v8, %v58_v8 }
  0x93   :  { %64 = vst.msk [vmem:[%s127_s3 + $0x4] sm:$0xf] %vm62_vm1, %v61_v9 }

// kernel: transformer_forward.56
= control target key start
LH: loop header
LB: loop body
LE: loop exit
PB: predicated region body
PF: predicated region fallthrough
CT: control target
= control target key end

     0   :  { %s1060_s15 = smov 0   ;;  %s1062_s16 = smov 0   ;;  %s1195_s0 = inlined_call_operand.vmem [shape: bf16[2,8,32], index: 0, kind: input, shape index: {}]   ;;  %s1196_s1 = inlined_call_operand.vmem [shape: bf16[2,8,32], index: 1, kind: input, shape index: {}]   ;;  %s1197_s2 = inlined_call_operand.vmem [shape: bf16[2,8,32], index: 2, kind: input, shape index: {}]   ;;  %s1198_s3 = inlined_call_operand.vmem [shape: bf16[1,8,8], index: 3, kind: input, shape index: {}]   ;;  %s1199_s4 = inlined_call_operand.vmem [shape: bf16[2,8,32], index: 4, kind: output, shape index: {}]  }
   0x1   :  { %s1064_s17 = smov 0  }
   0x2 LB: > { %s40_s18 = sadd.s32 1, %s1020_s16  ;;  %p927_p0 = scmp.ge.s32.totalorder %s1024_s17, 1  ;;  %s1024_s17 = sphi %s1064_s17, %s14_s17   ;;  %s1020_s16 = sphi %s1062_s16, %s1201_s16   ;;  %s1016_s15 = sphi %s1060_s15, %s1200_s15  }
   0x3   : > { %p42_p1 = scmp.ge.s32.totalorder %s40_s18, 2  ;;  %p253_p2 = scmp.lt.s32.totalorder %s1024_s17, 3 }
   0x5   : > { %s1203_s18 = smov (%p42_p1, %s40_s18), 0  ;;  %p254_p3 = pnand %p927_p0, %p253_p2 }
   0x6   : > { %p316_p4 = scmp.lt.s32.totalorder (!%p254_p3), %s1016_s15, 1  ;;  %s1027_s28 = smov (!%p254_p3), 112  }
   0x7   : > { %257 = sbr.rel (%p254_p3) target bundleno = 1135 (0x46f), region = 36  ;;  %s1028_s29 = smov (!%p254_p3), 104  }
   0x8   : > { %s1029_s30 = smov (!%p254_p3), 120   ;;  %s1032_s8 = smov (!%p254_p3), 8  }
   0x9   : > { %s1033_s9 = smov (!%p254_p3), 24   ;;  %s1034_s10 = smov (!%p254_p3), 16  }
   0xc   : > { %s1205_s15 = smov (!%p316_p4, %s1016_s15), 1  ;;  %vm377_vm0 = vcmask 64512   ;;  %vm368_vm1 = vcmask 7168   ;;  %v1026_v6 = vmov -inf   ;;  %v382_v7 = vld [vmem:[%s1198_s3] sm:$0xf] }
   0xd   : > { %s1078_s19 = sshll.u32 %s1205_s15, 2  ;;  %369 = vst.msk [vmem:[#allocation2] sm:$0xff] %vm368_vm1, %v1026_v6  ;;  %v1097_v9 = vunpack.c.l.bf16 %v382_v7  ;;  %v1030_v15 = vmov 0   ;;  %v1031_v16 = vmov 0.0   ;;  %vm445_vm2 = vcmask 1043456  }
   0xe   : > { %s335_s22 = scalar_lea.vmem %s1196_s1, %s1078_s19  ;;  %s325_s25 = scalar_lea.vmem %s1195_s0, %s1078_s19  ;;  %370 = vst.msk [vmem:[#allocation2 + $0x8] sm:$0xff] %vm368_vm1, %v1026_v6  ;;  %975 = vset.pattern.permute.xlu1 %v1030_v15  ;;  %976 = vset.pattern.permute.xlu2 %v1030_v15  ;;  %vm767_vm3 = vcmask 130048   ;;  %vm769_vm4 = vcmask 195584   ;;  %vm772_vm5 = vcmask 257024  }
   0xf   : > { %v385_v0 = vld [vmem:[%s335_s22] sm:$0xf]  ;;  %371 = vst.msk [vmem:[#allocation2 + $0x10] sm:$0xff] %vm368_vm1, %v1026_v6  ;;  %977 = vset.pattern.permute.xlu0 %v1030_v15  ;;  %s345_s7 = scalar_lea.vmem %s1197_s2, %s1078_s19  ;;  %s362_s13 = scalar_lea.vmem %s1199_s4, %s1078_s19 }
  0x10   : > { %v395_v1 = vsel %vm377_vm0, %v385_v0, 0  ;;  %v384_v2 = vld [vmem:[%s325_s25] sm:$0xf]  ;;  %372 = vst.msk [vmem:[#allocation2 + $0x18] sm:$0xff] %vm368_vm1, %v1026_v6  ;;  %v469_v8 = vunpack.c.l.b16 %v385_v0 }
  0x11   : > { %404 = vmatpush.bf16.xpose.msra.mxu0 %v395_v1  ;;  %v387_v3 = vunpack.c.l.bf16 %v384_v2  ;;  %373 = vst.msk [vmem:[#allocation3] sm:$0xff] %vm368_vm1, %v1031_v16  ;;  %v386_v24 = vld [vmem:[%s345_s7] sm:$0xf] }
  0x12   : > { %v470_v11 = vpack.c.b16 %v469_v8, %v469_v8  ;;  %374 = vst.msk [vmem:[#allocation3 + $0x8] sm:$0xff] %vm368_vm1, %v1031_v16  ;;  %v447_v25 = vsel %vm445_vm2, %v386_v24, 0  ;;  %v527_v50 = vunpack.c.l.b16 %v386_v24 }
  0x13   : > { %v388_v4 = vmul.f32 0.35355338, %v387_v3  ;;  %375 = vst.msk [vmem:[#allocation3 + $0x10] sm:$0xff] %vm368_vm1, %v1031_v16  ;;  %456 = vmatpush.bf16.msra.mxu1 %v447_v25 }
  0x14   : > { %555 = vrot.lane.b32.xlu2 %v470_v11, %s1027_s28  ;;  %376 = vst.msk [vmem:[#allocation3 + $0x18] sm:$0xff] %vm368_vm1, %v1031_v16  ;;  %v1113_v17 = vld [vmem:[#allocation2] sm:$0xff]  ;;  %v528_v52 = vpack.c.b16 %v527_v50, %v527_v50 }
  0x15   : > { %v389_v5 = vpack.c.bf16 %v388_v4, %v388_v4  ;;  %378 = vst.msk [vmem:[#allocation4] sm:$0xff] %vm377_vm0, %v1031_v16  ;;  %v493_v58 = vld [vmem:[#allocation2 + $0x8] sm:$0xff] }
  0x16   : > { %379 = vst.msk [vmem:[#allocation4 + $0x8] sm:$0xff] %vm377_vm0, %v1031_v16  ;;  %v577_v61 = vld [vmem:[#allocation2 + $0x10] sm:$0xff] }
  0x17   : > { %380 = vst.msk [vmem:[#allocation4 + $0x10] sm:$0xff] %vm377_vm0, %v1031_v16  ;;  %v658_v54 = vld [vmem:[#allocation2 + $0x18] sm:$0xff] }
  0x18   : > { %932 = vmatmul.msk.bf16.vlgmr.msra.gmra.mxu0 %vm377_vm0, %v389_v5  ;;  %381 = vst.msk [vmem:[#allocation4 + $0x18] sm:$0xff] %vm377_vm0, %v1031_v16  ;;  %v426_v8 = vld [vmem:[#allocation3] sm:$0xff] }
  0x1c   : > { %636 = vrot.lane.b32.xlu2 %v470_v11, %s1028_s29 }
  0x24   : > { %634 = vrot.lane.b32.xlu2 %v389_v5, %s1028_s29 }
  0x6e   : > { %v556_v23 = vpop.permute.xlu2 %555 }
  0x6f   : > { %v561_v26 = vsel %vm377_vm0, %v556_v23, 0 }
  0x70   : > { %570 = vmatpush.bf16.xpose.msrb.mxu1 %v561_v26 }
  0x76   : > { %v637_v27 = vpop.permute.xlu2 %636 }
  0x77   : > { %v642_v28 = vsel %vm377_vm0, %v637_v27, 0 }
  0x78   : > { %651 = vmatpush.bf16.xpose.msrb.mxu0 %v642_v28 }
  0x7e   : > { %v635_v29 = vpop.permute.xlu2 %634 }
  0x7f   : > { %938 = vmatmul.msk.bf16.vlgmr.msrb.gmra.mxu0 %vm377_vm0, %v635_v29  ;;  %v434_v29 = vld [vmem:[#allocation4] sm:$0xff] }
  0x95   : > { %v406_v10 = vpop.f32.mrf.mxu0 }
  0x96   : > { %v407_v12 = vadd.f32 %v406_v10, %v1097_v9 }
  0x98   : > { %v411_v13 = vsel %vm377_vm0, %v407_v12, -inf }
  0x99   : > { %412 = vmax.xlane.f32.xlu0 %v411_v13 }
  0x9d   : > { %v408_v14 = vpop.f32.mrf.mxu0 }
  0xad   : > { %471 = vrot.lane.b32.xlu0 %v470_v11, %s1029_s30 }
  0xfc   : > { %v653_v37 = vpop.f32.mrf.mxu0 }
  0xfd   : > { %v1138_v38 = vadd.f32 %v653_v37, %v1097_v9 }
  0xff   : > { %v659_v39 = vsel %vm377_vm0, %v1138_v38, -inf }
 0x100   : > { %660 = vmax.xlane.f32.xlu0 %v659_v39 }
 0x104   : > { %v655_v40 = vpop.f32.mrf.mxu0 }
 0x10c   : > { %v413_v18 = vpop.xlane.xlu0 %412 }
 0x10d   : > { %v1116_v19 = vmax.f32 %v1113_v17, %v413_v18 }
 0x10f   : > { %v415_v20 = vsub.f32 %v1113_v17, %v1116_v19  ;;  %464 = vst.msk [vmem:[#allocation2] sm:$0xff] %vm368_vm1, %v1116_v19  ;;  %420 = vperm.xlu1 %975, %v1116_v19  }
 0x111   : > { %v416_v63 = vmul.f32 1.442695, %v415_v20 }
 0x117   : > { %466 = vrot.lane.b32.xlu1 %v389_v5, %s1029_s30 }
 0x11f   : > { %553 = vrot.lane.b32.xlu1 %v389_v5, %s1027_s28  ;;  %v472_v21 = vpop.permute.xlu0 %471 }
 0x120   : > { %v477_v22 = vsel %vm377_vm0, %v472_v21, 0 }
 0x121   : > { %486 = vmatpush.bf16.xpose.msra.mxu2 %v477_v22 }
 0x173   : > { %v661_v55 = vpop.xlane.xlu0 %660 }
 0x174   : > { %v662_v56 = vmax.f32 %v658_v54, %v661_v55 }
 0x176   : > { %v663_v57 = vsub.f32 %v658_v54, %v662_v56  ;;  %714 = vst.msk [vmem:[#allocation2 + $0x18] sm:$0xff] %vm368_vm1, %v662_v56 }
 0x178   : > { %v664_v28 = vmul.f32 1.442695, %v663_v57 }
 0x181   : > { %v421_v30 = vpop.permute.xlu1 %420 }
 0x182   : > { %v423_v31 = vsub.f32 %v407_v12, %v421_v30 }
 0x184   : > { %v424_v32 = vmul.f32 1.442695, %v423_v31 }
 0x186   : > { %978 = vpow2.f32 %v424_v32 }
 0x187   : > { %980 = vpow2.f32 %v416_v63 }
 0x189   : > { %v467_v33 = vpop.permute.xlu1 %466 }
 0x18a   : > { %934 = vmatmul.msk.bf16.vlgmr.msra.gmra.mxu2 %vm377_vm0, %v467_v33 }
 0x18c   : > { %v979_v34 = vpop.eup %978 }
 0x18d   : > { %v441_v35 = vpack.c.bf16 %v979_v34, %v979_v34  ;;  %v428_v53 = vsel %vm377_vm0, %v979_v34, 0.0  ;;  %v981_v4 = vpop.eup %980 }
 0x18e   : > { %v427_v10 = vmul.f32 %v981_v4, %v426_v8 }
 0x18f   : > { %933 = vmatmul.msk.bf16.vlgmr.msra.gmra.mxu1 %vm377_vm0, %v441_v35 }
 0x191   : > { %v554_v36 = vpop.permute.xlu1 %553 }
 0x19f   : > { %936 = vmatmul.msk.bf16.vlgmr.msrb.gmra.mxu1 %vm377_vm0, %v554_v36 }
 0x20c   : > { %v1142_v41 = vpop.f32.mrf.mxu1 }
 0x20d   : > { %v488_v42 = vpop.f32.mrf.mxu2 }
 0x20e   : > { %v489_v43 = vadd.f32 %v488_v42, %v1097_v9 }
 0x210   : > { %v494_v44 = vsel %vm377_vm0, %v489_v43, -inf }
 0x211   : > { %495 = vmax.xlane.f32.xlu1 %v494_v44  ;;  %v510_v44 = vld [vmem:[#allocation3 + $0x8] sm:$0xff] }
 0x214   : > { %v460_v45 = vpop.f32.mrf.mxu1 }
 0x215   : > { %v490_v46 = vpop.f32.mrf.mxu2 }
 0x21c   : > { %v572_v47 = vpop.f32.mrf.mxu1 }
 0x21d   : > { %v1147_v48 = vadd.f32 %v572_v47, %v1097_v9 }
 0x21f   : > { %v578_v49 = vsel %vm377_vm0, %v1147_v48, -inf }
 0x220   : > { %579 = vmax.xlane.f32.xlu2 %v578_v49 }
 0x224   : > { %v574_v51 = vpop.f32.mrf.mxu1 }
 0x22a   : > { %529 = vrot.lane.b32.xlu1 %v528_v52, %s1029_s30 }
 0x232   : > { %610 = vrot.lane.b32.xlu1 %v528_v52, %s1027_s28 }
 0x25c   : > { %429 = vadd.xlane.f32.xlu1 %v428_v53  ;;  %v518_v53 = vld [vmem:[#allocation4 + $0x8] sm:$0xff] }
 0x284   : > { %v496_v59 = vpop.xlane.xlu1 %495 }
 0x285   : > { %v497_v60 = vmax.f32 %v493_v58, %v496_v59 }
 0x287   : > { %552 = vst.msk [vmem:[#allocation2 + $0x8] sm:$0xff] %vm368_vm1, %v497_v60  ;;  %503 = vperm.xlu2 %976, %v497_v60   ;;  %v498_v2 = vsub.f32 %v493_v58, %v497_v60  ;;  %v683_v60 = vld [vmem:[#allocation4 + $0x18] sm:$0xff] }
 0x289   : > { %v499_v3 = vmul.f32 1.442695, %v498_v2 }
 0x28b   : > { %982 = vpow2.f32 %v499_v3 }
 0x28f   : > { %668 = vperm.xlu2 %976, %v662_v56  }
 0x291   : > { %v983_v5 = vpop.eup %982 }
 0x292   : > { %v511_v45 = vmul.f32 %v983_v5, %v510_v44 }
 0x293   : > { %v580_v62 = vpop.xlane.xlu2 %579 }
 0x294   : > { %v581_v0 = vmax.f32 %v577_v61, %v580_v62 }
 0x296   : > { %v582_v1 = vsub.f32 %v577_v61, %v581_v0  ;;  %633 = vst.msk [vmem:[#allocation2 + $0x10] sm:$0xff] %vm368_vm1, %v581_v0  ;;  %587 = vperm.xlu0 %977, %v581_v0  }
 0x297   : > { %691 = vrot.lane.b32.xlu2 %v528_v52, %s1028_s29 }
 0x298   : > { %v583_v34 = vmul.f32 1.442695, %v582_v1 }
 0x29c   : > { %v530_v6 = vpop.permute.xlu1 %529 }
 0x29d   : > { %v535_v9 = vsel %vm445_vm2, %v530_v6, 0 }
 0x29e   : > { %544 = vmatpush.bf16.msra.mxu3 %v535_v9  ;;  %v602_v9 = vld [vmem:[#allocation4 + $0x10] sm:$0xff] }
 0x29f   : > { %437 = vperm.xlu2 %976, %v981_v4   ;;  %v594_v4 = vld [vmem:[#allocation3 + $0x10] sm:$0xff] }
 0x2a4   : > { %v611_v7 = vpop.permute.xlu1 %610 }
 0x2a5   : > { %v616_v22 = vsel %vm445_vm2, %v611_v7, 0 }
 0x2a6   : > { %625 = vmatpush.bf16.msrb.mxu3 %v616_v22 }
 0x2a7   : > { %521 = vperm.xlu2 %976, %v983_v5  }
 0x2cf   : > { %v430_v11 = vpop.xlane.xlu1 %429 }
 0x2d0   : > { %v431_v12 = vadd.f32 %v430_v11, %v427_v10 }
 0x2d2   : > { %433 = vst.msk [vmem:[#allocation3] sm:$0xff] %vm368_vm1, %v431_v12 }
 0x2e1   : > { %v504_v13 = vpop.permute.xlu2 %503 }
 0x2e2   : > { %v506_v14 = vsub.f32 %v489_v43, %v504_v13 }
 0x2e4   : > { %v507_v15 = vmul.f32 1.442695, %v506_v14 }
 0x2e6   : > { %984 = vpow2.f32 %v507_v15 }
 0x2e9   : > { %v669_v16 = vpop.permute.xlu2 %668 }
 0x2ea   : > { %v671_v17 = vsub.f32 %v1138_v38, %v669_v16 }
 0x2ec   : > { %v985_v18 = vpop.eup %984  ;;  %v672_v19 = vmul.f32 1.442695, %v671_v17 }
 0x2ed   : > { %v512_v20 = vsel %vm377_vm0, %v985_v18, 0.0  ;;  %v525_v21 = vpack.c.bf16 %v985_v18, %v985_v18 }
 0x2ee   : > { %986 = vpow2.f32 %v672_v19  ;;  %513 = vadd.xlane.f32.xlu0 %v512_v20 }
 0x2ef   : > { %935 = vmatmul.msk.bf16.vlgmr.msra.gmra.mxu3 %vm377_vm0, %v525_v21  ;;  %988 = vpow2.f32 %v664_v28 }
 0x2f0   : > { %990 = vpow2.f32 %v583_v34 }
 0x2f1   : > { %v692_v23 = vpop.permute.xlu2 %691 }
 0x2f2   : > { %v697_v24 = vsel %vm445_vm2, %v692_v23, 0 }
 0x2f3   : > { %706 = vmatpush.bf16.msrb.mxu2 %v697_v24 }
 0x2f4   : > { %v987_v25 = vpop.eup %986 }
 0x2f5   : > { %v677_v26 = vsel %vm377_vm0, %v987_v25, 0.0  ;;  %v690_v27 = vpack.c.bf16 %v987_v25, %v987_v25  ;;  %v989_v33 = vpop.eup %988 }
 0x2f6   : > { %678 = vadd.xlane.f32.xlu1 %v677_v26  ;;  %v991_v38 = vpop.eup %990 }
 0x2f7   : > { %939 = vmatmul.msk.bf16.vlgmr.msrb.gmra.mxu2 %vm377_vm0, %v690_v27  ;;  %v595_v5 = vmul.f32 %v991_v38, %v594_v4 }
 0x2f9   : > { %v438_v30 = vpop.permute.xlu2 %437 }
 0x2fa   : > { %v440_v31 = vmul.f32 %v438_v30, %v434_v29 }
 0x2fc   : > { %v462_v32 = vadd.f32 %v1142_v41, %v440_v31  ;;  %v719_v41 = vld [vmem:[#allocation3] sm:$0xff] }
 0x2fe   : > { %463 = vst.msk [vmem:[#allocation4] sm:$0xff] %vm377_vm0, %v462_v32 }
 0x301   : > { %v522_v54 = vpop.permute.xlu2 %521 }
 0x302   : > { %686 = vperm.xlu0 %977, %v989_v33   ;;  %v524_v55 = vmul.f32 %v522_v54, %v518_v53 }
 0x305   : > { %v718_v26 = vld [vmem:[#allocation4] sm:$0xff] }
 0x308   : > { %v588_v35 = vpop.permute.xlu0 %587 }
 0x309   : > { %v590_v36 = vsub.f32 %v1147_v48, %v588_v35  ;;  %v675_v48 = vld [vmem:[#allocation3 + $0x18] sm:$0xff] }
 0x30a   : > { %v676_v49 = vmul.f32 %v989_v33, %v675_v48 }
 0x30b   : > { %v591_v37 = vmul.f32 1.442695, %v590_v36 }
 0x30d   : > { %992 = vpow2.f32 %v591_v37 }
 0x30e   : > { %994 = vrcp.f32 %v719_v41 }
 0x30f   : > { %605 = vperm.xlu1 %975, %v991_v38  }
 0x313   : > { %v993_v39 = vpop.eup %992 }
 0x314   : > { %v596_v40 = vsel %vm377_vm0, %v993_v39, 0.0  ;;  %v609_v42 = vpack.c.bf16 %v993_v39, %v993_v39  ;;  %v995_v43 = vpop.eup %994 }
 0x315   : > { %597 = vadd.xlane.f32.xlu2 %v596_v40 }
 0x316   : > { %937 = vmatmul.msk.bf16.vlgmr.msrb.gmra.mxu3 %vm377_vm0, %v609_v42 }
 0x32d   : > { %723 = vperm.xlu2 %976, %v995_v43  }
 0x361   : > { %v514_v46 = vpop.xlane.xlu0 %513 }
 0x362   : > { %v515_v47 = vadd.f32 %v514_v46, %v511_v45 }
 0x364   : > { %516 = vst.msk [vmem:[#allocation3 + $0x8] sm:$0xff] %vm368_vm1, %v515_v47 }
 0x369   : > { %v679_v50 = vpop.xlane.xlu1 %678 }
 0x36a   : > { %v680_v51 = vadd.f32 %v679_v50, %v676_v49 }
 0x36b   : > { %v728_v52 = vld [vmem:[#allocation3 + $0x8] sm:$0xff] }
 0x36c   : > { %681 = vst.msk [vmem:[#allocation3 + $0x18] sm:$0xff] %vm368_vm1, %v680_v51  ;;  %996 = vrcp.f32 %v728_v52 }
 0x372   : > { %v997_v56 = vpop.eup %996  ;;  %v546_v57 = vpop.f32.mrf.mxu3 }
 0x373   : > { %v550_v58 = vadd.f32 %v546_v57, %v524_v55  ;;  %732 = vperm.xlu0 %977, %v997_v56   ;;  %v746_v59 = vld [vmem:[#allocation3 + $0x18] sm:$0xff] }
 0x374   : > { %998 = vrcp.f32 %v746_v59  ;;  %v687_v61 = vpop.permute.xlu0 %686 }
 0x375   : > { %551 = vst.msk [vmem:[#allocation4 + $0x8] sm:$0xff] %vm377_vm0, %v550_v58  ;;  %v689_v62 = vmul.f32 %v687_v61, %v683_v60 }
 0x37a   : > { %v999_v63 = vpop.eup %998  ;;  %v548_v0 = vpop.f32.mrf.mxu3 }
 0x37b   : > { %v708_v1 = vpop.f32.mrf.mxu2  ;;  %750 = vperm.xlu0 %977, %v999_v63  }
 0x37c   : > { %v712_v2 = vadd.f32 %v708_v1, %v689_v62  ;;  %v727_v16 = vld [vmem:[#allocation4 + $0x8] sm:$0xff] }
 0x37e   : > { %713 = vst.msk [vmem:[#allocation4 + $0x18] sm:$0xff] %vm377_vm0, %v712_v2 }
 0x381   : > { %v606_v10 = vpop.permute.xlu1 %605 }
 0x382   : > { %v608_v11 = vmul.f32 %v606_v10, %v602_v9 }
 0x383   : > { %v710_v3 = vpop.f32.mrf.mxu2 }
 0x385   : > { %v745_v19 = vld [vmem:[#allocation4 + $0x18] sm:$0xff] }
 0x388   : > { %v598_v6 = vpop.xlane.xlu2 %597 }
 0x389   : > { %v599_v7 = vadd.f32 %v598_v6, %v595_v5 }
 0x38b   : > { %600 = vst.msk [vmem:[#allocation3 + $0x10] sm:$0xff] %vm368_vm1, %v599_v7 }
 0x390   : > { %v724_v25 = vpop.permute.xlu2 %723 }
 0x391   : > { %v726_v28 = vmul.f32 %v724_v25, %v718_v26 }
 0x392   : > { %v737_v8 = vld [vmem:[#allocation3 + $0x10] sm:$0xff] }
 0x393   : > { %1000 = vrcp.f32 %v737_v8 }
 0x399   : > { %v1001_v12 = vpop.eup %1000  ;;  %v627_v13 = vpop.f32.mrf.mxu3 }
 0x39a   : > { %v631_v14 = vadd.f32 %v627_v13, %v608_v11  ;;  %741 = vperm.xlu1 %975, %v1001_v12  }
 0x39c   : > { %632 = vst.msk [vmem:[#allocation4 + $0x10] sm:$0xff] %vm377_vm0, %v631_v14 }
 0x3a1   : > { %v629_v15 = vpop.f32.mrf.mxu3 }
 0x3a3   : > { %v736_v22 = vld [vmem:[#allocation4 + $0x10] sm:$0xff] }
 0x3e5   : > { %v733_v17 = vpop.permute.xlu0 %732 }
 0x3e6   : > { %v735_v18 = vmul.f32 %v733_v17, %v727_v16 }
 0x3e8   : > { %755 = vrot.lane.b32.xlu1 %v735_v18, %s1032_s8 }
 0x3ed   : > { %v751_v20 = vpop.permute.xlu0 %750 }
 0x3ee   : > { %v753_v21 = vmul.f32 %v751_v20, %v745_v19 }
 0x3f0   : > { %763 = vrot.lane.b32.xlu0 %v753_v21, %s1033_s9 }
 0x40c   : > { %v742_v23 = vpop.permute.xlu1 %741 }
 0x40d   : > { %v744_v24 = vmul.f32 %v742_v23, %v736_v22 }
 0x40f   : > { %759 = vrot.lane.b32.xlu2 %v744_v24, %s1034_s10 }
 0x45a   : > { %v756_v27 = vpop.permute.xlu1 %755 }
 0x45b   : > { %v766_v29 = vsel %vm377_vm0, %v726_v28, %v756_v27 }
 0x462   : > { %v764_v31 = vpop.permute.xlu0 %763 }
 0x469   : > { %v760_v30 = vpop.permute.xlu2 %759 }
 0x46a   : > { %v768_v32 = vsel %vm767_vm3, %v766_v29, %v760_v30 }
 0x46b   : > { %v770_v33 = vsel %vm769_vm4, %v768_v32, %v764_v31 }
 0x46c   : > { %v771_v34 = vpack.c.bf16 %v770_v33, %v770_v33 }
 0x46e   : > { %773 = vst.msk [vmem:[%s362_s13] sm:$0xf] %vm772_vm5, %v771_v34 }
 0x46f PF: > { %s14_s17 = sadd.s32 1, %s1024_s17   ;;  %s1200_s15 = smov %s1020_s16 }
 0x470   : > { %p11_p5 = scmp.ge.s32.totalorder %s14_s17, 4   ;;  %s1201_s16 = smov %s1203_s18 }
 0x472   :  { %13 = sbr.rel (!%p11_p5) target bundleno = 2 (0x2), region = 92 }

// kernel: transformer_forward.41
= control target key start
LH: loop header
LB: loop body
LE: loop exit
PB: predicated region body
PF: predicated region fallthrough
CT: control target
= control target key end

     0   :  { %s1050_s15 = smov 0   ;;  %s1052_s16 = smov 0   ;;  %s1185_s0 = inlined_call_operand.vmem [shape: bf16[2,8,32], index: 0, kind: input, shape index: {}]   ;;  %s1186_s1 = inlined_call_operand.vmem [shape: bf16[2,8,32], index: 1, kind: input, shape index: {}]   ;;  %s1187_s2 = inlined_call_operand.vmem [shape: bf16[2,8,32], index: 2, kind: input, shape index: {}]   ;;  %s1188_s3 = inlined_call_operand.vmem [shape: bf16[2,1,8], index: 3, kind: input, shape index: {}]   ;;  %s1189_s4 = inlined_call_operand.vmem [shape: bf16[2,8,32], index: 4, kind: output, shape index: {}]  }
   0x1   :  { %s1054_s17 = smov 0  }
   0x2 LB: > { %s40_s18 = sadd.s32 1, %s1010_s16  ;;  %p917_p0 = scmp.ge.s32.totalorder %s1014_s17, 1  ;;  %s1014_s17 = sphi %s1054_s17, %s14_s17   ;;  %s1010_s16 = sphi %s1052_s16, %s1191_s16   ;;  %s1006_s15 = sphi %s1050_s15, %s1190_s15  }
   0x3   : > { %p42_p1 = scmp.ge.s32.totalorder %s40_s18, 2  ;;  %p252_p2 = scmp.lt.s32.totalorder %s1014_s17, 3 }
   0x5   : > { %s1193_s18 = smov (%p42_p1, %s40_s18), 0  ;;  %p253_p3 = pnand %p917_p0, %p252_p2 }
   0x6   : > { %p314_p4 = scmp.lt.s32.totalorder (!%p253_p3), %s1006_s15, 1  ;;  %s1017_s29 = smov (!%p253_p3), 112  }
   0x7   : > { %256 = sbr.rel (%p253_p3) target bundleno = 1135 (0x46f), region = 36  ;;  %s1018_s30 = smov (!%p253_p3), 104  }
   0x8   : > { %s1019_s5 = smov (!%p253_p3), 120   ;;  %s1022_s9 = smov (!%p253_p3), 8  }
   0x9   : > { %s1023_s10 = smov (!%p253_p3), 24   ;;  %s1024_s11 = smov (!%p253_p3), 16  }
   0xc   : > { %s1195_s15 = smov (!%p314_p4, %s1006_s15), 1  ;;  %vm374_vm0 = vcmask 64512   ;;  %vm365_vm1 = vcmask 7168   ;;  %v1016_v6 = vmov -inf   ;;  %v1020_v16 = vmov 0  }
   0xd   : > { %s1068_s19 = sshll.u32 %s1195_s15, 2  ;;  %366 = vst.msk [vmem:[#allocation2] sm:$0xff] %vm365_vm1, %v1016_v6  ;;  %s349_s28 = scalar_lea.vmem %s1188_s3, %s1195_s15  ;;  %965 = vset.pattern.permute.xlu1 %v1020_v16  ;;  %966 = vset.pattern.permute.xlu2 %v1020_v16  ;;  %v1021_v17 = vmov 0.0   ;;  %vm443_vm2 = vcmask 1043456   ;;  %vm765_vm3 = vcmask 130048   ;;  %vm767_vm4 = vcmask 195584  }
   0xe   : > { %s333_s22 = scalar_lea.vmem %s1186_s1, %s1068_s19  ;;  %s323_s25 = scalar_lea.vmem %s1185_s0, %s1068_s19  ;;  %367 = vst.msk [vmem:[#allocation2 + $0x8] sm:$0xff] %vm365_vm1, %v1016_v6  ;;  %v379_v7 = vld [vmem:[%s349_s28] sm:$0x1]  ;;  %967 = vset.pattern.permute.xlu0 %v1020_v16  ;;  %vm770_vm5 = vcmask 257024  }
   0xf   : > { %v382_v0 = vld [vmem:[%s333_s22] sm:$0xf]  ;;  %368 = vst.msk [vmem:[#allocation2 + $0x10] sm:$0xff] %vm365_vm1, %v1016_v6  ;;  %v380_v8 = vunpack.c.l.bf16 %v379_v7  ;;  %s343_s8 = scalar_lea.vmem %s1187_s2, %s1068_s19  ;;  %s359_s14 = scalar_lea.vmem %s1189_s4, %s1068_s19 }
  0x10   : > { %v393_v1 = vsel %vm374_vm0, %v382_v0, 0  ;;  %v381_v2 = vld [vmem:[%s323_s25] sm:$0xf]  ;;  %369 = vst.msk [vmem:[#allocation2 + $0x18] sm:$0xff] %vm365_vm1, %v1016_v6  ;;  %v467_v9 = vunpack.c.l.b16 %v382_v0 }
  0x11   : > { %402 = vmatpush.bf16.xpose.msra.mxu0 %v393_v1  ;;  %v384_v3 = vunpack.c.l.bf16 %v381_v2  ;;  %v1087_v10 = vperm.slane %v380_v8, 0  ;;  %370 = vst.msk [vmem:[#allocation3] sm:$0xff] %vm365_vm1, %v1021_v17  ;;  %v383_v25 = vld [vmem:[%s343_s8] sm:$0xf] }
  0x12   : > { %v468_v12 = vpack.c.b16 %v467_v9, %v467_v9  ;;  %371 = vst.msk [vmem:[#allocation3 + $0x8] sm:$0xff] %vm365_vm1, %v1021_v17  ;;  %v445_v26 = vsel %vm443_vm2, %v383_v25, 0  ;;  %v525_v51 = vunpack.c.l.b16 %v383_v25 }
  0x13   : > { %v385_v4 = vmul.f32 0.35355338, %v384_v3  ;;  %372 = vst.msk [vmem:[#allocation3 + $0x10] sm:$0xff] %vm365_vm1, %v1021_v17  ;;  %454 = vmatpush.bf16.msra.mxu1 %v445_v26 }
  0x14   : > { %553 = vrot.lane.b32.xlu2 %v468_v12, %s1017_s29  ;;  %373 = vst.msk [vmem:[#allocation3 + $0x18] sm:$0xff] %vm365_vm1, %v1021_v17  ;;  %v1103_v18 = vld [vmem:[#allocation2] sm:$0xff]  ;;  %v526_v53 = vpack.c.b16 %v525_v51, %v525_v51 }
  0x15   : > { %v386_v5 = vpack.c.bf16 %v385_v4, %v385_v4  ;;  %375 = vst.msk [vmem:[#allocation4] sm:$0xff] %vm374_vm0, %v1021_v17  ;;  %v491_v59 = vld [vmem:[#allocation2 + $0x8] sm:$0xff] }
  0x16   : > { %376 = vst.msk [vmem:[#allocation4 + $0x8] sm:$0xff] %vm374_vm0, %v1021_v17  ;;  %v575_v62 = vld [vmem:[#allocation2 + $0x10] sm:$0xff] }
  0x17   : > { %377 = vst.msk [vmem:[#allocation4 + $0x10] sm:$0xff] %vm374_vm0, %v1021_v17  ;;  %v656_v55 = vld [vmem:[#allocation2 + $0x18] sm:$0xff] }
  0x18   : > { %922 = vmatmul.msk.bf16.vlgmr.msra.gmra.mxu0 %vm374_vm0, %v386_v5  ;;  %378 = vst.msk [vmem:[#allocation4 + $0x18] sm:$0xff] %vm374_vm0, %v1021_v17  ;;  %v424_v9 = vld [vmem:[#allocation3] sm:$0xff] }
  0x1c   : > { %634 = vrot.lane.b32.xlu2 %v468_v12, %s1018_s30 }
  0x24   : > { %632 = vrot.lane.b32.xlu2 %v386_v5, %s1018_s30 }
  0x6e   : > { %v554_v24 = vpop.permute.xlu2 %553 }
  0x6f   : > { %v559_v27 = vsel %vm374_vm0, %v554_v24, 0 }
  0x70   : > { %568 = vmatpush.bf16.xpose.msrb.mxu1 %v559_v27 }
  0x76   : > { %v635_v28 = vpop.permute.xlu2 %634 }
  0x77   : > { %v640_v29 = vsel %vm374_vm0, %v635_v28, 0 }
  0x78   : > { %649 = vmatpush.bf16.xpose.msrb.mxu0 %v640_v29 }
  0x7e   : > { %v633_v30 = vpop.permute.xlu2 %632 }
  0x7f   : > { %928 = vmatmul.msk.bf16.vlgmr.msrb.gmra.mxu0 %vm374_vm0, %v633_v30  ;;  %v432_v30 = vld [vmem:[#allocation4] sm:$0xff] }
  0x95   : > { %v404_v11 = vpop.f32.mrf.mxu0 }
  0x96   : > { %v405_v13 = vadd.f32 %v404_v11, %v1087_v10 }
  0x98   : > { %v409_v14 = vsel %vm374_vm0, %v405_v13, -inf }
  0x99   : > { %410 = vmax.xlane.f32.xlu0 %v409_v14 }
  0x9d   : > { %v406_v15 = vpop.f32.mrf.mxu0 }
  0xad   : > { %469 = vrot.lane.b32.xlu0 %v468_v12, %s1019_s5 }
  0xfc   : > { %v651_v38 = vpop.f32.mrf.mxu0 }
  0xfd   : > { %v1128_v39 = vadd.f32 %v651_v38, %v1087_v10 }
  0xff   : > { %v657_v40 = vsel %vm374_vm0, %v1128_v39, -inf }
 0x100   : > { %658 = vmax.xlane.f32.xlu0 %v657_v40 }
 0x104   : > { %v653_v41 = vpop.f32.mrf.mxu0 }
 0x10c   : > { %v411_v19 = vpop.xlane.xlu0 %410 }
 0x10d   : > { %v1106_v20 = vmax.f32 %v1103_v18, %v411_v19 }
 0x10f   : > { %v413_v21 = vsub.f32 %v1103_v18, %v1106_v20  ;;  %462 = vst.msk [vmem:[#allocation2] sm:$0xff] %vm365_vm1, %v1106_v20  ;;  %418 = vperm.xlu1 %965, %v1106_v20  }
 0x111   : > { %v414_v0 = vmul.f32 1.442695, %v413_v21 }
 0x117   : > { %464 = vrot.lane.b32.xlu1 %v386_v5, %s1019_s5 }
 0x11f   : > { %551 = vrot.lane.b32.xlu1 %v386_v5, %s1017_s29  ;;  %v470_v22 = vpop.permute.xlu0 %469 }
 0x120   : > { %v475_v23 = vsel %vm374_vm0, %v470_v22, 0 }
 0x121   : > { %484 = vmatpush.bf16.xpose.msra.mxu2 %v475_v23 }
 0x173   : > { %v659_v56 = vpop.xlane.xlu0 %658 }
 0x174   : > { %v660_v57 = vmax.f32 %v656_v55, %v659_v56 }
 0x176   : > { %v661_v58 = vsub.f32 %v656_v55, %v660_v57  ;;  %712 = vst.msk [vmem:[#allocation2 + $0x18] sm:$0xff] %vm365_vm1, %v660_v57 }
 0x178   : > { %v662_v29 = vmul.f32 1.442695, %v661_v58 }
 0x181   : > { %v419_v31 = vpop.permute.xlu1 %418 }
 0x182   : > { %v421_v32 = vsub.f32 %v405_v13, %v419_v31 }
 0x184   : > { %v422_v33 = vmul.f32 1.442695, %v421_v32 }
 0x186   : > { %968 = vpow2.f32 %v422_v33 }
 0x187   : > { %970 = vpow2.f32 %v414_v0 }
 0x189   : > { %v465_v34 = vpop.permute.xlu1 %464 }
 0x18a   : > { %924 = vmatmul.msk.bf16.vlgmr.msra.gmra.mxu2 %vm374_vm0, %v465_v34 }
 0x18c   : > { %v969_v35 = vpop.eup %968 }
 0x18d   : > { %v439_v36 = vpack.c.bf16 %v969_v35, %v969_v35  ;;  %v426_v54 = vsel %vm374_vm0, %v969_v35, 0.0  ;;  %v971_v5 = vpop.eup %970 }
 0x18e   : > { %v425_v11 = vmul.f32 %v971_v5, %v424_v9 }
 0x18f   : > { %923 = vmatmul.msk.bf16.vlgmr.msra.gmra.mxu1 %vm374_vm0, %v439_v36 }
 0x191   : > { %v552_v37 = vpop.permute.xlu1 %551 }
 0x19f   : > { %926 = vmatmul.msk.bf16.vlgmr.msrb.gmra.mxu1 %vm374_vm0, %v552_v37 }
 0x20c   : > { %v1132_v42 = vpop.f32.mrf.mxu1 }
 0x20d   : > { %v486_v43 = vpop.f32.mrf.mxu2 }
 0x20e   : > { %v487_v44 = vadd.f32 %v486_v43, %v1087_v10 }
 0x210   : > { %v492_v45 = vsel %vm374_vm0, %v487_v44, -inf }
 0x211   : > { %493 = vmax.xlane.f32.xlu1 %v492_v45  ;;  %v508_v45 = vld [vmem:[#allocation3 + $0x8] sm:$0xff] }
 0x214   : > { %v458_v46 = vpop.f32.mrf.mxu1 }
 0x215   : > { %v488_v47 = vpop.f32.mrf.mxu2 }
 0x21c   : > { %v570_v48 = vpop.f32.mrf.mxu1 }
 0x21d   : > { %v1137_v49 = vadd.f32 %v570_v48, %v1087_v10 }
 0x21f   : > { %v576_v50 = vsel %vm374_vm0, %v1137_v49, -inf }
 0x220   : > { %577 = vmax.xlane.f32.xlu2 %v576_v50 }
 0x224   : > { %v572_v52 = vpop.f32.mrf.mxu1 }
 0x22a   : > { %527 = vrot.lane.b32.xlu1 %v526_v53, %s1019_s5 }
 0x232   : > { %608 = vrot.lane.b32.xlu1 %v526_v53, %s1017_s29 }
 0x25c   : > { %427 = vadd.xlane.f32.xlu1 %v426_v54  ;;  %v516_v54 = vld [vmem:[#allocation4 + $0x8] sm:$0xff] }
 0x284   : > { %v494_v60 = vpop.xlane.xlu1 %493 }
 0x285   : > { %v495_v61 = vmax.f32 %v491_v59, %v494_v60 }
 0x287   : > { %550 = vst.msk [vmem:[#allocation2 + $0x8] sm:$0xff] %vm365_vm1, %v495_v61  ;;  %501 = vperm.xlu2 %966, %v495_v61   ;;  %v496_v3 = vsub.f32 %v491_v59, %v495_v61  ;;  %v681_v61 = vld [vmem:[#allocation4 + $0x18] sm:$0xff] }
 0x289   : > { %v497_v4 = vmul.f32 1.442695, %v496_v3 }
 0x28b   : > { %972 = vpow2.f32 %v497_v4 }
 0x28f   : > { %666 = vperm.xlu2 %966, %v660_v57  }
 0x291   : > { %v973_v6 = vpop.eup %972 }
 0x292   : > { %v509_v46 = vmul.f32 %v973_v6, %v508_v45 }
 0x293   : > { %v578_v63 = vpop.xlane.xlu2 %577 }
 0x294   : > { %v579_v1 = vmax.f32 %v575_v62, %v578_v63 }
 0x296   : > { %v580_v2 = vsub.f32 %v575_v62, %v579_v1  ;;  %631 = vst.msk [vmem:[#allocation2 + $0x10] sm:$0xff] %vm365_vm1, %v579_v1  ;;  %585 = vperm.xlu0 %967, %v579_v1  }
 0x297   : > { %689 = vrot.lane.b32.xlu2 %v526_v53, %s1018_s30 }
 0x298   : > { %v581_v35 = vmul.f32 1.442695, %v580_v2 }
 0x29c   : > { %v528_v7 = vpop.permute.xlu1 %527 }
 0x29d   : > { %v533_v10 = vsel %vm443_vm2, %v528_v7, 0 }
 0x29e   : > { %542 = vmatpush.bf16.msra.mxu3 %v533_v10  ;;  %v600_v10 = vld [vmem:[#allocation4 + $0x10] sm:$0xff] }
 0x29f   : > { %435 = vperm.xlu2 %966, %v971_v5   ;;  %v592_v5 = vld [vmem:[#allocation3 + $0x10] sm:$0xff] }
 0x2a4   : > { %v609_v8 = vpop.permute.xlu1 %608 }
 0x2a5   : > { %v614_v23 = vsel %vm443_vm2, %v609_v8, 0 }
 0x2a6   : > { %623 = vmatpush.bf16.msrb.mxu3 %v614_v23 }
 0x2a7   : > { %519 = vperm.xlu2 %966, %v973_v6  }
 0x2cf   : > { %v428_v12 = vpop.xlane.xlu1 %427 }
 0x2d0   : > { %v429_v13 = vadd.f32 %v428_v12, %v425_v11 }
 0x2d2   : > { %431 = vst.msk [vmem:[#allocation3] sm:$0xff] %vm365_vm1, %v429_v13 }
 0x2e1   : > { %v502_v14 = vpop.permute.xlu2 %501 }
 0x2e2   : > { %v504_v15 = vsub.f32 %v487_v44, %v502_v14 }
 0x2e4   : > { %v505_v16 = vmul.f32 1.442695, %v504_v15 }
 0x2e6   : > { %974 = vpow2.f32 %v505_v16 }
 0x2e9   : > { %v667_v17 = vpop.permute.xlu2 %666 }
 0x2ea   : > { %v669_v18 = vsub.f32 %v1128_v39, %v667_v17 }
 0x2ec   : > { %v975_v19 = vpop.eup %974  ;;  %v670_v20 = vmul.f32 1.442695, %v669_v18 }
 0x2ed   : > { %v510_v21 = vsel %vm374_vm0, %v975_v19, 0.0  ;;  %v523_v22 = vpack.c.bf16 %v975_v19, %v975_v19 }
 0x2ee   : > { %976 = vpow2.f32 %v670_v20  ;;  %511 = vadd.xlane.f32.xlu0 %v510_v21 }
 0x2ef   : > { %925 = vmatmul.msk.bf16.vlgmr.msra.gmra.mxu3 %vm374_vm0, %v523_v22  ;;  %978 = vpow2.f32 %v662_v29 }
 0x2f0   : > { %980 = vpow2.f32 %v581_v35 }
 0x2f1   : > { %v690_v24 = vpop.permute.xlu2 %689 }
 0x2f2   : > { %v695_v25 = vsel %vm443_vm2, %v690_v24, 0 }
 0x2f3   : > { %704 = vmatpush.bf16.msrb.mxu2 %v695_v25 }
 0x2f4   : > { %v977_v26 = vpop.eup %976 }
 0x2f5   : > { %v675_v27 = vsel %vm374_vm0, %v977_v26, 0.0  ;;  %v688_v28 = vpack.c.bf16 %v977_v26, %v977_v26  ;;  %v979_v34 = vpop.eup %978 }
 0x2f6   : > { %676 = vadd.xlane.f32.xlu1 %v675_v27  ;;  %v981_v39 = vpop.eup %980 }
 0x2f7   : > { %929 = vmatmul.msk.bf16.vlgmr.msrb.gmra.mxu2 %vm374_vm0, %v688_v28  ;;  %v593_v6 = vmul.f32 %v981_v39, %v592_v5 }
 0x2f9   : > { %v436_v31 = vpop.permute.xlu2 %435 }
 0x2fa   : > { %v438_v32 = vmul.f32 %v436_v31, %v432_v30 }
 0x2fc   : > { %v460_v33 = vadd.f32 %v1132_v42, %v438_v32  ;;  %v717_v42 = vld [vmem:[#allocation3] sm:$0xff] }
 0x2fe   : > { %461 = vst.msk [vmem:[#allocation4] sm:$0xff] %vm374_vm0, %v460_v33 }
 0x301   : > { %v520_v55 = vpop.permute.xlu2 %519 }
 0x302   : > { %684 = vperm.xlu0 %967, %v979_v34   ;;  %v522_v56 = vmul.f32 %v520_v55, %v516_v54 }
 0x305   : > { %v716_v27 = vld [vmem:[#allocation4] sm:$0xff] }
 0x308   : > { %v586_v36 = vpop.permute.xlu0 %585 }
 0x309   : > { %v588_v37 = vsub.f32 %v1137_v49, %v586_v36  ;;  %v673_v49 = vld [vmem:[#allocation3 + $0x18] sm:$0xff] }
 0x30a   : > { %v674_v50 = vmul.f32 %v979_v34, %v673_v49 }
 0x30b   : > { %v589_v38 = vmul.f32 1.442695, %v588_v37 }
 0x30d   : > { %982 = vpow2.f32 %v589_v38 }
 0x30e   : > { %984 = vrcp.f32 %v717_v42 }
 0x30f   : > { %603 = vperm.xlu1 %965, %v981_v39  }
 0x313   : > { %v983_v40 = vpop.eup %982 }
 0x314   : > { %v594_v41 = vsel %vm374_vm0, %v983_v40, 0.0  ;;  %v607_v43 = vpack.c.bf16 %v983_v40, %v983_v40  ;;  %v985_v44 = vpop.eup %984 }
 0x315   : > { %595 = vadd.xlane.f32.xlu2 %v594_v41 }
 0x316   : > { %927 = vmatmul.msk.bf16.vlgmr.msrb.gmra.mxu3 %vm374_vm0, %v607_v43 }
 0x32d   : > { %721 = vperm.xlu2 %966, %v985_v44  }
 0x361   : > { %v512_v47 = vpop.xlane.xlu0 %511 }
 0x362   : > { %v513_v48 = vadd.f32 %v512_v47, %v509_v46 }
 0x364   : > { %514 = vst.msk [vmem:[#allocation3 + $0x8] sm:$0xff] %vm365_vm1, %v513_v48 }
 0x369   : > { %v677_v51 = vpop.xlane.xlu1 %676 }
 0x36a   : > { %v678_v52 = vadd.f32 %v677_v51, %v674_v50 }
 0x36b   : > { %v726_v53 = vld [vmem:[#allocation3 + $0x8] sm:$0xff] }
 0x36c   : > { %679 = vst.msk [vmem:[#allocation3 + $0x18] sm:$0xff] %vm365_vm1, %v678_v52  ;;  %986 = vrcp.f32 %v726_v53 }
 0x372   : > { %v987_v57 = vpop.eup %986  ;;  %v544_v58 = vpop.f32.mrf.mxu3 }
 0x373   : > { %v548_v59 = vadd.f32 %v544_v58, %v522_v56  ;;  %730 = vperm.xlu0 %967, %v987_v57   ;;  %v744_v60 = vld [vmem:[#allocation3 + $0x18] sm:$0xff] }
 0x374   : > { %988 = vrcp.f32 %v744_v60  ;;  %v685_v62 = vpop.permute.xlu0 %684 }
 0x375   : > { %549 = vst.msk [vmem:[#allocation4 + $0x8] sm:$0xff] %vm374_vm0, %v548_v59  ;;  %v687_v63 = vmul.f32 %v685_v62, %v681_v61 }
 0x37a   : > { %v989_v0 = vpop.eup %988  ;;  %v546_v1 = vpop.f32.mrf.mxu3 }
 0x37b   : > { %v706_v2 = vpop.f32.mrf.mxu2  ;;  %748 = vperm.xlu0 %967, %v989_v0  }
 0x37c   : > { %v710_v3 = vadd.f32 %v706_v2, %v687_v63  ;;  %v725_v17 = vld [vmem:[#allocation4 + $0x8] sm:$0xff] }
 0x37e   : > { %711 = vst.msk [vmem:[#allocation4 + $0x18] sm:$0xff] %vm374_vm0, %v710_v3 }
 0x381   : > { %v604_v11 = vpop.permute.xlu1 %603 }
 0x382   : > { %v606_v12 = vmul.f32 %v604_v11, %v600_v10 }
 0x383   : > { %v708_v4 = vpop.f32.mrf.mxu2 }
 0x385   : > { %v743_v20 = vld [vmem:[#allocation4 + $0x18] sm:$0xff] }
 0x388   : > { %v596_v7 = vpop.xlane.xlu2 %595 }
 0x389   : > { %v597_v8 = vadd.f32 %v596_v7, %v593_v6 }
 0x38b   : > { %598 = vst.msk [vmem:[#allocation3 + $0x10] sm:$0xff] %vm365_vm1, %v597_v8 }
 0x390   : > { %v722_v26 = vpop.permute.xlu2 %721 }
 0x391   : > { %v724_v29 = vmul.f32 %v722_v26, %v716_v27 }
 0x392   : > { %v735_v9 = vld [vmem:[#allocation3 + $0x10] sm:$0xff] }
 0x393   : > { %990 = vrcp.f32 %v735_v9 }
 0x399   : > { %v991_v13 = vpop.eup %990  ;;  %v625_v14 = vpop.f32.mrf.mxu3 }
 0x39a   : > { %v629_v15 = vadd.f32 %v625_v14, %v606_v12  ;;  %739 = vperm.xlu1 %965, %v991_v13  }
 0x39c   : > { %630 = vst.msk [vmem:[#allocation4 + $0x10] sm:$0xff] %vm374_vm0, %v629_v15 }
 0x3a1   : > { %v627_v16 = vpop.f32.mrf.mxu3 }
 0x3a3   : > { %v734_v23 = vld [vmem:[#allocation4 + $0x10] sm:$0xff] }
 0x3e5   : > { %v731_v18 = vpop.permute.xlu0 %730 }
 0x3e6   : > { %v733_v19 = vmul.f32 %v731_v18, %v725_v17 }
 0x3e8   : > { %753 = vrot.lane.b32.xlu1 %v733_v19, %s1022_s9 }
 0x3ed   : > { %v749_v21 = vpop.permute.xlu0 %748 }
 0x3ee   : > { %v751_v22 = vmul.f32 %v749_v21, %v743_v20 }
 0x3f0   : > { %761 = vrot.lane.b32.xlu0 %v751_v22, %s1023_s10 }
 0x40c   : > { %v740_v24 = vpop.permute.xlu1 %739 }
 0x40d   : > { %v742_v25 = vmul.f32 %v740_v24, %v734_v23 }
 0x40f   : > { %757 = vrot.lane.b32.xlu2 %v742_v25, %s1024_s11 }
 0x45a   : > { %v754_v28 = vpop.permute.xlu1 %753 }
 0x45b   : > { %v764_v30 = vsel %vm374_vm0, %v724_v29, %v754_v28 }
 0x462   : > { %v762_v32 = vpop.permute.xlu0 %761 }
 0x469   : > { %v758_v31 = vpop.permute.xlu2 %757 }
 0x46a   : > { %v766_v33 = vsel %vm765_vm3, %v764_v30, %v758_v31 }
 0x46b   : > { %v768_v34 = vsel %vm767_vm4, %v766_v33, %v762_v32 }
 0x46c   : > { %v769_v35 = vpack.c.bf16 %v768_v34, %v768_v34 }
 0x46e   : > { %771 = vst.msk [vmem:[%s359_s14] sm:$0xf] %vm770_vm5, %v769_v35 }
 0x46f PF: > { %s14_s17 = sadd.s32 1, %s1014_s17   ;;  %s1190_s15 = smov %s1010_s16 }
 0x470   : > { %p11_p5 = scmp.ge.s32.totalorder %s14_s17, 4   ;;  %s1191_s16 = smov %s1193_s18 }
 0x472   :  { %13 = sbr.rel (!%p11_p5) target bundleno = 2 (0x2), region = 92 }

// kernel: transformer_forward.51
= control target key start
LH: loop header
LB: loop body
LE: loop exit
PB: predicated region body
PF: predicated region fallthrough
CT: control target
= control target key end

     0   :  { %8 = vsyncpa [#allocation3], 0  ;;  %s134_s15 = smov [#allocation2]   ;;  %s170_s0 = inlined_call_operand.vmem [shape: bf16[16,32], index: 0, kind: input, shape index: {}]   ;;  %s171_s1 = inlined_call_operand.vmem [shape: bf16[32,128], index: 1, kind: input, shape index: {}]   ;;  %s172_s2 = inlined_call_operand.hbm [shape: f32[1,128], index: 2, kind: input, shape index: {}]   ;;  %s173_s3 = inlined_call_operand.vmem [shape: bf16[16,128], index: 3, kind: output, shape index: {}]  }
   0x1   :  { %s18_s14 = sshll.u32 %s172_s2, 4  ;;  %s20_s16 = sshll.u32 %s134_s15, 4  ;;  %s19_s14 = int_to_ptr.hbm [resolvable:$true] %s18_s14  ;;  %s21_s16 = int_to_ptr.vmem [resolvable:$true] %s20_s16 }
   0x2   :  { %23 = dma.hbm_to_vmem [thread:$0]  %s19_s14, 16, %s21_s16, [#allocation3]  }
   0x3   :  { %132 = dma.done.wait [#allocation3], 16  }
   0x4   :  { %133 = vsyncadd [#allocation3], 4294967280  ;;  %v100_v0 = vld [vmem:[%s171_s1 + $0x8] sm:$0xff]  ;;  %v99_v1 = vld [vmem:[%s171_s1] sm:$0xff]  ;;  %vm56_vm0 = vcmask 261120  }
   0x5   :  { %66 = vmatpush.bf16.msra.mxu0 %v100_v0  ;;  %v98_v2 = vld [vmem:[%s170_s0] sm:$0xff] }
   0x6   :  { %v107_v4 = vld [vmem:[#allocation2] ss:$0 sm:$0xff] }
   0x9   :  { %67 = vmatpush.bf16.msra.mxu0 %v99_v1 }
   0xc   :  { %97 = vmatmul.msk.bf16.vlgmr.msra.gmra.mxu0 %vm56_vm0, %v98_v2 }
  0x89   :  { %v69_v3 = vpop.f32.mrf.mxu0 }
  0x8a   :  { %v70_v5 = vadd.f32 %v107_v4, %v69_v3 }
  0x8c   :  { %v74_v8 = vmax.f32 %v70_v5, 0.0 }
  0x91   :  { %v71_v6 = vpop.f32.mrf.mxu0 }
  0x92   :  { %v72_v7 = vadd.f32 %v107_v4, %v71_v6 }
  0x94   :  { %v75_v9 = vmax.f32 %v72_v7, 0.0 }
  0x96   :  { %v104_v10 = vpack.c.bf16 %v75_v9, %v74_v8 }
  0x98   :  { %105 = vst [vmem:[%s173_s3] sm:$0xff] %v104_v10  }
  0x99   :  { %84 = vsyncpa [#allocation3], 1 }

// kernel: transformer_forward.44
= control target key start
LH: loop header
LB: loop body
LE: loop exit
PB: predicated region body
PF: predicated region fallthrough
CT: control target
= control target key end

     0   :  { %vm42_vm0 = vcmask 261120   ;;  %s127_s1 = inlined_call_operand.vmem [shape: bf16[32,128], index: 1, kind: input, shape index: {}]   ;;  %s128_s2 = inlined_call_operand.vmem [shape: f32[1,128], index: 2, kind: input, shape index: {}]   ;;  %s129_s0 = inlined_call_operand.vmem [shape: bf16[16,32], index: 0, kind: input, shape index: {}]   ;;  %s130_s3 = inlined_call_operand.vmem [shape: bf16[16,128], index: 3, kind: output, shape index: {}]  }
   0x1   :  { %v85_v0 = vld [vmem:[%s127_s1 + $0x8] sm:$0xff]  ;;  %v84_v1 = vld [vmem:[%s127_s1] sm:$0xff] }
   0x2   :  { %52 = vmatpush.bf16.msra.mxu0 %v85_v0  ;;  %v83_v2 = vld [vmem:[%s129_s0] sm:$0xff] }
   0x3   :  { %v91_v4 = vld [vmem:[%s128_s2] ss:$0 sm:$0xff] }
   0x6   :  { %53 = vmatpush.bf16.msra.mxu0 %v84_v1 }
   0x9   :  { %82 = vmatmul.msk.bf16.vlgmr.msra.gmra.mxu0 %vm42_vm0, %v83_v2 }
  0x86   :  { %v55_v3 = vpop.f32.mrf.mxu0 }
  0x87   :  { %v56_v5 = vadd.f32 %v91_v4, %v55_v3 }
  0x89   :  { %v60_v8 = vmax.f32 %v56_v5, 0.0 }
  0x8e   :  { %v57_v6 = vpop.f32.mrf.mxu0 }
  0x8f   :  { %v58_v7 = vadd.f32 %v91_v4, %v57_v6 }
  0x91   :  { %v61_v9 = vmax.f32 %v58_v7, 0.0 }
  0x93   :  { %v89_v10 = vpack.c.bf16 %v61_v9, %v60_v8 }
  0x95   :  { %90 = vst [vmem:[%s130_s3] sm:$0xff] %v89_v10  }

// kernel: transformer_forward.52
= control target key start
LH: loop header
LB: loop body
LE: loop exit
PB: predicated region body
PF: predicated region fallthrough
CT: control target
= control target key end

     0   :  { %8 = vsyncpa [#allocation3], 0  ;;  %s201_s15 = smov [#allocation2]   ;;  %s258_s0 = inlined_call_operand.vmem [shape: bf16[16,128], index: 0, kind: input, shape index: {}]   ;;  %s259_s1 = inlined_call_operand.vmem [shape: bf16[128,32], index: 1, kind: input, shape index: {}]   ;;  %s260_s2 = inlined_call_operand.hbm [shape: f32[1,32], index: 2, kind: input, shape index: {}]   ;;  %s261_s3 = inlined_call_operand.vmem [shape: bf16[16,32], index: 3, kind: output, shape index: {}]  }
   0x1   :  { %s18_s14 = sshll.u32 %s260_s2, 4  ;;  %s20_s16 = sshll.u32 %s201_s15, 4  ;;  %s19_s14 = int_to_ptr.hbm [resolvable:$true] %s18_s14  ;;  %s21_s16 = int_to_ptr.vmem [resolvable:$true] %s20_s16 }
   0x2   :  { %23 = dma.hbm_to_vmem [thread:$0]  %s19_s14, 16, %s21_s16, [#allocation3]  }
   0x3   :  { %199 = dma.done.wait [#allocation3], 16  }
   0x4   :  { %200 = vsyncadd [#allocation3], 4294967280  ;;  %v172_v0 = vld [vmem:[%s259_s1 + $0x38] sm:$0xff]  ;;  %v171_v1 = vld [vmem:[%s259_s1 + $0x30] sm:$0xff]  ;;  %vm120_vm0 = vcmask 257024  }
   0x5   :  { %104 = vmatpush.bf16.msra.mxu0 %v172_v0  ;;  %v170_v2 = vld [vmem:[%s259_s1 + $0x28] sm:$0xff]  ;;  %v169_v3 = vld [vmem:[%s259_s1 + $0x20] sm:$0xff]  ;;  %v168_v4 = vld [vmem:[%s259_s1 + $0x18] sm:$0xff] }
   0x6   :  { %v167_v5 = vld [vmem:[%s259_s1 + $0x10] sm:$0xff]  ;;  %v166_v6 = vld [vmem:[%s259_s1 + $0x8] sm:$0xff]  ;;  %v165_v7 = vld [vmem:[%s259_s1] sm:$0xff] }
   0x7   :  { %v164_v8 = vld [vmem:[%s258_s0] sm:$0xff] }
   0x8   :  { %v174_v9 = vld [vmem:[#allocation2] ss:$0 sm:$0xff] }
   0x9   :  { %105 = vmatpush.bf16.msra.mxu0 %v171_v1 }
   0xd   :  { %106 = vmatpush.bf16.msra.mxu0 %v170_v2 }
  0x11   :  { %107 = vmatpush.bf16.msra.mxu0 %v169_v3 }
  0x15   :  { %108 = vmatpush.bf16.msra.mxu0 %v168_v4 }
  0x19   :  { %109 = vmatpush.bf16.msra.mxu0 %v167_v5 }
  0x1d   :  { %110 = vmatpush.bf16.msra.mxu0 %v166_v6 }
  0x21   :  { %111 = vmatpush.bf16.msra.mxu0 %v165_v7 }
  0x24   :  { %112 = vmatmul.bf16.vlgmr.msra.gmra.mxu0 %v164_v8 }
  0xa1   :  { %v113_v10 = vpop.f32.mrf.mxu0 }
  0xa2   :  { %v114_v11 = vadd.f32 %v174_v9, %v113_v10 }
  0xa4   :  { %v118_v12 = vpack.c.bf16 %v114_v11, %v114_v11 }
  0xa6   :  { %121 = vst.msk [vmem:[%s261_s3] sm:$0xf] %vm120_vm0, %v118_v12 }
  0xa9   :  { %v115_v13 = vpop.f32.mrf.mxu0 }
  0xaa   :  { %v116_v14 = vadd.f32 %v174_v9, %v115_v13 }
  0xac   :  { %v119_v15 = vpack.c.bf16 %v116_v14, %v116_v14 }
  0xae   :  { %122 = vst.msk [vmem:[%s261_s3 + $0x4] sm:$0xf] %vm120_vm0, %v119_v15 }
  0xaf   :  { %127 = vsyncpa [#allocation3], 1 }

// kernel: transformer_forward.60
= control target key start
LH: loop header
LB: loop body
LE: loop exit
PB: predicated region body
PF: predicated region fallthrough
CT: control target
= control target key end

     0   :  { %8 = vsyncpa [#allocation3], 0  ;;  %s128_s15 = smov [#allocation2]   ;;  %s167_s0 = inlined_call_operand.vmem [shape: bf16[16,32], index: 0, kind: input, shape index: {}]   ;;  %s168_s1 = inlined_call_operand.vmem [shape: bf16[32,64], index: 1, kind: input, shape index: {}]   ;;  %s169_s2 = inlined_call_operand.hbm [shape: f32[1,64], index: 2, kind: input, shape index: {}]   ;;  %s170_s3 = inlined_call_operand.vmem [shape: bf16[16,64], index: 3, kind: output, shape index: {}]  }
   0x1   :  { %s18_s14 = sshll.u32 %s169_s2, 4  ;;  %s20_s16 = sshll.u32 %s128_s15, 4  ;;  %s19_s14 = int_to_ptr.hbm [resolvable:$true] %s18_s14  ;;  %s21_s16 = int_to_ptr.vmem [resolvable:$true] %s20_s16 }
   0x2   :  { %23 = dma.hbm_to_vmem [thread:$0]  %s19_s14, 16, %s21_s16, [#allocation3]  }
   0x3   :  { %126 = dma.done.wait [#allocation3], 16  }
   0x4   :  { %127 = vsyncadd [#allocation3], 4294967280  ;;  %v99_v0 = vld [vmem:[%s168_s1 + $0x8] sm:$0xff]  ;;  %v98_v1 = vld [vmem:[%s168_s1] sm:$0xff]  ;;  %vm56_vm0 = vcmask 261120   ;;  %vm76_vm1 = vcmask 519168  }
   0x5   :  { %66 = vmatpush.bf16.msra.mxu0 %v99_v0  ;;  %v97_v2 = vld [vmem:[%s167_s0] sm:$0xff] }
   0x6   :  { %v101_v3 = vld [vmem:[#allocation2] ss:$0 sm:$0xff] }
   0x9   :  { %67 = vmatpush.bf16.msra.mxu0 %v98_v1 }
   0xc   :  { %96 = vmatmul.msk.bf16.vlgmr.msra.gmra.mxu0 %vm56_vm0, %v97_v2 }
  0x89   :  { %v69_v4 = vpop.f32.mrf.mxu0 }
  0x8a   :  { %v70_v5 = vadd.f32 %v101_v3, %v69_v4 }
  0x8c   :  { %v74_v6 = vpack.c.bf16 %v70_v5, %v70_v5 }
  0x8e   :  { %77 = vst.msk [vmem:[%s170_s3] sm:$0xf] %vm76_vm1, %v74_v6 }
  0x91   :  { %v71_v7 = vpop.f32.mrf.mxu0 }
  0x92   :  { %v72_v8 = vadd.f32 %v101_v3, %v71_v7 }
  0x94   :  { %v75_v9 = vpack.c.bf16 %v72_v8, %v72_v8 }
  0x96   :  { %78 = vst.msk [vmem:[%s170_s3 + $0x4] sm:$0xf] %vm76_vm1, %v75_v9 }
  0x97   :  { %83 = vsyncpa [#allocation3], 1 }

// kernel: transformer_forward.45
= control target key start
LH: loop header
LB: loop body
LE: loop exit
PB: predicated region body
PF: predicated region fallthrough
CT: control target
= control target key end

     0   :  { %vm106_vm0 = vcmask 257024   ;;  %s215_s1 = inlined_call_operand.vmem [shape: bf16[128,32], index: 1, kind: input, shape index: {}]   ;;  %s216_s2 = inlined_call_operand.vmem [shape: f32[1,32], index: 2, kind: input, shape index: {}]   ;;  %s217_s0 = inlined_call_operand.vmem [shape: bf16[16,128], index: 0, kind: input, shape index: {}]   ;;  %s218_s3 = inlined_call_operand.vmem [shape: bf16[16,32], index: 3, kind: output, shape index: {}]  }
   0x1   :  { %v157_v0 = vld [vmem:[%s215_s1 + $0x38] sm:$0xff]  ;;  %v156_v1 = vld [vmem:[%s215_s1 + $0x30] sm:$0xff]  ;;  %v155_v2 = vld [vmem:[%s215_s1 + $0x28] sm:$0xff] }
   0x2   :  { %90 = vmatpush.bf16.msra.mxu0 %v157_v0  ;;  %v154_v3 = vld [vmem:[%s215_s1 + $0x20] sm:$0xff]  ;;  %v153_v4 = vld [vmem:[%s215_s1 + $0x18] sm:$0xff]  ;;  %v152_v5 = vld [vmem:[%s215_s1 + $0x10] sm:$0xff] }
   0x3   :  { %v151_v6 = vld [vmem:[%s215_s1 + $0x8] sm:$0xff]  ;;  %v150_v7 = vld [vmem:[%s215_s1] sm:$0xff] }
   0x4   :  { %v149_v8 = vld [vmem:[%s217_s0] sm:$0xff] }
   0x5   :  { %v158_v9 = vld [vmem:[%s216_s2] ss:$0 sm:$0xff] }
   0x6   :  { %91 = vmatpush.bf16.msra.mxu0 %v156_v1 }
   0xa   :  { %92 = vmatpush.bf16.msra.mxu0 %v155_v2 }
   0xe   :  { %93 = vmatpush.bf16.msra.mxu0 %v154_v3 }
  0x12   :  { %94 = vmatpush.bf16.msra.mxu0 %v153_v4 }
  0x16   :  { %95 = vmatpush.bf16.msra.mxu0 %v152_v5 }
  0x1a   :  { %96 = vmatpush.bf16.msra.mxu0 %v151_v6 }
  0x1e   :  { %97 = vmatpush.bf16.msra.mxu0 %v150_v7 }
  0x21   :  { %98 = vmatmul.bf16.vlgmr.msra.gmra.mxu0 %v149_v8 }
  0x9e   :  { %v99_v10 = vpop.f32.mrf.mxu0 }
  0x9f   :  { %v100_v11 = vadd.f32 %v158_v9, %v99_v10 }
  0xa1   :  { %v104_v12 = vpack.c.bf16 %v100_v11, %v100_v11 }
  0xa3   :  { %107 = vst.msk [vmem:[%s218_s3] sm:$0xf] %vm106_vm0, %v104_v12 }
  0xa6   :  { %v101_v13 = vpop.f32.mrf.mxu0 }
  0xa7   :  { %v102_v14 = vadd.f32 %v158_v9, %v101_v13 }
  0xa9   :  { %v105_v15 = vpack.c.bf16 %v102_v14, %v102_v14 }
  0xab   :  { %108 = vst.msk [vmem:[%s218_s3 + $0x4] sm:$0xf] %vm106_vm0, %v105_v15 }

// kernel: transformer_forward.67
= control target key start
LH: loop header
LB: loop body
LE: loop exit
PB: predicated region body
PF: predicated region fallthrough
CT: control target
= control target key end

     0   :  { %8 = vsyncpa [#allocation3], 0  ;;  %s128_s15 = smov [#allocation2]   ;;  %s167_s0 = inlined_call_operand.vmem [shape: bf16[16,32], index: 0, kind: input, shape index: {}]   ;;  %s168_s1 = inlined_call_operand.vmem [shape: bf16[32,96], index: 1, kind: input, shape index: {}]   ;;  %s169_s2 = inlined_call_operand.hbm [shape: f32[1,96], index: 2, kind: input, shape index: {}]   ;;  %s170_s3 = inlined_call_operand.vmem [shape: bf16[16,96], index: 3, kind: output, shape index: {}]  }
   0x1   :  { %s18_s14 = sshll.u32 %s169_s2, 4  ;;  %s20_s16 = sshll.u32 %s128_s15, 4  ;;  %s19_s14 = int_to_ptr.hbm [resolvable:$true] %s18_s14  ;;  %s21_s16 = int_to_ptr.vmem [resolvable:$true] %s20_s16 }
   0x2   :  { %23 = dma.hbm_to_vmem [thread:$0]  %s19_s14, 16, %s21_s16, [#allocation3]  }
   0x3   :  { %126 = dma.done.wait [#allocation3], 16  }
   0x4   :  { %127 = vsyncadd [#allocation3], 4294967280  ;;  %v99_v0 = vld [vmem:[%s168_s1 + $0x8] sm:$0xff]  ;;  %v98_v1 = vld [vmem:[%s168_s1] sm:$0xff]  ;;  %vm56_vm0 = vcmask 261120   ;;  %vm76_vm1 = vcmask 781312  }
   0x5   :  { %66 = vmatpush.bf16.msra.mxu0 %v99_v0  ;;  %v97_v2 = vld [vmem:[%s167_s0] sm:$0xff] }
   0x6   :  { %v101_v3 = vld [vmem:[#allocation2] ss:$0 sm:$0xff] }
   0x9   :  { %67 = vmatpush.bf16.msra.mxu0 %v98_v1 }
   0xc   :  { %96 = vmatmul.msk.bf16.vlgmr.msra.gmra.mxu0 %vm56_vm0, %v97_v2 }
  0x89   :  { %v69_v4 = vpop.f32.mrf.mxu0 }
  0x8a   :  { %v70_v5 = vadd.f32 %v101_v3, %v69_v4 }
  0x8c   :  { %v74_v6 = vpack.c.bf16 %v70_v5, %v70_v5 }
  0x8e   :  { %77 = vst.msk [vmem:[%s170_s3] sm:$0xf] %vm76_vm1, %v74_v6 }
  0x91   :  { %v71_v7 = vpop.f32.mrf.mxu0 }
  0x92   :  { %v72_v8 = vadd.f32 %v101_v3, %v71_v7 }
  0x94   :  { %v75_v9 = vpack.c.bf16 %v72_v8, %v72_v8 }
  0x96   :  { %78 = vst.msk [vmem:[%s170_s3 + $0x4] sm:$0xf] %vm76_vm1, %v75_v9 }
  0x97   :  { %83 = vsyncpa [#allocation3], 1 }

// kernel: transformer_forward.53
= control target key start
LH: loop header
LB: loop body
LE: loop exit
PB: predicated region body
PF: predicated region fallthrough
CT: control target
= control target key end

     0   :  { %9 = vsyncpa [#allocation3], 0  ;;  %s251_s0 = inlined_call_operand.vmem [shape: bf16[16,32], index: 0, kind: input, shape index: {}]   ;;  %s252_s1 = inlined_call_operand.vmem [shape: bf16[16,32], index: 1, kind: input, shape index: {}]   ;;  %s253_s2 = inlined_call_operand.hbm [shape: f32[1,32], index: 2, kind: input, shape index: {}]   ;;  %s254_s3 = inlined_call_operand.hbm [shape: f32[1,32], index: 3, kind: input, shape index: {}]   ;;  %s255_s4 = inlined_call_operand.vmem [shape: bf16[16,32], index: 4, kind: output, shape index: {}]  }
   0x1   :  { %s20_s17 = sshll.u32 %s253_s2, 4  ;;  %s21_s17 = int_to_ptr.hbm [resolvable:$true] %s20_s17 }
   0x2   :  { %10 = vsyncpa [#allocation5], 0  ;;  %s201_s18 = smov [#allocation2]   ;;  %s31_s22 = sshll.u32 %s254_s3, 4  ;;  %s32_s22 = int_to_ptr.hbm [resolvable:$true] %s31_s22 }
   0x3   :  { %s22_s19 = sshll.u32 %s201_s18, 4  ;;  %s202_s23 = smov [#allocation4]   ;;  %s23_s19 = int_to_ptr.vmem [resolvable:$true] %s22_s19 }
   0x4   :  { %25 = dma.hbm_to_vmem [thread:$0]  %s21_s17, 16, %s23_s19, [#allocation3]  }
   0x5   :  { %s33_s24 = sshll.u32 %s202_s23, 4  ;;  %s34_s24 = int_to_ptr.vmem [resolvable:$true] %s33_s24 }
   0x6   :  { %36 = dma.hbm_to_vmem [thread:$0]  %s32_s22, 16, %s34_s24, [#allocation5]  }
   0x7   :  { %197 = dma.done.wait [#allocation3], 16  }
   0x8   :  { %198 = vsyncadd [#allocation3], 4294967280 }
   0x9   :  { %199 = dma.done.wait [#allocation5], 16  }
   0xa   :  { %200 = vsyncadd [#allocation5], 4294967280  ;;  %v131_v0 = vld [vmem:[%s251_s0] sm:$0xff]   ;;  %vm55_vm0 = vcmask 261120   ;;  %v203_v10 = vmov 32.0   ;;  %vm121_vm6 = vcmask 257024  }
   0xb   :  { %v135_v1 = vld [vmem:[%s252_s1] sm:$0xff]   ;;  %v132_v2 = vunpack.c.l.bf16 %v131_v0  ;;  %v133_v5 = vunpack.c.h.bf16 %v131_v0  ;;  %143 = vrcp.f32 %v203_v10 }
   0xc   :  { %v136_v3 = vunpack.c.l.bf16 %v135_v1  ;;  %v137_v6 = vunpack.c.h.bf16 %v135_v1  ;;  %v141_v41 = vld [vmem:[#allocation2] ss:$0 sm:$0xff]  ;;  %v142_v44 = vld [vmem:[#allocation4] ss:$0 sm:$0xff] }
   0xe   :  { %v53_v4 = vadd.f32 %v136_v3, %v132_v2  ;;  %v54_v8 = vadd.f32 %v137_v6, %v133_v5 }
  0x10   :  { %v56_v7 = vsel %vm55_vm0, %v53_v4, 0.0  ;;  %v59_v9 = vsel %vm55_vm0, %v54_v8, 0.0 }
  0x11   :  { %57 = vadd.xlane.f32.xlu0 %v56_v7  ;;  %v144_v11 = vpop.eup %143 }
  0x12   :  { %v63_v12 = vmul.f32 32.0, %v144_v11  ;;  %vm67_vm1 = vweird.f32 %v144_v11 }
  0x14   :  { %v64_v13 = vsub.f32 1.0, %v63_v12 }
  0x16   :  { %v65_v14 = vmul.f32 %v144_v11, %v64_v13 }
  0x18   :  { %v66_v15 = vadd.f32 %v144_v11, %v65_v14 }
  0x19   :  { %60 = vadd.xlane.f32.xlu0 %v59_v9 }
  0x1a   :  { %v68_v16 = vsel %vm67_vm1, %v144_v11, %v66_v15 }
  0x84   :  { %v58_v17 = vpop.xlane.xlu0 %57 }
  0x85   :  { %v69_v18 = vmul.f32 %v68_v16, %v58_v17 }
  0x87   :  { %v71_v19 = vsub.f32 %v53_v4, %v69_v18 }
  0x89   :  { %v73_v20 = vmul.f32 %v71_v19, %v71_v19 }
  0x8b   :  { %v75_v21 = vsel %vm55_vm0, %v73_v20, 0.0 }
  0x8c   :  { %76 = vadd.xlane.f32.xlu1 %v75_v21  ;;  %v61_v22 = vpop.xlane.xlu0 %60 }
  0x8d   :  { %v70_v23 = vmul.f32 %v68_v16, %v61_v22 }
  0x8f   :  { %v72_v24 = vsub.f32 %v54_v8, %v70_v23 }
  0x91   :  { %v74_v25 = vmul.f32 %v72_v24, %v72_v24 }
  0x93   :  { %v78_v26 = vsel %vm55_vm0, %v74_v25, 0.0 }
  0x94   :  { %79 = vadd.xlane.f32.xlu1 %v78_v26 }
  0xff   :  { %v77_v27 = vpop.xlane.xlu1 %76 }
 0x100   :  { %v81_v28 = vmul.f32 %v77_v27, %v68_v16 }
 0x102   :  { %v83_v29 = vadd.f32 1e-05, %v81_v28 }
 0x104   :  { %145 = vrsqrt.f32 %v83_v29  ;;  %vm91_vm3 = vweird.f32 %v83_v29 }
 0x107   :  { %v80_v30 = vpop.xlane.xlu1 %79 }
 0x108   :  { %v82_v31 = vmul.f32 %v80_v30, %v68_v16 }
 0x10a   :  { %v146_v32 = vpop.eup %145  ;;  %v84_v33 = vadd.f32 1e-05, %v82_v31 }
 0x10b   :  { %v86_v34 = vmul.f32 %v146_v32, %v83_v29  ;;  %vm92_vm2 = vweird.f32 %v146_v32 }
 0x10c   :  { %147 = vrsqrt.f32 %v84_v33  ;;  %vm93_vm4 = vmor %vm91_vm3, %vm92_vm2  ;;  %vm101_vm7 = vweird.f32 %v84_v33 }
 0x10d   :  { %v87_v35 = vmul.f32 %v146_v32, %v86_v34 }
 0x10f   :  { %v88_v36 = vmul.f32 0.5, %v87_v35 }
 0x111   :  { %v89_v37 = vsub.f32 1.5, %v88_v36 }
 0x112   :  { %v148_v38 = vpop.eup %147 }
 0x113   :  { %v90_v39 = vmul.f32 %v146_v32, %v89_v37  ;;  %v96_v40 = vmul.f32 %v148_v38, %v84_v33  ;;  %vm102_vm5 = vweird.f32 %v148_v38 }
 0x114   :  { %vm103_vm8 = vmor %vm101_vm7, %vm102_vm5 }
 0x115   :  { %v94_v42 = vsel %vm93_vm4, %v146_v32, %v90_v39  ;;  %v97_v43 = vmul.f32 %v148_v38, %v96_v40 }
 0x116   :  { %v105_v45 = vmul.f32 %v94_v42, %v71_v19 }
 0x117   :  { %v98_v46 = vmul.f32 0.5, %v97_v43 }
 0x118   :  { %v111_v47 = vmul.f32 %v141_v41, %v105_v45 }
 0x119   :  { %v99_v48 = vsub.f32 1.5, %v98_v46 }
 0x11a   :  { %v117_v49 = vadd.f32 %v142_v44, %v111_v47 }
 0x11b   :  { %v100_v50 = vmul.f32 %v148_v38, %v99_v48 }
 0x11c   :  { %v119_v51 = vpack.c.bf16 %v117_v49, %v117_v49 }
 0x11d   :  { %v104_v52 = vsel %vm103_vm8, %v148_v38, %v100_v50 }
 0x11e   :  { %122 = vst.msk [vmem:[%s255_s4] sm:$0xf] %vm121_vm6, %v119_v51  ;;  %v106_v53 = vmul.f32 %v104_v52, %v72_v24 }
 0x120   :  { %v112_v54 = vmul.f32 %v141_v41, %v106_v53 }
 0x122   :  { %v118_v55 = vadd.f32 %v142_v44, %v112_v54 }
 0x124   :  { %v120_v56 = vpack.c.bf16 %v118_v55, %v118_v55 }
 0x126   :  { %123 = vst.msk [vmem:[%s255_s4 + $0x4] sm:$0xf] %vm121_vm6, %v120_v56 }
 0x127   :  { %128 = vsyncpa [#allocation3], 1 }
 0x128   :  { %129 = vsyncpa [#allocation5], 1 }

// kernel: transformer_forward.62
= control target key start
LH: loop header
LB: loop body
LE: loop exit
PB: predicated region body
PF: predicated region fallthrough
CT: control target
= control target key end

     0   :  { %8 = vsyncpa [#allocation3], 0  ;;  %s128_s15 = smov [#allocation2]   ;;  %s167_s0 = inlined_call_operand.vmem [shape: bf16[16,32], index: 0, kind: input, shape index: {}]   ;;  %s168_s1 = inlined_call_operand.vmem [shape: bf16[32,32], index: 1, kind: input, shape index: {}]   ;;  %s169_s2 = inlined_call_operand.hbm [shape: f32[1,32], index: 2, kind: input, shape index: {}]   ;;  %s170_s3 = inlined_call_operand.vmem [shape: bf16[16,32], index: 3, kind: output, shape index: {}]  }
   0x1   :  { %s18_s14 = sshll.u32 %s169_s2, 4  ;;  %s20_s16 = sshll.u32 %s128_s15, 4  ;;  %s19_s14 = int_to_ptr.hbm [resolvable:$true] %s18_s14  ;;  %s21_s16 = int_to_ptr.vmem [resolvable:$true] %s20_s16 }
   0x2   :  { %23 = dma.hbm_to_vmem [thread:$0]  %s19_s14, 16, %s21_s16, [#allocation3]  }
   0x3   :  { %126 = dma.done.wait [#allocation3], 16  }
   0x4   :  { %127 = vsyncadd [#allocation3], 4294967280  ;;  %v99_v0 = vld [vmem:[%s168_s1 + $0x8] sm:$0xff]  ;;  %v98_v1 = vld [vmem:[%s168_s1] sm:$0xff]  ;;  %vm56_vm0 = vcmask 261120   ;;  %vm76_vm1 = vcmask 257024  }
   0x5   :  { %66 = vmatpush.bf16.msra.mxu0 %v99_v0  ;;  %v97_v2 = vld [vmem:[%s167_s0] sm:$0xff] }
   0x6   :  { %v101_v3 = vld [vmem:[#allocation2] ss:$0 sm:$0xff] }
   0x9   :  { %67 = vmatpush.bf16.msra.mxu0 %v98_v1 }
   0xc   :  { %96 = vmatmul.msk.bf16.vlgmr.msra.gmra.mxu0 %vm56_vm0, %v97_v2 }
  0x89   :  { %v69_v4 = vpop.f32.mrf.mxu0 }
  0x8a   :  { %v70_v5 = vadd.f32 %v101_v3, %v69_v4 }
  0x8c   :  { %v74_v6 = vpack.c.bf16 %v70_v5, %v70_v5 }
  0x8e   :  { %77 = vst.msk [vmem:[%s170_s3] sm:$0xf] %vm76_vm1, %v74_v6 }
  0x91   :  { %v71_v7 = vpop.f32.mrf.mxu0 }
  0x92   :  { %v72_v8 = vadd.f32 %v101_v3, %v71_v7 }
  0x94   :  { %v75_v9 = vpack.c.bf16 %v72_v8, %v72_v8 }
  0x96   :  { %78 = vst.msk [vmem:[%s170_s3 + $0x4] sm:$0xf] %vm76_vm1, %v75_v9 }
  0x97   :  { %83 = vsyncpa [#allocation3], 1 }

// kernel: transformer_forward.79
= control target key start
LH: loop header
LB: loop body
LE: loop exit
PB: predicated region body
PF: predicated region fallthrough
CT: control target
= control target key end

     0   :  { %s728_s12 = smov 0   ;;  %s730_s13 = smov 0   ;;  %s829_s0 = inlined_call_operand.vmem [shape: bf16[16,32], index: 0, kind: input, shape index: {}]   ;;  %s830_s1 = inlined_call_operand.vmem [shape: bf16[32,30208], index: 1, kind: input, shape index: {}]   ;;  %s831_s2 = inlined_call_operand.vmem [shape: f32[1,30208], index: 2, kind: input, shape index: {}]   ;;  %s832_s3 = inlined_call_operand.vmem [shape: f32[16,30208], index: 3, kind: output, shape index: {}]  }
   0x1   :  { %s732_s14 = smov 0   ;;  %s734_s15 = smov 0  }
   0x2   :  { %s736_s16 = smov 0  }
   0x3 LB: > { %s28_s17 = sadd.s32 1, %s702_s15  ;;  %s560_s18 = sadd.s32 4294967295, %s706_s16   ;;  %s706_s16 = sphi %s736_s16, %s13_s16   ;;  %s702_s15 = sphi %s734_s15, %s837_s15   ;;  %s698_s14 = sphi %s732_s14, %s836_s14   ;;  %s694_s13 = sphi %s730_s13, %s835_s13   ;;  %s690_s12 = sphi %s728_s12, %s834_s12  }
   0x4   : > { %p30_p0 = scmp.ge.s32.totalorder %s28_s17, 59  ;;  %p76_p1 = scmp.ne.s32.totalorder %s694_s13, %s690_s12 }
   0x5   : > { %p77_p2 = scmp.eq.s32.totalorder %s706_s16, 0  ;;  %p134_p4 = scmp.eq.s32.totalorder %s560_s18, 58 }
   0x6   : > { %s839_s17 = smov (%p30_p0, %s28_s17), 0  ;;  %s69_s20 = sadd.s32 1, %s694_s13 }
   0x7   : > { %p78_p3 = por %p77_p2, %p76_p1  ;;  %s65_s19 = ssub.s32 %s702_s15, %s839_s17 }
   0x8   : > { %p67_p5 = scmp.eq.s32.totalorder %s65_s19, 0  ;;  %p763_p6 = por %p134_p4, %p76_p1 }
   0x9   : > { %p564_p7 = scmp.ge.s32.totalorder %s706_s16, 59 }
   0xa   : > { %s768_s22 = scalar_select %p67_p5, %s694_s13, %s69_s20  }
   0xb   : > { %168 = sbr.rel (%p564_p7) target bundleno = 28 (0x1c), region = 20 }
  0x10   : > { %171 = sbr.rel (!%p78_p3) target bundleno = 28 (0x1c), region = 24  ;;  %s173_s23 = sand.u32 (%p78_p3), 1, %s694_s13  }
  0x11   : > { %s617_s24 = sshll.u32 (%p78_p3), %s702_s15, 4  ;;  %s565_s25 = sshll.u32 (%p78_p3), %s173_s23, 6 }
  0x12   : > { %s181_s28 = scalar_lea.vmem (%p78_p3), %s830_s1, %s617_s24  ;;  %s175_s29 = scalar_lea.vmem (%p78_p3), [#allocation2], %s565_s25 }
  0x13   : > { %v194_v0 = vld [vmem:[%s181_s28] sm:$0xff] (%p78_p3)  ;;  %v196_v1 = vld [vmem:[%s181_s28 + $0x8] sm:$0xff] (%p78_p3)  ;;  %v198_v2 = vld [vmem:[%s181_s28 + $0x3b0] sm:$0xff] (%p78_p3) }
  0x14   : > { %195 = vst [vmem:[%s175_s29] sm:$0xff] (%p78_p3), %v194_v0  ;;  %v200_v3 = vld [vmem:[%s181_s28 + $0x3b8] sm:$0xff] (%p78_p3)  ;;  %v202_v4 = vld [vmem:[%s181_s28 + $0x760] sm:$0xff] (%p78_p3)  ;;  %v204_v5 = vld [vmem:[%s181_s28 + $0x768] sm:$0xff] (%p78_p3) }
  0x15   : > { %197 = vst [vmem:[%s175_s29 + $0x8] sm:$0xff] %v196_v1  ;;  %v206_v6 = vld [vmem:[%s181_s28 + $0xb10] sm:$0xff]  ;;  %v208_v7 = vld [vmem:[%s181_s28 + $0xb18] sm:$0xff] }
  0x16   : > { %199 = vst [vmem:[%s175_s29 + $0x10] sm:$0xff] %v198_v2 }
  0x17   : > { %201 = vst [vmem:[%s175_s29 + $0x18] sm:$0xff] %v200_v3 }
  0x18   : > { %203 = vst [vmem:[%s175_s29 + $0x20] sm:$0xff] %v202_v4 }
  0x19   : > { %205 = vst [vmem:[%s175_s29 + $0x28] sm:$0xff] %v204_v5 }
  0x1a   : > { %207 = vst [vmem:[%s175_s29 + $0x30] sm:$0xff] %v206_v6 }
  0x1b   : > { %209 = vst [vmem:[%s175_s29 + $0x38] sm:$0xff] %v208_v7 }
  0x1c PF: > { %p568_p8 = scmp.ge.s32.totalorder %s706_s16, 1  ;;  %p222_p9 = scmp.lt.s32.totalorder %s706_s16, 60 }
  0x1e   : > { %p223_p10 = pnand %p568_p8, %p222_p9 }
  0x1f   : > { %s229_s30 = sand.u32 (!%p223_p10), 1, %s690_s12   ;;  %s571_s8 = sshll.u32 (!%p223_p10), %s698_s14, 2 }
  0x20   : > { %226 = sbr.rel (%p223_p10) target bundleno = 200 (0xc8), region = 51  ;;  %s779_s4 = sshll.u32 (!%p223_p10), %s229_s30, 6 }
  0x21   : > { %s231_s5 = scalar_lea.vmem (!%p223_p10), [#allocation2], %s779_s4  ;;  %p275_p11 = scmp.lt.s32.totalorder (!%p223_p10), %s571_s8, 235 }
  0x22   : > { %s790_s12 = scalar_lea.vmem (!%p223_p10), [#allocation3], %s779_s4 }
  0x25   : > { %v594_v8 = vld [vmem:[%s231_s5 + $0x20] sm:$0xf]  ;;  %v625_v9 = vld [vmem:[%s231_s5 + $0x2c] sm:$0xf0]  ;;  %v623_v10 = vld [vmem:[%s231_s5 + $0x24] sm:$0xf] }
  0x26   : > { %v595_v11 = vor.u32 %v625_v9, %v594_v8  ;;  %v596_v12 = vld [vmem:[%s231_s5 + $0x30] sm:$0xf0]  ;;  %v602_v13 = vld [vmem:[%s231_s5 + $0x28] sm:$0xf]  ;;  %v626_v14 = vld [vmem:[%s231_s5 + $0x34] sm:$0xf0] }
  0x27   : > { %v599_v15 = vor.u32 %v623_v10, %v596_v12  ;;  %v603_v16 = vor.u32 %v626_v14, %v602_v13  ;;  %v624_v17 = vld [vmem:[%s231_s5 + $0x2c] sm:$0xf]  ;;  %v604_v18 = vld [vmem:[%s231_s5 + $0x38] sm:$0xf0]  ;;  %v578_v19 = vld [vmem:[%s231_s5] sm:$0xf] }
  0x28   : > { %357 = vmatpush.bf16.msra.mxu0 %v595_v11  ;;  %v607_v20 = vor.u32 %v624_v17, %v604_v18  ;;  %v621_v21 = vld [vmem:[%s231_s5 + $0xc] sm:$0xf0]  ;;  %v619_v22 = vld [vmem:[%s231_s5 + $0x4] sm:$0xf]  ;;  %v580_v23 = vld [vmem:[%s231_s5 + $0x10] sm:$0xf0] }
  0x29   : > { %371 = vmatpush.bf16.msra.mxu1 %v599_v15  ;;  %385 = vmatpush.bf16.msra.mxu2 %v603_v16  ;;  %v579_v24 = vor.u32 %v621_v21, %v578_v19  ;;  %v583_v25 = vor.u32 %v619_v22, %v580_v23  ;;  %v586_v26 = vld [vmem:[%s231_s5 + $0x8] sm:$0xf]  ;;  %v622_v27 = vld [vmem:[%s231_s5 + $0x14] sm:$0xf0]  ;;  %v620_v28 = vld [vmem:[%s231_s5 + $0xc] sm:$0xf] }
  0x2a   : > { %399 = vmatpush.bf16.msra.mxu3 %v607_v20  ;;  %v587_v29 = vor.u32 %v622_v27, %v586_v26  ;;  %v588_v30 = vld [vmem:[%s231_s5 + $0x18] sm:$0xf0]  ;;  %v618_v32 = vld [vmem:[%s829_s0] sm:$0xff]  ;;  %vm347_vm0 = vcmask 261120   ;;  %s841_s8 = smov (!%p275_p11, %s571_s8), 235  ;;  %s627_s18 = sshll.u32 (%p763_p6), %s698_s14, 5 }
  0x2b   : > { %v591_v31 = vor.u32 %v620_v28, %v588_v30  ;;  %s277_s11 = scalar_lea.vmem %s831_s2, %s841_s8  ;;  %s427_s23 = scalar_lea.vmem (%p763_p6), %s832_s3, %s627_s18 }
  0x2c   : > { %358 = vmatpush.bf16.msra.mxu0 %v579_v24  ;;  %v292_v33 = vld [vmem:[%s277_s11] sm:$0xf] }
  0x2d   : > { %372 = vmatpush.bf16.msra.mxu1 %v583_v25  ;;  %386 = vmatpush.bf16.msra.mxu2 %v587_v29  ;;  %v294_v34 = vperm.slane %v292_v33, 0  ;;  %v295_v35 = vperm.slane %v292_v33, 1  ;;  %v296_v40 = vperm.slane %v292_v33, 2  ;;  %v297_v41 = vperm.slane %v292_v33, 3 }
  0x2e   : > { %400 = vmatpush.bf16.msra.mxu3 %v591_v31 }
  0x2f   : > { %608 = vmatmul.msk.bf16.vlgmr.msra.gmra.mxu0 %vm347_vm0, %v618_v32 }
  0x30   : > { %609 = vmatmul.msk.bf16.vlgmr.msra.gmra.mxu1 %vm347_vm0, %v618_v32  ;;  %610 = vmatmul.msk.bf16.vlgmr.msra.gmra.mxu2 %vm347_vm0, %v618_v32 }
  0x31   : > { %611 = vmatmul.msk.bf16.vlgmr.msra.gmra.mxu3 %vm347_vm0, %v618_v32 }
  0xac   : > { %v360_v36 = vpop.f32.mrf.mxu0 }
  0xad   : > { %v361_v37 = vadd.f32 %v360_v36, %v294_v34  ;;  %v374_v38 = vpop.f32.mrf.mxu1 }
  0xae   : > { %v375_v39 = vadd.f32 %v374_v38, %v295_v35 }
  0xaf   : > { %407 = vst [vmem:[%s790_s12] sm:$0xff] %v361_v37 }
  0xb0   : > { %408 = vst [vmem:[%s790_s12 + $0x8] sm:$0xff] %v375_v39 }
  0xb3   : > { %v388_v42 = vpop.f32.mrf.mxu2 }
  0xb4   : > { %v389_v43 = vadd.f32 %v388_v42, %v296_v40  ;;  %v402_v44 = vpop.f32.mrf.mxu3  ;;  %v362_v45 = vpop.f32.mrf.mxu0 }
  0xb5   : > { %v403_v46 = vadd.f32 %v402_v44, %v297_v41  ;;  %v363_v47 = vadd.f32 %v362_v45, %v294_v34  ;;  %v376_v48 = vpop.f32.mrf.mxu1 }
  0xb6   : > { %409 = vst [vmem:[%s790_s12 + $0x10] sm:$0xff] %v389_v43  ;;  %v377_v49 = vadd.f32 %v376_v48, %v295_v35  ;;  %v440_v54 = vld [vmem:[%s790_s12] sm:$0xff] (%p763_p6) }
  0xb7   : > { %410 = vst [vmem:[%s790_s12 + $0x18] sm:$0xff] %v403_v46  ;;  %v442_v55 = vld [vmem:[%s790_s12 + $0x8] sm:$0xff] (%p763_p6) }
  0xb8   : > { %411 = vst [vmem:[%s790_s12 + $0x20] sm:$0xff] %v363_v47 }
  0xb9   : > { %412 = vst [vmem:[%s790_s12 + $0x28] sm:$0xff] %v377_v49 }
  0xba   : > { %441 = vst [vmem:[%s427_s23] sm:$0xff] (%p763_p6), %v440_v54 }
  0xbb   : > { %v390_v50 = vpop.f32.mrf.mxu2  ;;  %421 = sbr.rel (!%p763_p6) target bundleno = 200 (0xc8), region = 59  ;;  %443 = vst [vmem:[%s427_s23 + $0x8] sm:$0xff] (%p763_p6), %v442_v55 }
  0xbc   : > { %v391_v51 = vadd.f32 %v390_v50, %v296_v40  ;;  %v404_v52 = vpop.f32.mrf.mxu3 }
  0xbd   : > { %v405_v53 = vadd.f32 %v404_v52, %v297_v41  ;;  %v444_v56 = vld [vmem:[%s790_s12 + $0x10] sm:$0xff] (%p763_p6) }
  0xbe   : > { %413 = vst [vmem:[%s790_s12 + $0x30] sm:$0xff] %v391_v51  ;;  %v446_v57 = vld [vmem:[%s790_s12 + $0x18] sm:$0xff] (%p763_p6) }
  0xbf   : > { %414 = vst [vmem:[%s790_s12 + $0x38] sm:$0xff] %v405_v53  ;;  %v448_v58 = vld [vmem:[%s790_s12 + $0x20] sm:$0xff] (%p763_p6) }
  0xc0   : > { %445 = vst [vmem:[%s427_s23 + $0x10] sm:$0xff] %v444_v56  ;;  %v450_v59 = vld [vmem:[%s790_s12 + $0x28] sm:$0xff] }
  0xc1   : > { %447 = vst [vmem:[%s427_s23 + $0x18] sm:$0xff] %v446_v57 }
  0xc2   : > { %449 = vst [vmem:[%s427_s23 + $0x760] sm:$0xff] %v448_v58 }
  0xc3   : > { %451 = vst [vmem:[%s427_s23 + $0x768] sm:$0xff] %v450_v59 }
  0xc5   : > { %v452_v60 = vld [vmem:[%s790_s12 + $0x30] sm:$0xff] }
  0xc6   : > { %v454_v61 = vld [vmem:[%s790_s12 + $0x38] sm:$0xff]  ;;  %453 = vst [vmem:[%s427_s23 + $0x770] sm:$0xff] %v452_v60 }
  0xc7   : > { %455 = vst [vmem:[%s427_s23 + $0x778] sm:$0xff] %v454_v61 }
  0xc8 PF: > { %s13_s16 = sadd.s32 1, %s706_s16   ;;  %s834_s12 = smov %s694_s13 }
  0xc9   : > { %p10_p12 = scmp.ge.s32.totalorder %s13_s16, 61   ;;  %s835_s13 = smov %s768_s22 }
  0xca   : > { %s836_s14 = smov %s702_s15  ;;  %s837_s15 = smov %s839_s17 }
  0xcb   :  { %12 = sbr.rel (!%p10_p12) target bundleno = 3 (0x3), region = 119 }

</bundles_post_ra>
